<compile_context>
chip_gen: v6e
topology: v6e:2x2x1
jax: 0.10.0
libtpu: 0.0.40
codegen_flags: <defaults>
</compile_context>

<pallas_src>
import functools
import math

import jax
import jax.numpy as jnp
from jax.experimental import pallas as pl
from jax.experimental.pallas import tpu as pltpu

_LN_EPS = 1e-5


# ------------------------------ fused kernel -------------------------------

def _vit_fused_kernel(patches_ref, pe_w_ref, pe_b_ref, cls_ref, pos_ref,
                      wqkv_ref, bqkv_ref, wo_ref, bo_ref,
                      g1_ref, b1_ref, w1_ref, c1_ref, w2_ref, c2_ref,
                      g2_ref, b2_ref, fc_w_ref, fc_b_ref,
                      out_ref, buf_ref, *, heads, head_dim):
    """Whole ViT forward in one kernel.

    Encoder activations live flattened as (R, D) f32 with R = S*B and
    row = s*B + b.  The attention axis is the image batch B (PyTorch
    nn.TransformerEncoder default batch_first=False on a (B, S, D) input);
    the encoder's batch axis is the token axis S.
    """
    depth = wqkv_ref.shape[0]
    D = pe_w_ref.shape[1]
    B = cls_ref.shape[0]
    R = buf_ref.shape[0]
    S = R // B
    scale = 1.0 / float(head_dim) ** 0.5

    # ---- patch embedding: one MXU dot (rows already in (patch, image) order)
    emb = jnp.dot(patches_ref[...], pe_w_ref[...],
                  preferred_element_type=jnp.float32) + pe_b_ref[...]
    # token assembly: rows [0, B) = cls token, rows [B, R) = patch embeddings
    buf_ref[:B, :] = cls_ref[...]
    buf_ref[B:, :] = emb
    y = buf_ref[...] + pos_ref[...]                                 # (R, D) f32

    def _ln(t, g, b):                         # LayerNorm in f32 (eps = 1e-5)
        mu = jnp.mean(t, axis=-1, keepdims=True)
        tc = t - mu
        var = jnp.mean(tc * tc, axis=-1, keepdims=True)
        return tc * jax.lax.rsqrt(var + _LN_EPS) * g + b

    # TODO(synk): at real depth, replace the static unroll with lax.fori_loop
    # (dynamic leading-axis weight indexing) or a grid axis over layers.
    for l in range(depth):
        # --- fused QKV projection: single full-width MXU dot ---
        qkv = jnp.dot(y.astype(jnp.bfloat16), wqkv_ref[l],
                      preferred_element_type=jnp.float32) + bqkv_ref[l]
        qkv_b = qkv.astype(jnp.bfloat16)          # cast once for all heads

        # --- multi-head attention.  Heads are static lane slices of the
        #     fused projection; each head's output goes to its lane offset in
        #     the (R, D) scratch so the output projection is ONE K=D dot. ---
        for h in range(heads):
            lo = h * head_dim
            q = qkv_b[:, lo:lo + head_dim].reshape(S, B, head_dim)
            k = qkv_b[:, D + lo:D + lo + head_dim].reshape(S, B, head_dim)
            v = qkv_b[:, 2 * D + lo:2 * D + lo + head_dim].reshape(S, B, head_dim)
            s = jnp.einsum("nld,nmd->nlm", q, k,
                           preferred_element_type=jnp.float32) * scale   # (S,B,B)
            s = s - jnp.max(s, axis=-1, keepdims=True)                    # f32 softmax
            p = jnp.exp(s)
            p = p * pl.reciprocal(jnp.sum(p, axis=-1, keepdims=True), approx=True)
            o = jnp.einsum("nlm,nmd->nld", p.astype(jnp.bfloat16), v,
                           preferred_element_type=jnp.float32)            # (S,B,hd)
            buf_ref[:, lo:lo + head_dim] = o.reshape(R, head_dim)

        # --- single full-K output projection ---
        sa = jnp.dot(buf_ref[...].astype(jnp.bfloat16), wo_ref[l],
                     preferred_element_type=jnp.float32) + bo_ref[l]

        # --- residual + LN1 (post-norm) ---
        h1 = _ln(y + sa, g1_ref[l], b1_ref[l])

        # --- MLP: lin1 + ReLU + lin2 ---
        ff = jnp.dot(h1.astype(jnp.bfloat16), w1_ref[l],
                     preferred_element_type=jnp.float32) + c1_ref[l]
        ff = jnp.maximum(ff, 0.0)
        ff = jnp.dot(ff.astype(jnp.bfloat16), w2_ref[l],
                     preferred_element_type=jnp.float32) + c2_ref[l]

        # --- residual + LN2 ---
        y = _ln(h1 + ff, g2_ref[l], b2_ref[l])

    # ---- classifier on the CLS rows (s == 0 -> first B rows); lane-dense ----
    logits = jnp.dot(y[:B, :].astype(jnp.bfloat16), fc_w_ref[...],
                     preferred_element_type=jnp.float32) + fc_b_ref[...]
    out_ref[...] = logits.astype(out_ref.dtype)


# --------------------------- model (wrapper glue) ---------------------------

def vit_forward(x, params, cfg):
    B, C, H, W = x.shape
    P = cfg["patch_size"]
    D = cfg["dim"]
    heads = cfg["heads"]
    head_dim = D // heads
    depth = cfg["depth"]
    mlp = cfg["mlp_dim"]
    n_p = (H // P) * (W // P)
    S = n_p + 1
    R = S * B
    patch_dim = C * P * P
    nc = cfg["num_classes"]
    nc_pad = params["fc_w"].shape[1]

    # Patch extraction == torch unfold(2,P,P).unfold(3,P,P).contiguous().view()
    # (pure layout -> wrapper).  Rows are re-ordered (patch, image)-major so
    # the encoder's (S, B) layout is assembled with plain row writes in-kernel.
    xp = x.reshape(B, C, H // P, P, W // P, P).transpose(0, 1, 2, 4, 3, 5)
    patches = xp.reshape(B, n_p, patch_dim)
    patches_t = jnp.transpose(patches, (1, 0, 2)).reshape(n_p * B, patch_dim)
    patches_t = patches_t.astype(jnp.bfloat16)                 # bf16 MXU operand

    cls_b = jnp.broadcast_to(params["cls"], (B, D))            # (B, D) f32
    pos_flat = jnp.repeat(params["pos"], B, axis=0)            # (R, D), row = s*B+b

    kernel = functools.partial(_vit_fused_kernel, heads=heads, head_dim=head_dim)

    operands = (patches_t, params["pe_w"], params["pe_b"], cls_b, pos_flat,
                params["wqkv"], params["bqkv"], params["wo"], params["bo"],
                params["ln1_g"], params["ln1_b"], params["w1"], params["b1"],
                params["w2"], params["b2"], params["ln2_g"], params["ln2_b"],
                params["fc_w"], params["fc_b"])

    flops = (2 * (n_p * B) * patch_dim * D                      # patch embedding
             + depth * (2 * R * D * 3 * D                       # fused QKV
                        + heads * 4 * S * B * B * head_dim      # scores + PV
                        + 2 * R * D * D                         # output projection
                        + 4 * R * D * mlp)                      # MLP
             + 2 * B * D * nc_pad)                              # classifier
    transcendentals = depth * (heads * S * B * B + heads * S * B + 2 * R)
    bytes_accessed = (sum(math.prod(a.shape) * a.dtype.itemsize for a in operands)
                      + B * nc_pad * 4)

    logits_pad = pl.pallas_call(
        kernel,
        out_shape=jax.ShapeDtypeStruct((B, nc_pad), jnp.float32),
        in_specs=[pl.BlockSpec(memory_space=pltpu.MemorySpace.VMEM)] * len(operands),
        out_specs=pl.BlockSpec(memory_space=pltpu.MemorySpace.VMEM),
        scratch_shapes=[pltpu.VMEM((R, D), jnp.float32)],
        cost_estimate=pl.CostEstimate(flops=int(flops),
                                      transcendentals=int(transcendentals),
                                      bytes_accessed=int(bytes_accessed)),
    )(*operands)
    return logits_pad[:, :nc]


# ------------------------------ init & driver -------------------------------

def _round_up(v, m):
    return (v + m - 1) // m * m


def init_params(key, cfg):
    P, D, mlp = cfg["patch_size"], cfg["dim"], cfg["mlp_dim"]
    depth = cfg["depth"]
    n_p = (cfg["img_size"] // P) ** 2
    patch_dim = 3 * P * P
    S = n_p + 1
    nc = cfg["num_classes"]
    nc_pad = _round_up(nc, 128)          # lane-dense classifier output width
    ks = iter(jax.random.split(key, 16))

    def w(shape, scale=0.02):
        # MXU matmul weights stored in bf16; accumulation stays f32.
        return (scale * jax.random.normal(next(ks), shape)).astype(jnp.bfloat16)

    fc_w = jnp.zeros((D, nc_pad), jnp.bfloat16).at[:, :nc].set(w((D, nc)))

    return {
        "pe_w": w((patch_dim, D)),
        "pe_b": jnp.zeros((1, D), jnp.float32),
        "pos": jnp.zeros((S, D), jnp.float32),        # torch.zeros init
        "cls": jnp.zeros((1, D), jnp.float32),        # torch.zeros init
        "fc_w": fc_w,
        "fc_b": jnp.zeros((1, nc_pad), jnp.float32),
        # per-layer encoder weights stacked on a leading `depth` axis so the
        # whole encoder runs inside one pallas_call.
        "wqkv": w((depth, D, 3 * D)),
        "bqkv": jnp.zeros((depth, 1, 3 * D), jnp.float32),
        "wo": w((depth, D, D)),
        "bo": jnp.zeros((depth, 1, D), jnp.float32),
        "ln1_g": jnp.ones((depth, 1, D), jnp.float32),
        "ln1_b": jnp.zeros((depth, 1, D), jnp.float32),
        "w1": w((depth, D, mlp)),
        "b1": jnp.zeros((depth, 1, mlp), jnp.float32),
        "w2": w((depth, mlp, D)),
        "b2": jnp.zeros((depth, 1, D), jnp.float32),
        "ln2_g": jnp.ones((depth, 1, D), jnp.float32),
        "ln2_b": jnp.zeros((depth, 1, D), jnp.float32),
    }


if __name__ == "__main__":
    cfg = dict(img_size=16, patch_size=8, num_classes=10,
               dim=32, depth=2, heads=4, mlp_dim=64)

    key = jax.random.PRNGKey(0)
    k_param, k_x = jax.random.split(key)
    params = init_params(k_param, cfg)

    x = jax.random.normal(k_x, (2, 3, cfg["img_size"], cfg["img_size"]),
                          dtype=jnp.float32)   # NCHW, like PyTorch

    fwd = jax.jit(functools.partial(vit_forward, cfg=cfg))
    out = jax.block_until_ready(fwd(x, params))
    assert out.shape == (2, cfg["num_classes"]), out.shape
    print("KERNEL_OK")
</pallas_src>

<mosaic_0001>
module attributes {stable_mosaic.version = 11 : i64} {
  func.func @_vit_fused_kernel(%arg0: memref<8x192xbf16, #tpu.memory_space<vmem>>, %arg1: memref<192x32xbf16, #tpu.memory_space<vmem>>, %arg2: memref<1x32xf32, #tpu.memory_space<vmem>>, %arg3: memref<2x32xf32, #tpu.memory_space<vmem>>, %arg4: memref<10x32xf32, #tpu.memory_space<vmem>>, %arg5: memref<2x32x96xbf16, #tpu.memory_space<vmem>>, %arg6: memref<2x1x96xf32, #tpu.memory_space<vmem>>, %arg7: memref<2x32x32xbf16, #tpu.memory_space<vmem>>, %arg8: memref<2x1x32xf32, #tpu.memory_space<vmem>>, %arg9: memref<2x1x32xf32, #tpu.memory_space<vmem>>, %arg10: memref<2x1x32xf32, #tpu.memory_space<vmem>>, %arg11: memref<2x32x64xbf16, #tpu.memory_space<vmem>>, %arg12: memref<2x1x64xf32, #tpu.memory_space<vmem>>, %arg13: memref<2x64x32xbf16, #tpu.memory_space<vmem>>, %arg14: memref<2x1x32xf32, #tpu.memory_space<vmem>>, %arg15: memref<2x1x32xf32, #tpu.memory_space<vmem>>, %arg16: memref<2x1x32xf32, #tpu.memory_space<vmem>>, %arg17: memref<32x128xbf16, #tpu.memory_space<vmem>>, %arg18: memref<1x128xf32, #tpu.memory_space<vmem>>, %arg19: memref<2x128xf32, #tpu.memory_space<vmem>>, %arg20: memref<10x32xf32, #tpu.memory_space<vmem>>) attributes {dimension_semantics = [], scalar_prefetch = 0 : i64, scratch_operands = 1 : i64, tpu.core_type = #tpu.core_type<tc>} {
    %c0 = arith.constant 0 : index
    %c0_0 = arith.constant 0 : index
    %0 = vector.load %arg0[%c0, %c0_0] : memref<8x192xbf16, #tpu.memory_space<vmem>>, vector<8x192xbf16>
    %c0_1 = arith.constant 0 : index
    %c0_2 = arith.constant 0 : index
    %1 = vector.load %arg1[%c0_1, %c0_2] : memref<192x32xbf16, #tpu.memory_space<vmem>>, vector<192x32xbf16>
    %cst = arith.constant dense<0.000000e+00> : vector<8x32xf32>
    %2 = tpu.matmul %0, %1, %cst {dimension_numbers = #tpu.dot_dimension_numbers<[1], [0], [0], [1], [0, 0, 1, 1], [], []>} : vector<8x192xbf16>, vector<192x32xbf16>, vector<8x32xf32> -> vector<8x32xf32>
    %c0_3 = arith.constant 0 : index
    %c0_4 = arith.constant 0 : index
    %3 = vector.load %arg2[%c0_3, %c0_4] : memref<1x32xf32, #tpu.memory_space<vmem>>, vector<1x32xf32>
    %4 = vector.broadcast %3 : vector<1x32xf32> to vector<8x32xf32>
    %5 = arith.addf %2, %4 : vector<8x32xf32>
    %c0_5 = arith.constant 0 : index
    %c0_6 = arith.constant 0 : index
    %6 = vector.load %arg3[%c0_5, %c0_6] : memref<2x32xf32, #tpu.memory_space<vmem>>, vector<2x32xf32>
    %c0_7 = arith.constant 0 : index
    %c0_8 = arith.constant 0 : index
    %7 = vector.load %arg20[%c0_7, %c0_8] : memref<10x32xf32, #tpu.memory_space<vmem>>, vector<2x32xf32>
    tpu.vector_store %arg20[%c0_7, %c0_8], %6 {strides = array<i32>} : memref<10x32xf32, #tpu.memory_space<vmem>>, vector<2x32xf32>,
    %c2 = arith.constant 2 : index
    %c0_9 = arith.constant 0 : index
    %8 = vector.load %arg20[%c2, %c0_9] : memref<10x32xf32, #tpu.memory_space<vmem>>, vector<8x32xf32>
    tpu.vector_store %arg20[%c2, %c0_9], %5 {strides = array<i32>} : memref<10x32xf32, #tpu.memory_space<vmem>>, vector<8x32xf32>,
    %c0_10 = arith.constant 0 : index
    %c0_11 = arith.constant 0 : index
    %9 = vector.load %arg20[%c0_10, %c0_11] : memref<10x32xf32, #tpu.memory_space<vmem>>, vector<10x32xf32>
    %c0_12 = arith.constant 0 : index
    %c0_13 = arith.constant 0 : index
    %10 = vector.load %arg4[%c0_12, %c0_13] : memref<10x32xf32, #tpu.memory_space<vmem>>, vector<10x32xf32>
    %11 = arith.addf %9, %10 : vector<10x32xf32>
    %12 = arith.truncf %11 : vector<10x32xf32> to vector<10x32xbf16>
    %c0_14 = arith.constant 0 : index
    %c0_15 = arith.constant 0 : index
    %c0_16 = arith.constant 0 : index
    %13 = vector.load %arg5[%c0_14, %c0_15, %c0_16] : memref<2x32x96xbf16, #tpu.memory_space<vmem>>, vector<1x32x96xbf16>
    %14 = vector.shape_cast %13 : vector<1x32x96xbf16> to vector<32x96xbf16>
    %cst_17 = arith.constant dense<0.000000e+00> : vector<10x96xf32>
    %15 = tpu.matmul %12, %14, %cst_17 {dimension_numbers = #tpu.dot_dimension_numbers<[1], [0], [0], [1], [0, 0, 1, 1], [], []>} : vector<10x32xbf16>, vector<32x96xbf16>, vector<10x96xf32> -> vector<10x96xf32>
    %c0_18 = arith.constant 0 : index
    %c0_19 = arith.constant 0 : index
    %c0_20 = arith.constant 0 : index
    %16 = vector.load %arg6[%c0_18, %c0_19, %c0_20] : memref<2x1x96xf32, #tpu.memory_space<vmem>>, vector<1x1x96xf32>
    %17 = vector.shape_cast %16 : vector<1x1x96xf32> to vector<1x96xf32>
    %18 = vector.broadcast %17 : vector<1x96xf32> to vector<10x96xf32>
    %19 = arith.addf %15, %18 : vector<10x96xf32>
    %20 = arith.truncf %19 : vector<10x96xf32> to vector<10x96xbf16>
    %21 = vector.extract_strided_slice %20 {offsets = [0, 0], sizes = [10, 8], strides = [1, 1]} : vector<10x96xbf16> to vector<10x8xbf16>
    %22 = vector.shape_cast %21 : vector<10x8xbf16> to vector<5x2x8xbf16>
    %23 = vector.extract_strided_slice %20 {offsets = [0, 32], sizes = [10, 8], strides = [1, 1]} : vector<10x96xbf16> to vector<10x8xbf16>
    %24 = vector.shape_cast %23 : vector<10x8xbf16> to vector<5x2x8xbf16>
    %25 = vector.extract_strided_slice %20 {offsets = [0, 64], sizes = [10, 8], strides = [1, 1]} : vector<10x96xbf16> to vector<10x8xbf16>
    %26 = vector.shape_cast %25 : vector<10x8xbf16> to vector<5x2x8xbf16>
    "tpu.trace_start"() <{level = 10 : i32, message = "nld,nmd->nlm"}> : () -> ()
    %cst_21 = arith.constant dense<0.000000e+00> : vector<5x2x2xf32>
    %27 = tpu.matmul %22, %24, %cst_21 {dimension_numbers = #tpu.dot_dimension_numbers<[2], [2], [1], [1], [0, 0, 0, 1, 1, 1], [0], [0]>} : vector<5x2x8xbf16>, vector<5x2x8xbf16>, vector<5x2x2xf32> -> vector<5x2x2xf32>
    "tpu.trace_stop"() : () -> ()
    %cst_22 = arith.constant 0.353553385 : f32
    %28 = vector.broadcast %cst_22 : f32 to vector<5x2x2xf32>
    %29 = arith.mulf %27, %28 : vector<5x2x2xf32>
    %cst_23 = arith.constant dense<0xFF800000> : vector<5x2xf32>
    %30 = vector.multi_reduction <maximumf>, %29, %cst_23 [2] : vector<5x2x2xf32> to vector<5x2xf32>
    %31 = vector.shape_cast %30 : vector<5x2xf32> to vector<5x2x1xf32>
    %32 = vector.broadcast %31 : vector<5x2x1xf32> to vector<5x2x2xf32>
    %33 = arith.subf %29, %32 : vector<5x2x2xf32>
    %34 = math.exp %33 : vector<5x2x2xf32>
    %cst_24 = arith.constant dense<0.000000e+00> : vector<5x2xf32>
    %35 = vector.multi_reduction <add>, %34, %cst_24 [2] : vector<5x2x2xf32> to vector<5x2xf32>
    %36 = vector.shape_cast %35 : vector<5x2xf32> to vector<5x2x1xf32>
    %37 = tpu.reciprocal %36 {approx = true} : vector<5x2x1xf32> -> vector<5x2x1xf32>
    %38 = vector.broadcast %37 : vector<5x2x1xf32> to vector<5x2x2xf32>
    %39 = arith.mulf %34, %38 : vector<5x2x2xf32>
    %40 = arith.truncf %39 : vector<5x2x2xf32> to vector<5x2x2xbf16>
    "tpu.trace_start"() <{level = 10 : i32, message = "nlm,nmd->nld"}> : () -> ()
    %cst_25 = arith.constant dense<0.000000e+00> : vector<5x2x8xf32>
    %41 = tpu.matmul %40, %26, %cst_25 {dimension_numbers = #tpu.dot_dimension_numbers<[2], [1], [1], [2], [0, 0, 0, 1, 1, 2], [0], [0]>} : vector<5x2x2xbf16>, vector<5x2x8xbf16>, vector<5x2x8xf32> -> vector<5x2x8xf32>
    "tpu.trace_stop"() : () -> ()
    %42 = vector.shape_cast %41 : vector<5x2x8xf32> to vector<10x8xf32>
    %c0_26 = arith.constant 0 : index
    %c0_27 = arith.constant 0 : index
    %43 = vector.load %arg20[%c0_26, %c0_27] : memref<10x32xf32, #tpu.memory_space<vmem>>, vector<10x8xf32>
    tpu.vector_store %arg20[%c0_26, %c0_27], %42 {strides = array<i32>} : memref<10x32xf32, #tpu.memory_space<vmem>>, vector<10x8xf32>,
    %44 = vector.extract_strided_slice %20 {offsets = [0, 8], sizes = [10, 8], strides = [1, 1]} : vector<10x96xbf16> to vector<10x8xbf16>
    %45 = vector.shape_cast %44 : vector<10x8xbf16> to vector<5x2x8xbf16>
    %46 = vector.extract_strided_slice %20 {offsets = [0, 40], sizes = [10, 8], strides = [1, 1]} : vector<10x96xbf16> to vector<10x8xbf16>
    %47 = vector.shape_cast %46 : vector<10x8xbf16> to vector<5x2x8xbf16>
    %48 = vector.extract_strided_slice %20 {offsets = [0, 72], sizes = [10, 8], strides = [1, 1]} : vector<10x96xbf16> to vector<10x8xbf16>
    %49 = vector.shape_cast %48 : vector<10x8xbf16> to vector<5x2x8xbf16>
    "tpu.trace_start"() <{level = 10 : i32, message = "nld,nmd->nlm"}> : () -> ()
    %cst_28 = arith.constant dense<0.000000e+00> : vector<5x2x2xf32>
    %50 = tpu.matmul %45, %47, %cst_28 {dimension_numbers = #tpu.dot_dimension_numbers<[2], [2], [1], [1], [0, 0, 0, 1, 1, 1], [0], [0]>} : vector<5x2x8xbf16>, vector<5x2x8xbf16>, vector<5x2x2xf32> -> vector<5x2x2xf32>
    "tpu.trace_stop"() : () -> ()
    %cst_29 = arith.constant 0.353553385 : f32
    %51 = vector.broadcast %cst_29 : f32 to vector<5x2x2xf32>
    %52 = arith.mulf %50, %51 : vector<5x2x2xf32>
    %cst_30 = arith.constant dense<0xFF800000> : vector<5x2xf32>
    %53 = vector.multi_reduction <maximumf>, %52, %cst_30 [2] : vector<5x2x2xf32> to vector<5x2xf32>
    %54 = vector.shape_cast %53 : vector<5x2xf32> to vector<5x2x1xf32>
    %55 = vector.broadcast %54 : vector<5x2x1xf32> to vector<5x2x2xf32>
    %56 = arith.subf %52, %55 : vector<5x2x2xf32>
    %57 = math.exp %56 : vector<5x2x2xf32>
    %cst_31 = arith.constant dense<0.000000e+00> : vector<5x2xf32>
    %58 = vector.multi_reduction <add>, %57, %cst_31 [2] : vector<5x2x2xf32> to vector<5x2xf32>
    %59 = vector.shape_cast %58 : vector<5x2xf32> to vector<5x2x1xf32>
    %60 = tpu.reciprocal %59 {approx = true} : vector<5x2x1xf32> -> vector<5x2x1xf32>
    %61 = vector.broadcast %60 : vector<5x2x1xf32> to vector<5x2x2xf32>
    %62 = arith.mulf %57, %61 : vector<5x2x2xf32>
    %63 = arith.truncf %62 : vector<5x2x2xf32> to vector<5x2x2xbf16>
    "tpu.trace_start"() <{level = 10 : i32, message = "nlm,nmd->nld"}> : () -> ()
    %cst_32 = arith.constant dense<0.000000e+00> : vector<5x2x8xf32>
    %64 = tpu.matmul %63, %49, %cst_32 {dimension_numbers = #tpu.dot_dimension_numbers<[2], [1], [1], [2], [0, 0, 0, 1, 1, 2], [0], [0]>} : vector<5x2x2xbf16>, vector<5x2x8xbf16>, vector<5x2x8xf32> -> vector<5x2x8xf32>
    "tpu.trace_stop"() : () -> ()
    %65 = vector.shape_cast %64 : vector<5x2x8xf32> to vector<10x8xf32>
    %c0_33 = arith.constant 0 : index
    %c8 = arith.constant 8 : index
    %66 = vector.load %arg20[%c0_33, %c8] : memref<10x32xf32, #tpu.memory_space<vmem>>, vector<10x8xf32>
    tpu.vector_store %arg20[%c0_33, %c8], %65 {strides = array<i32>} : memref<10x32xf32, #tpu.memory_space<vmem>>, vector<10x8xf32>,
    %67 = vector.extract_strided_slice %20 {offsets = [0, 16], sizes = [10, 8], strides = [1, 1]} : vector<10x96xbf16> to vector<10x8xbf16>
    %68 = vector.shape_cast %67 : vector<10x8xbf16> to vector<5x2x8xbf16>
    %69 = vector.extract_strided_slice %20 {offsets = [0, 48], sizes = [10, 8], strides = [1, 1]} : vector<10x96xbf16> to vector<10x8xbf16>
    %70 = vector.shape_cast %69 : vector<10x8xbf16> to vector<5x2x8xbf16>
    %71 = vector.extract_strided_slice %20 {offsets = [0, 80], sizes = [10, 8], strides = [1, 1]} : vector<10x96xbf16> to vector<10x8xbf16>
    %72 = vector.shape_cast %71 : vector<10x8xbf16> to vector<5x2x8xbf16>
    "tpu.trace_start"() <{level = 10 : i32, message = "nld,nmd->nlm"}> : () -> ()
    %cst_34 = arith.constant dense<0.000000e+00> : vector<5x2x2xf32>
    %73 = tpu.matmul %68, %70, %cst_34 {dimension_numbers = #tpu.dot_dimension_numbers<[2], [2], [1], [1], [0, 0, 0, 1, 1, 1], [0], [0]>} : vector<5x2x8xbf16>, vector<5x2x8xbf16>, vector<5x2x2xf32> -> vector<5x2x2xf32>
    "tpu.trace_stop"() : () -> ()
    %cst_35 = arith.constant 0.353553385 : f32
    %74 = vector.broadcast %cst_35 : f32 to vector<5x2x2xf32>
    %75 = arith.mulf %73, %74 : vector<5x2x2xf32>
    %cst_36 = arith.constant dense<0xFF800000> : vector<5x2xf32>
    %76 = vector.multi_reduction <maximumf>, %75, %cst_36 [2] : vector<5x2x2xf32> to vector<5x2xf32>
    %77 = vector.shape_cast %76 : vector<5x2xf32> to vector<5x2x1xf32>
    %78 = vector.broadcast %77 : vector<5x2x1xf32> to vector<5x2x2xf32>
    %79 = arith.subf %75, %78 : vector<5x2x2xf32>
    %80 = math.exp %79 : vector<5x2x2xf32>
    %cst_37 = arith.constant dense<0.000000e+00> : vector<5x2xf32>
    %81 = vector.multi_reduction <add>, %80, %cst_37 [2] : vector<5x2x2xf32> to vector<5x2xf32>
    %82 = vector.shape_cast %81 : vector<5x2xf32> to vector<5x2x1xf32>
    %83 = tpu.reciprocal %82 {approx = true} : vector<5x2x1xf32> -> vector<5x2x1xf32>
    %84 = vector.broadcast %83 : vector<5x2x1xf32> to vector<5x2x2xf32>
    %85 = arith.mulf %80, %84 : vector<5x2x2xf32>
    %86 = arith.truncf %85 : vector<5x2x2xf32> to vector<5x2x2xbf16>
    "tpu.trace_start"() <{level = 10 : i32, message = "nlm,nmd->nld"}> : () -> ()
    %cst_38 = arith.constant dense<0.000000e+00> : vector<5x2x8xf32>
    %87 = tpu.matmul %86, %72, %cst_38 {dimension_numbers = #tpu.dot_dimension_numbers<[2], [1], [1], [2], [0, 0, 0, 1, 1, 2], [0], [0]>} : vector<5x2x2xbf16>, vector<5x2x8xbf16>, vector<5x2x8xf32> -> vector<5x2x8xf32>
    "tpu.trace_stop"() : () -> ()
    %88 = vector.shape_cast %87 : vector<5x2x8xf32> to vector<10x8xf32>
    %c0_39 = arith.constant 0 : index
    %c16 = arith.constant 16 : index
    %89 = vector.load %arg20[%c0_39, %c16] : memref<10x32xf32, #tpu.memory_space<vmem>>, vector<10x8xf32>
    tpu.vector_store %arg20[%c0_39, %c16], %88 {strides = array<i32>} : memref<10x32xf32, #tpu.memory_space<vmem>>, vector<10x8xf32>,
    %90 = vector.extract_strided_slice %20 {offsets = [0, 24], sizes = [10, 8], strides = [1, 1]} : vector<10x96xbf16> to vector<10x8xbf16>
    %91 = vector.shape_cast %90 : vector<10x8xbf16> to vector<5x2x8xbf16>
    %92 = vector.extract_strided_slice %20 {offsets = [0, 56], sizes = [10, 8], strides = [1, 1]} : vector<10x96xbf16> to vector<10x8xbf16>
    %93 = vector.shape_cast %92 : vector<10x8xbf16> to vector<5x2x8xbf16>
    %94 = vector.extract_strided_slice %20 {offsets = [0, 88], sizes = [10, 8], strides = [1, 1]} : vector<10x96xbf16> to vector<10x8xbf16>
    %95 = vector.shape_cast %94 : vector<10x8xbf16> to vector<5x2x8xbf16>
    "tpu.trace_start"() <{level = 10 : i32, message = "nld,nmd->nlm"}> : () -> ()
    %cst_40 = arith.constant dense<0.000000e+00> : vector<5x2x2xf32>
    %96 = tpu.matmul %91, %93, %cst_40 {dimension_numbers = #tpu.dot_dimension_numbers<[2], [2], [1], [1], [0, 0, 0, 1, 1, 1], [0], [0]>} : vector<5x2x8xbf16>, vector<5x2x8xbf16>, vector<5x2x2xf32> -> vector<5x2x2xf32>
    "tpu.trace_stop"() : () -> ()
    %cst_41 = arith.constant 0.353553385 : f32
    %97 = vector.broadcast %cst_41 : f32 to vector<5x2x2xf32>
    %98 = arith.mulf %96, %97 : vector<5x2x2xf32>
    %cst_42 = arith.constant dense<0xFF800000> : vector<5x2xf32>
    %99 = vector.multi_reduction <maximumf>, %98, %cst_42 [2] : vector<5x2x2xf32> to vector<5x2xf32>
    %100 = vector.shape_cast %99 : vector<5x2xf32> to vector<5x2x1xf32>
    %101 = vector.broadcast %100 : vector<5x2x1xf32> to vector<5x2x2xf32>
    %102 = arith.subf %98, %101 : vector<5x2x2xf32>
    %103 = math.exp %102 : vector<5x2x2xf32>
    %cst_43 = arith.constant dense<0.000000e+00> : vector<5x2xf32>
    %104 = vector.multi_reduction <add>, %103, %cst_43 [2] : vector<5x2x2xf32> to vector<5x2xf32>
    %105 = vector.shape_cast %104 : vector<5x2xf32> to vector<5x2x1xf32>
    %106 = tpu.reciprocal %105 {approx = true} : vector<5x2x1xf32> -> vector<5x2x1xf32>
    %107 = vector.broadcast %106 : vector<5x2x1xf32> to vector<5x2x2xf32>
    %108 = arith.mulf %103, %107 : vector<5x2x2xf32>
    %109 = arith.truncf %108 : vector<5x2x2xf32> to vector<5x2x2xbf16>
    "tpu.trace_start"() <{level = 10 : i32, message = "nlm,nmd->nld"}> : () -> ()
    %cst_44 = arith.constant dense<0.000000e+00> : vector<5x2x8xf32>
    %110 = tpu.matmul %109, %95, %cst_44 {dimension_numbers = #tpu.dot_dimension_numbers<[2], [1], [1], [2], [0, 0, 0, 1, 1, 2], [0], [0]>} : vector<5x2x2xbf16>, vector<5x2x8xbf16>, vector<5x2x8xf32> -> vector<5x2x8xf32>
    "tpu.trace_stop"() : () -> ()
    %111 = vector.shape_cast %110 : vector<5x2x8xf32> to vector<10x8xf32>
    %c0_45 = arith.constant 0 : index
    %c24 = arith.constant 24 : index
    %112 = vector.load %arg20[%c0_45, %c24] : memref<10x32xf32, #tpu.memory_space<vmem>>, vector<10x8xf32>
    tpu.vector_store %arg20[%c0_45, %c24], %111 {strides = array<i32>} : memref<10x32xf32, #tpu.memory_space<vmem>>, vector<10x8xf32>,
    %c0_46 = arith.constant 0 : index
    %c0_47 = arith.constant 0 : index
    %113 = vector.load %arg20[%c0_46, %c0_47] : memref<10x32xf32, #tpu.memory_space<vmem>>, vector<10x32xf32>
    %114 = arith.truncf %113 : vector<10x32xf32> to vector<10x32xbf16>
    %c0_48 = arith.constant 0 : index
    %c0_49 = arith.constant 0 : index
    %c0_50 = arith.constant 0 : index
    %115 = vector.load %arg7[%c0_48, %c0_49, %c0_50] : memref<2x32x32xbf16, #tpu.memory_space<vmem>>, vector<1x32x32xbf16>
    %116 = vector.shape_cast %115 : vector<1x32x32xbf16> to vector<32x32xbf16>
    %cst_51 = arith.constant dense<0.000000e+00> : vector<10x32xf32>
    %117 = tpu.matmul %114, %116, %cst_51 {dimension_numbers = #tpu.dot_dimension_numbers<[1], [0], [0], [1], [0, 0, 1, 1], [], []>} : vector<10x32xbf16>, vector<32x32xbf16>, vector<10x32xf32> -> vector<10x32xf32>
    %c0_52 = arith.constant 0 : index
    %c0_53 = arith.constant 0 : index
    %c0_54 = arith.constant 0 : index
    %118 = vector.load %arg8[%c0_52, %c0_53, %c0_54] : memref<2x1x32xf32, #tpu.memory_space<vmem>>, vector<1x1x32xf32>
    %119 = vector.shape_cast %118 : vector<1x1x32xf32> to vector<1x32xf32>
    %120 = vector.broadcast %119 : vector<1x32xf32> to vector<10x32xf32>
    %121 = arith.addf %117, %120 : vector<10x32xf32>
    %122 = arith.addf %11, %121 : vector<10x32xf32>
    %c0_55 = arith.constant 0 : index
    %c0_56 = arith.constant 0 : index
    %c0_57 = arith.constant 0 : index
    %123 = vector.load %arg9[%c0_55, %c0_56, %c0_57] : memref<2x1x32xf32, #tpu.memory_space<vmem>>, vector<1x1x32xf32>
    %124 = vector.shape_cast %123 : vector<1x1x32xf32> to vector<1x32xf32>
    %c0_58 = arith.constant 0 : index
    %c0_59 = arith.constant 0 : index
    %c0_60 = arith.constant 0 : index
    %125 = vector.load %arg10[%c0_58, %c0_59, %c0_60] : memref<2x1x32xf32, #tpu.memory_space<vmem>>, vector<1x1x32xf32>
    %126 = vector.shape_cast %125 : vector<1x1x32xf32> to vector<1x32xf32>
    %cst_61 = arith.constant dense<0.000000e+00> : vector<10xf32>
    %127 = vector.multi_reduction <add>, %122, %cst_61 [1] : vector<10x32xf32> to vector<10xf32>
    %128 = vector.shape_cast %127 : vector<10xf32> to vector<10x1xf32>
    %cst_62 = arith.constant 3.200000e+01 : f32
    %129 = vector.broadcast %cst_62 : f32 to vector<10x1xf32>
    %130 = arith.divf %128, %129 : vector<10x1xf32>
    %131 = vector.broadcast %130 : vector<10x1xf32> to vector<10x32xf32>
    %132 = arith.subf %122, %131 : vector<10x32xf32>
    %133 = arith.mulf %132, %132 : vector<10x32xf32>
    %cst_63 = arith.constant dense<0.000000e+00> : vector<10xf32>
    %134 = vector.multi_reduction <add>, %133, %cst_63 [1] : vector<10x32xf32> to vector<10xf32>
    %135 = vector.shape_cast %134 : vector<10xf32> to vector<10x1xf32>
    %cst_64 = arith.constant 3.200000e+01 : f32
    %136 = vector.broadcast %cst_64 : f32 to vector<10x1xf32>
    %137 = arith.divf %135, %136 : vector<10x1xf32>
    %cst_65 = arith.constant 9.99999974E-6 : f32
    %138 = vector.broadcast %cst_65 : f32 to vector<10x1xf32>
    %139 = arith.addf %137, %138 : vector<10x1xf32>
    %140 = math.rsqrt %139 : vector<10x1xf32>
    %141 = vector.broadcast %140 : vector<10x1xf32> to vector<10x32xf32>
    %142 = arith.mulf %132, %141 : vector<10x32xf32>
    %143 = vector.broadcast %124 : vector<1x32xf32> to vector<10x32xf32>
    %144 = arith.mulf %142, %143 : vector<10x32xf32>
    %145 = vector.broadcast %126 : vector<1x32xf32> to vector<10x32xf32>
    %146 = arith.addf %144, %145 : vector<10x32xf32>
    %147 = arith.truncf %146 : vector<10x32xf32> to vector<10x32xbf16>
    %c0_66 = arith.constant 0 : index
    %c0_67 = arith.constant 0 : index
    %c0_68 = arith.constant 0 : index
    %148 = vector.load %arg11[%c0_66, %c0_67, %c0_68] : memref<2x32x64xbf16, #tpu.memory_space<vmem>>, vector<1x32x64xbf16>
    %149 = vector.shape_cast %148 : vector<1x32x64xbf16> to vector<32x64xbf16>
    %cst_69 = arith.constant dense<0.000000e+00> : vector<10x64xf32>
    %150 = tpu.matmul %147, %149, %cst_69 {dimension_numbers = #tpu.dot_dimension_numbers<[1], [0], [0], [1], [0, 0, 1, 1], [], []>} : vector<10x32xbf16>, vector<32x64xbf16>, vector<10x64xf32> -> vector<10x64xf32>
    %c0_70 = arith.constant 0 : index
    %c0_71 = arith.constant 0 : index
    %c0_72 = arith.constant 0 : index
    %151 = vector.load %arg12[%c0_70, %c0_71, %c0_72] : memref<2x1x64xf32, #tpu.memory_space<vmem>>, vector<1x1x64xf32>
    %152 = vector.shape_cast %151 : vector<1x1x64xf32> to vector<1x64xf32>
    %153 = vector.broadcast %152 : vector<1x64xf32> to vector<10x64xf32>
    %154 = arith.addf %150, %153 : vector<10x64xf32>
    %cst_73 = arith.constant 0.000000e+00 : f32
    %155 = vector.broadcast %cst_73 : f32 to vector<10x64xf32>
    %156 = arith.maximumf %154, %155 : vector<10x64xf32>
    %157 = arith.truncf %156 : vector<10x64xf32> to vector<10x64xbf16>
    %c0_74 = arith.constant 0 : index
    %c0_75 = arith.constant 0 : index
    %c0_76 = arith.constant 0 : index
    %158 = vector.load %arg13[%c0_74, %c0_75, %c0_76] : memref<2x64x32xbf16, #tpu.memory_space<vmem>>, vector<1x64x32xbf16>
    %159 = vector.shape_cast %158 : vector<1x64x32xbf16> to vector<64x32xbf16>
    %cst_77 = arith.constant dense<0.000000e+00> : vector<10x32xf32>
    %160 = tpu.matmul %157, %159, %cst_77 {dimension_numbers = #tpu.dot_dimension_numbers<[1], [0], [0], [1], [0, 0, 1, 1], [], []>} : vector<10x64xbf16>, vector<64x32xbf16>, vector<10x32xf32> -> vector<10x32xf32>
    %c0_78 = arith.constant 0 : index
    %c0_79 = arith.constant 0 : index
    %c0_80 = arith.constant 0 : index
    %161 = vector.load %arg14[%c0_78, %c0_79, %c0_80] : memref<2x1x32xf32, #tpu.memory_space<vmem>>, vector<1x1x32xf32>
    %162 = vector.shape_cast %161 : vector<1x1x32xf32> to vector<1x32xf32>
    %163 = vector.broadcast %162 : vector<1x32xf32> to vector<10x32xf32>
    %164 = arith.addf %160, %163 : vector<10x32xf32>
    %165 = arith.addf %146, %164 : vector<10x32xf32>
    %c0_81 = arith.constant 0 : index
    %c0_82 = arith.constant 0 : index
    %c0_83 = arith.constant 0 : index
    %166 = vector.load %arg15[%c0_81, %c0_82, %c0_83] : memref<2x1x32xf32, #tpu.memory_space<vmem>>, vector<1x1x32xf32>
    %167 = vector.shape_cast %166 : vector<1x1x32xf32> to vector<1x32xf32>
    %c0_84 = arith.constant 0 : index
    %c0_85 = arith.constant 0 : index
    %c0_86 = arith.constant 0 : index
    %168 = vector.load %arg16[%c0_84, %c0_85, %c0_86] : memref<2x1x32xf32, #tpu.memory_space<vmem>>, vector<1x1x32xf32>
    %169 = vector.shape_cast %168 : vector<1x1x32xf32> to vector<1x32xf32>
    %cst_87 = arith.constant dense<0.000000e+00> : vector<10xf32>
    %170 = vector.multi_reduction <add>, %165, %cst_87 [1] : vector<10x32xf32> to vector<10xf32>
    %171 = vector.shape_cast %170 : vector<10xf32> to vector<10x1xf32>
    %cst_88 = arith.constant 3.200000e+01 : f32
    %172 = vector.broadcast %cst_88 : f32 to vector<10x1xf32>
    %173 = arith.divf %171, %172 : vector<10x1xf32>
    %174 = vector.broadcast %173 : vector<10x1xf32> to vector<10x32xf32>
    %175 = arith.subf %165, %174 : vector<10x32xf32>
    %176 = arith.mulf %175, %175 : vector<10x32xf32>
    %cst_89 = arith.constant dense<0.000000e+00> : vector<10xf32>
    %177 = vector.multi_reduction <add>, %176, %cst_89 [1] : vector<10x32xf32> to vector<10xf32>
    %178 = vector.shape_cast %177 : vector<10xf32> to vector<10x1xf32>
    %cst_90 = arith.constant 3.200000e+01 : f32
    %179 = vector.broadcast %cst_90 : f32 to vector<10x1xf32>
    %180 = arith.divf %178, %179 : vector<10x1xf32>
    %cst_91 = arith.constant 9.99999974E-6 : f32
    %181 = vector.broadcast %cst_91 : f32 to vector<10x1xf32>
    %182 = arith.addf %180, %181 : vector<10x1xf32>
    %183 = math.rsqrt %182 : vector<10x1xf32>
    %184 = vector.broadcast %183 : vector<10x1xf32> to vector<10x32xf32>
    %185 = arith.mulf %175, %184 : vector<10x32xf32>
    %186 = vector.broadcast %167 : vector<1x32xf32> to vector<10x32xf32>
    %187 = arith.mulf %185, %186 : vector<10x32xf32>
    %188 = vector.broadcast %169 : vector<1x32xf32> to vector<10x32xf32>
    %189 = arith.addf %187, %188 : vector<10x32xf32>
    %190 = arith.truncf %189 : vector<10x32xf32> to vector<10x32xbf16>
    %c1 = arith.constant 1 : index
    %c0_92 = arith.constant 0 : index
    %c0_93 = arith.constant 0 : index
    %191 = vector.load %arg5[%c1, %c0_92, %c0_93] : memref<2x32x96xbf16, #tpu.memory_space<vmem>>, vector<1x32x96xbf16>
    %192 = vector.shape_cast %191 : vector<1x32x96xbf16> to vector<32x96xbf16>
    %cst_94 = arith.constant dense<0.000000e+00> : vector<10x96xf32>
    %193 = tpu.matmul %190, %192, %cst_94 {dimension_numbers = #tpu.dot_dimension_numbers<[1], [0], [0], [1], [0, 0, 1, 1], [], []>} : vector<10x32xbf16>, vector<32x96xbf16>, vector<10x96xf32> -> vector<10x96xf32>
    %c1_95 = arith.constant 1 : index
    %c0_96 = arith.constant 0 : index
    %c0_97 = arith.constant 0 : index
    %194 = vector.load %arg6[%c1_95, %c0_96, %c0_97] : memref<2x1x96xf32, #tpu.memory_space<vmem>>, vector<1x1x96xf32>
    %195 = vector.shape_cast %194 : vector<1x1x96xf32> to vector<1x96xf32>
    %196 = vector.broadcast %195 : vector<1x96xf32> to vector<10x96xf32>
    %197 = arith.addf %193, %196 : vector<10x96xf32>
    %198 = arith.truncf %197 : vector<10x96xf32> to vector<10x96xbf16>
    %199 = vector.extract_strided_slice %198 {offsets = [0, 0], sizes = [10, 8], strides = [1, 1]} : vector<10x96xbf16> to vector<10x8xbf16>
    %200 = vector.shape_cast %199 : vector<10x8xbf16> to vector<5x2x8xbf16>
    %201 = vector.extract_strided_slice %198 {offsets = [0, 32], sizes = [10, 8], strides = [1, 1]} : vector<10x96xbf16> to vector<10x8xbf16>
    %202 = vector.shape_cast %201 : vector<10x8xbf16> to vector<5x2x8xbf16>
    %203 = vector.extract_strided_slice %198 {offsets = [0, 64], sizes = [10, 8], strides = [1, 1]} : vector<10x96xbf16> to vector<10x8xbf16>
    %204 = vector.shape_cast %203 : vector<10x8xbf16> to vector<5x2x8xbf16>
    "tpu.trace_start"() <{level = 10 : i32, message = "nld,nmd->nlm"}> : () -> ()
    %cst_98 = arith.constant dense<0.000000e+00> : vector<5x2x2xf32>
    %205 = tpu.matmul %200, %202, %cst_98 {dimension_numbers = #tpu.dot_dimension_numbers<[2], [2], [1], [1], [0, 0, 0, 1, 1, 1], [0], [0]>} : vector<5x2x8xbf16>, vector<5x2x8xbf16>, vector<5x2x2xf32> -> vector<5x2x2xf32>
    "tpu.trace_stop"() : () -> ()
    %cst_99 = arith.constant 0.353553385 : f32
    %206 = vector.broadcast %cst_99 : f32 to vector<5x2x2xf32>
    %207 = arith.mulf %205, %206 : vector<5x2x2xf32>
    %cst_100 = arith.constant dense<0xFF800000> : vector<5x2xf32>
    %208 = vector.multi_reduction <maximumf>, %207, %cst_100 [2] : vector<5x2x2xf32> to vector<5x2xf32>
    %209 = vector.shape_cast %208 : vector<5x2xf32> to vector<5x2x1xf32>
    %210 = vector.broadcast %209 : vector<5x2x1xf32> to vector<5x2x2xf32>
    %211 = arith.subf %207, %210 : vector<5x2x2xf32>
    %212 = math.exp %211 : vector<5x2x2xf32>
    %cst_101 = arith.constant dense<0.000000e+00> : vector<5x2xf32>
    %213 = vector.multi_reduction <add>, %212, %cst_101 [2] : vector<5x2x2xf32> to vector<5x2xf32>
    %214 = vector.shape_cast %213 : vector<5x2xf32> to vector<5x2x1xf32>
    %215 = tpu.reciprocal %214 {approx = true} : vector<5x2x1xf32> -> vector<5x2x1xf32>
    %216 = vector.broadcast %215 : vector<5x2x1xf32> to vector<5x2x2xf32>
    %217 = arith.mulf %212, %216 : vector<5x2x2xf32>
    %218 = arith.truncf %217 : vector<5x2x2xf32> to vector<5x2x2xbf16>
    "tpu.trace_start"() <{level = 10 : i32, message = "nlm,nmd->nld"}> : () -> ()
    %cst_102 = arith.constant dense<0.000000e+00> : vector<5x2x8xf32>
    %219 = tpu.matmul %218, %204, %cst_102 {dimension_numbers = #tpu.dot_dimension_numbers<[2], [1], [1], [2], [0, 0, 0, 1, 1, 2], [0], [0]>} : vector<5x2x2xbf16>, vector<5x2x8xbf16>, vector<5x2x8xf32> -> vector<5x2x8xf32>
    "tpu.trace_stop"() : () -> ()
    %220 = vector.shape_cast %219 : vector<5x2x8xf32> to vector<10x8xf32>
    %c0_103 = arith.constant 0 : index
    %c0_104 = arith.constant 0 : index
    %221 = vector.load %arg20[%c0_103, %c0_104] : memref<10x32xf32, #tpu.memory_space<vmem>>, vector<10x8xf32>
    tpu.vector_store %arg20[%c0_103, %c0_104], %220 {strides = array<i32>} : memref<10x32xf32, #tpu.memory_space<vmem>>, vector<10x8xf32>,
    %222 = vector.extract_strided_slice %198 {offsets = [0, 8], sizes = [10, 8], strides = [1, 1]} : vector<10x96xbf16> to vector<10x8xbf16>
    %223 = vector.shape_cast %222 : vector<10x8xbf16> to vector<5x2x8xbf16>
    %224 = vector.extract_strided_slice %198 {offsets = [0, 40], sizes = [10, 8], strides = [1, 1]} : vector<10x96xbf16> to vector<10x8xbf16>
    %225 = vector.shape_cast %224 : vector<10x8xbf16> to vector<5x2x8xbf16>
    %226 = vector.extract_strided_slice %198 {offsets = [0, 72], sizes = [10, 8], strides = [1, 1]} : vector<10x96xbf16> to vector<10x8xbf16>
    %227 = vector.shape_cast %226 : vector<10x8xbf16> to vector<5x2x8xbf16>
    "tpu.trace_start"() <{level = 10 : i32, message = "nld,nmd->nlm"}> : () -> ()
    %cst_105 = arith.constant dense<0.000000e+00> : vector<5x2x2xf32>
    %228 = tpu.matmul %223, %225, %cst_105 {dimension_numbers = #tpu.dot_dimension_numbers<[2], [2], [1], [1], [0, 0, 0, 1, 1, 1], [0], [0]>} : vector<5x2x8xbf16>, vector<5x2x8xbf16>, vector<5x2x2xf32> -> vector<5x2x2xf32>
    "tpu.trace_stop"() : () -> ()
    %cst_106 = arith.constant 0.353553385 : f32
    %229 = vector.broadcast %cst_106 : f32 to vector<5x2x2xf32>
    %230 = arith.mulf %228, %229 : vector<5x2x2xf32>
    %cst_107 = arith.constant dense<0xFF800000> : vector<5x2xf32>
    %231 = vector.multi_reduction <maximumf>, %230, %cst_107 [2] : vector<5x2x2xf32> to vector<5x2xf32>
    %232 = vector.shape_cast %231 : vector<5x2xf32> to vector<5x2x1xf32>
    %233 = vector.broadcast %232 : vector<5x2x1xf32> to vector<5x2x2xf32>
    %234 = arith.subf %230, %233 : vector<5x2x2xf32>
    %235 = math.exp %234 : vector<5x2x2xf32>
    %cst_108 = arith.constant dense<0.000000e+00> : vector<5x2xf32>
    %236 = vector.multi_reduction <add>, %235, %cst_108 [2] : vector<5x2x2xf32> to vector<5x2xf32>
    %237 = vector.shape_cast %236 : vector<5x2xf32> to vector<5x2x1xf32>
    %238 = tpu.reciprocal %237 {approx = true} : vector<5x2x1xf32> -> vector<5x2x1xf32>
    %239 = vector.broadcast %238 : vector<5x2x1xf32> to vector<5x2x2xf32>
    %240 = arith.mulf %235, %239 : vector<5x2x2xf32>
    %241 = arith.truncf %240 : vector<5x2x2xf32> to vector<5x2x2xbf16>
    "tpu.trace_start"() <{level = 10 : i32, message = "nlm,nmd->nld"}> : () -> ()
    %cst_109 = arith.constant dense<0.000000e+00> : vector<5x2x8xf32>
    %242 = tpu.matmul %241, %227, %cst_109 {dimension_numbers = #tpu.dot_dimension_numbers<[2], [1], [1], [2], [0, 0, 0, 1, 1, 2], [0], [0]>} : vector<5x2x2xbf16>, vector<5x2x8xbf16>, vector<5x2x8xf32> -> vector<5x2x8xf32>
    "tpu.trace_stop"() : () -> ()
    %243 = vector.shape_cast %242 : vector<5x2x8xf32> to vector<10x8xf32>
    %c0_110 = arith.constant 0 : index
    %c8_111 = arith.constant 8 : index
    %244 = vector.load %arg20[%c0_110, %c8_111] : memref<10x32xf32, #tpu.memory_space<vmem>>, vector<10x8xf32>
    tpu.vector_store %arg20[%c0_110, %c8_111], %243 {strides = array<i32>} : memref<10x32xf32, #tpu.memory_space<vmem>>, vector<10x8xf32>,
    %245 = vector.extract_strided_slice %198 {offsets = [0, 16], sizes = [10, 8], strides = [1, 1]} : vector<10x96xbf16> to vector<10x8xbf16>
    %246 = vector.shape_cast %245 : vector<10x8xbf16> to vector<5x2x8xbf16>
    %247 = vector.extract_strided_slice %198 {offsets = [0, 48], sizes = [10, 8], strides = [1, 1]} : vector<10x96xbf16> to vector<10x8xbf16>
    %248 = vector.shape_cast %247 : vector<10x8xbf16> to vector<5x2x8xbf16>
    %249 = vector.extract_strided_slice %198 {offsets = [0, 80], sizes = [10, 8], strides = [1, 1]} : vector<10x96xbf16> to vector<10x8xbf16>
    %250 = vector.shape_cast %249 : vector<10x8xbf16> to vector<5x2x8xbf16>
    "tpu.trace_start"() <{level = 10 : i32, message = "nld,nmd->nlm"}> : () -> ()
    %cst_112 = arith.constant dense<0.000000e+00> : vector<5x2x2xf32>
    %251 = tpu.matmul %246, %248, %cst_112 {dimension_numbers = #tpu.dot_dimension_numbers<[2], [2], [1], [1], [0, 0, 0, 1, 1, 1], [0], [0]>} : vector<5x2x8xbf16>, vector<5x2x8xbf16>, vector<5x2x2xf32> -> vector<5x2x2xf32>
    "tpu.trace_stop"() : () -> ()
    %cst_113 = arith.constant 0.353553385 : f32
    %252 = vector.broadcast %cst_113 : f32 to vector<5x2x2xf32>
    %253 = arith.mulf %251, %252 : vector<5x2x2xf32>
    %cst_114 = arith.constant dense<0xFF800000> : vector<5x2xf32>
    %254 = vector.multi_reduction <maximumf>, %253, %cst_114 [2] : vector<5x2x2xf32> to vector<5x2xf32>
    %255 = vector.shape_cast %254 : vector<5x2xf32> to vector<5x2x1xf32>
    %256 = vector.broadcast %255 : vector<5x2x1xf32> to vector<5x2x2xf32>
    %257 = arith.subf %253, %256 : vector<5x2x2xf32>
    %258 = math.exp %257 : vector<5x2x2xf32>
    %cst_115 = arith.constant dense<0.000000e+00> : vector<5x2xf32>
    %259 = vector.multi_reduction <add>, %258, %cst_115 [2] : vector<5x2x2xf32> to vector<5x2xf32>
    %260 = vector.shape_cast %259 : vector<5x2xf32> to vector<5x2x1xf32>
    %261 = tpu.reciprocal %260 {approx = true} : vector<5x2x1xf32> -> vector<5x2x1xf32>
    %262 = vector.broadcast %261 : vector<5x2x1xf32> to vector<5x2x2xf32>
    %263 = arith.mulf %258, %262 : vector<5x2x2xf32>
    %264 = arith.truncf %263 : vector<5x2x2xf32> to vector<5x2x2xbf16>
    "tpu.trace_start"() <{level = 10 : i32, message = "nlm,nmd->nld"}> : () -> ()
    %cst_116 = arith.constant dense<0.000000e+00> : vector<5x2x8xf32>
    %265 = tpu.matmul %264, %250, %cst_116 {dimension_numbers = #tpu.dot_dimension_numbers<[2], [1], [1], [2], [0, 0, 0, 1, 1, 2], [0], [0]>} : vector<5x2x2xbf16>, vector<5x2x8xbf16>, vector<5x2x8xf32> -> vector<5x2x8xf32>
    "tpu.trace_stop"() : () -> ()
    %266 = vector.shape_cast %265 : vector<5x2x8xf32> to vector<10x8xf32>
    %c0_117 = arith.constant 0 : index
    %c16_118 = arith.constant 16 : index
    %267 = vector.load %arg20[%c0_117, %c16_118] : memref<10x32xf32, #tpu.memory_space<vmem>>, vector<10x8xf32>
    tpu.vector_store %arg20[%c0_117, %c16_118], %266 {strides = array<i32>} : memref<10x32xf32, #tpu.memory_space<vmem>>, vector<10x8xf32>,
    %268 = vector.extract_strided_slice %198 {offsets = [0, 24], sizes = [10, 8], strides = [1, 1]} : vector<10x96xbf16> to vector<10x8xbf16>
    %269 = vector.shape_cast %268 : vector<10x8xbf16> to vector<5x2x8xbf16>
    %270 = vector.extract_strided_slice %198 {offsets = [0, 56], sizes = [10, 8], strides = [1, 1]} : vector<10x96xbf16> to vector<10x8xbf16>
    %271 = vector.shape_cast %270 : vector<10x8xbf16> to vector<5x2x8xbf16>
    %272 = vector.extract_strided_slice %198 {offsets = [0, 88], sizes = [10, 8], strides = [1, 1]} : vector<10x96xbf16> to vector<10x8xbf16>
    %273 = vector.shape_cast %272 : vector<10x8xbf16> to vector<5x2x8xbf16>
    "tpu.trace_start"() <{level = 10 : i32, message = "nld,nmd->nlm"}> : () -> ()
    %cst_119 = arith.constant dense<0.000000e+00> : vector<5x2x2xf32>
    %274 = tpu.matmul %269, %271, %cst_119 {dimension_numbers = #tpu.dot_dimension_numbers<[2], [2], [1], [1], [0, 0, 0, 1, 1, 1], [0], [0]>} : vector<5x2x8xbf16>, vector<5x2x8xbf16>, vector<5x2x2xf32> -> vector<5x2x2xf32>
    "tpu.trace_stop"() : () -> ()
    %cst_120 = arith.constant 0.353553385 : f32
    %275 = vector.broadcast %cst_120 : f32 to vector<5x2x2xf32>
    %276 = arith.mulf %274, %275 : vector<5x2x2xf32>
    %cst_121 = arith.constant dense<0xFF800000> : vector<5x2xf32>
    %277 = vector.multi_reduction <maximumf>, %276, %cst_121 [2] : vector<5x2x2xf32> to vector<5x2xf32>
    %278 = vector.shape_cast %277 : vector<5x2xf32> to vector<5x2x1xf32>
    %279 = vector.broadcast %278 : vector<5x2x1xf32> to vector<5x2x2xf32>
    %280 = arith.subf %276, %279 : vector<5x2x2xf32>
    %281 = math.exp %280 : vector<5x2x2xf32>
    %cst_122 = arith.constant dense<0.000000e+00> : vector<5x2xf32>
    %282 = vector.multi_reduction <add>, %281, %cst_122 [2] : vector<5x2x2xf32> to vector<5x2xf32>
    %283 = vector.shape_cast %282 : vector<5x2xf32> to vector<5x2x1xf32>
    %284 = tpu.reciprocal %283 {approx = true} : vector<5x2x1xf32> -> vector<5x2x1xf32>
    %285 = vector.broadcast %284 : vector<5x2x1xf32> to vector<5x2x2xf32>
    %286 = arith.mulf %281, %285 : vector<5x2x2xf32>
    %287 = arith.truncf %286 : vector<5x2x2xf32> to vector<5x2x2xbf16>
    "tpu.trace_start"() <{level = 10 : i32, message = "nlm,nmd->nld"}> : () -> ()
    %cst_123 = arith.constant dense<0.000000e+00> : vector<5x2x8xf32>
    %288 = tpu.matmul %287, %273, %cst_123 {dimension_numbers = #tpu.dot_dimension_numbers<[2], [1], [1], [2], [0, 0, 0, 1, 1, 2], [0], [0]>} : vector<5x2x2xbf16>, vector<5x2x8xbf16>, vector<5x2x8xf32> -> vector<5x2x8xf32>
    "tpu.trace_stop"() : () -> ()
    %289 = vector.shape_cast %288 : vector<5x2x8xf32> to vector<10x8xf32>
    %c0_124 = arith.constant 0 : index
    %c24_125 = arith.constant 24 : index
    %290 = vector.load %arg20[%c0_124, %c24_125] : memref<10x32xf32, #tpu.memory_space<vmem>>, vector<10x8xf32>
    tpu.vector_store %arg20[%c0_124, %c24_125], %289 {strides = array<i32>} : memref<10x32xf32, #tpu.memory_space<vmem>>, vector<10x8xf32>,
    %c0_126 = arith.constant 0 : index
    %c0_127 = arith.constant 0 : index
    %291 = vector.load %arg20[%c0_126, %c0_127] : memref<10x32xf32, #tpu.memory_space<vmem>>, vector<10x32xf32>
    %292 = arith.truncf %291 : vector<10x32xf32> to vector<10x32xbf16>
    %c1_128 = arith.constant 1 : index
    %c0_129 = arith.constant 0 : index
    %c0_130 = arith.constant 0 : index
    %293 = vector.load %arg7[%c1_128, %c0_129, %c0_130] : memref<2x32x32xbf16, #tpu.memory_space<vmem>>, vector<1x32x32xbf16>
    %294 = vector.shape_cast %293 : vector<1x32x32xbf16> to vector<32x32xbf16>
    %cst_131 = arith.constant dense<0.000000e+00> : vector<10x32xf32>
    %295 = tpu.matmul %292, %294, %cst_131 {dimension_numbers = #tpu.dot_dimension_numbers<[1], [0], [0], [1], [0, 0, 1, 1], [], []>} : vector<10x32xbf16>, vector<32x32xbf16>, vector<10x32xf32> -> vector<10x32xf32>
    %c1_132 = arith.constant 1 : index
    %c0_133 = arith.constant 0 : index
    %c0_134 = arith.constant 0 : index
    %296 = vector.load %arg8[%c1_132, %c0_133, %c0_134] : memref<2x1x32xf32, #tpu.memory_space<vmem>>, vector<1x1x32xf32>
    %297 = vector.shape_cast %296 : vector<1x1x32xf32> to vector<1x32xf32>
    %298 = vector.broadcast %297 : vector<1x32xf32> to vector<10x32xf32>
    %299 = arith.addf %295, %298 : vector<10x32xf32>
    %300 = arith.addf %189, %299 : vector<10x32xf32>
    %c1_135 = arith.constant 1 : index
    %c0_136 = arith.constant 0 : index
    %c0_137 = arith.constant 0 : index
    %301 = vector.load %arg9[%c1_135, %c0_136, %c0_137] : memref<2x1x32xf32, #tpu.memory_space<vmem>>, vector<1x1x32xf32>
    %302 = vector.shape_cast %301 : vector<1x1x32xf32> to vector<1x32xf32>
    %c1_138 = arith.constant 1 : index
    %c0_139 = arith.constant 0 : index
    %c0_140 = arith.constant 0 : index
    %303 = vector.load %arg10[%c1_138, %c0_139, %c0_140] : memref<2x1x32xf32, #tpu.memory_space<vmem>>, vector<1x1x32xf32>
    %304 = vector.shape_cast %303 : vector<1x1x32xf32> to vector<1x32xf32>
    %cst_141 = arith.constant dense<0.000000e+00> : vector<10xf32>
    %305 = vector.multi_reduction <add>, %300, %cst_141 [1] : vector<10x32xf32> to vector<10xf32>
    %306 = vector.shape_cast %305 : vector<10xf32> to vector<10x1xf32>
    %cst_142 = arith.constant 3.200000e+01 : f32
    %307 = vector.broadcast %cst_142 : f32 to vector<10x1xf32>
    %308 = arith.divf %306, %307 : vector<10x1xf32>
    %309 = vector.broadcast %308 : vector<10x1xf32> to vector<10x32xf32>
    %310 = arith.subf %300, %309 : vector<10x32xf32>
    %311 = arith.mulf %310, %310 : vector<10x32xf32>
    %cst_143 = arith.constant dense<0.000000e+00> : vector<10xf32>
    %312 = vector.multi_reduction <add>, %311, %cst_143 [1] : vector<10x32xf32> to vector<10xf32>
    %313 = vector.shape_cast %312 : vector<10xf32> to vector<10x1xf32>
    %cst_144 = arith.constant 3.200000e+01 : f32
    %314 = vector.broadcast %cst_144 : f32 to vector<10x1xf32>
    %315 = arith.divf %313, %314 : vector<10x1xf32>
    %cst_145 = arith.constant 9.99999974E-6 : f32
    %316 = vector.broadcast %cst_145 : f32 to vector<10x1xf32>
    %317 = arith.addf %315, %316 : vector<10x1xf32>
    %318 = math.rsqrt %317 : vector<10x1xf32>
    %319 = vector.broadcast %318 : vector<10x1xf32> to vector<10x32xf32>
    %320 = arith.mulf %310, %319 : vector<10x32xf32>
    %321 = vector.broadcast %302 : vector<1x32xf32> to vector<10x32xf32>
    %322 = arith.mulf %320, %321 : vector<10x32xf32>
    %323 = vector.broadcast %304 : vector<1x32xf32> to vector<10x32xf32>
    %324 = arith.addf %322, %323 : vector<10x32xf32>
    %325 = arith.truncf %324 : vector<10x32xf32> to vector<10x32xbf16>
    %c1_146 = arith.constant 1 : index
    %c0_147 = arith.constant 0 : index
    %c0_148 = arith.constant 0 : index
    %326 = vector.load %arg11[%c1_146, %c0_147, %c0_148] : memref<2x32x64xbf16, #tpu.memory_space<vmem>>, vector<1x32x64xbf16>
    %327 = vector.shape_cast %326 : vector<1x32x64xbf16> to vector<32x64xbf16>
    %cst_149 = arith.constant dense<0.000000e+00> : vector<10x64xf32>
    %328 = tpu.matmul %325, %327, %cst_149 {dimension_numbers = #tpu.dot_dimension_numbers<[1], [0], [0], [1], [0, 0, 1, 1], [], []>} : vector<10x32xbf16>, vector<32x64xbf16>, vector<10x64xf32> -> vector<10x64xf32>
    %c1_150 = arith.constant 1 : index
    %c0_151 = arith.constant 0 : index
    %c0_152 = arith.constant 0 : index
    %329 = vector.load %arg12[%c1_150, %c0_151, %c0_152] : memref<2x1x64xf32, #tpu.memory_space<vmem>>, vector<1x1x64xf32>
    %330 = vector.shape_cast %329 : vector<1x1x64xf32> to vector<1x64xf32>
    %331 = vector.broadcast %330 : vector<1x64xf32> to vector<10x64xf32>
    %332 = arith.addf %328, %331 : vector<10x64xf32>
    %cst_153 = arith.constant 0.000000e+00 : f32
    %333 = vector.broadcast %cst_153 : f32 to vector<10x64xf32>
    %334 = arith.maximumf %332, %333 : vector<10x64xf32>
    %335 = arith.truncf %334 : vector<10x64xf32> to vector<10x64xbf16>
    %c1_154 = arith.constant 1 : index
    %c0_155 = arith.constant 0 : index
    %c0_156 = arith.constant 0 : index
    %336 = vector.load %arg13[%c1_154, %c0_155, %c0_156] : memref<2x64x32xbf16, #tpu.memory_space<vmem>>, vector<1x64x32xbf16>
    %337 = vector.shape_cast %336 : vector<1x64x32xbf16> to vector<64x32xbf16>
    %cst_157 = arith.constant dense<0.000000e+00> : vector<10x32xf32>
    %338 = tpu.matmul %335, %337, %cst_157 {dimension_numbers = #tpu.dot_dimension_numbers<[1], [0], [0], [1], [0, 0, 1, 1], [], []>} : vector<10x64xbf16>, vector<64x32xbf16>, vector<10x32xf32> -> vector<10x32xf32>
    %c1_158 = arith.constant 1 : index
    %c0_159 = arith.constant 0 : index
    %c0_160 = arith.constant 0 : index
    %339 = vector.load %arg14[%c1_158, %c0_159, %c0_160] : memref<2x1x32xf32, #tpu.memory_space<vmem>>, vector<1x1x32xf32>
    %340 = vector.shape_cast %339 : vector<1x1x32xf32> to vector<1x32xf32>
    %341 = vector.broadcast %340 : vector<1x32xf32> to vector<10x32xf32>
    %342 = arith.addf %338, %341 : vector<10x32xf32>
    %343 = arith.addf %324, %342 : vector<10x32xf32>
    %c1_161 = arith.constant 1 : index
    %c0_162 = arith.constant 0 : index
    %c0_163 = arith.constant 0 : index
    %344 = vector.load %arg15[%c1_161, %c0_162, %c0_163] : memref<2x1x32xf32, #tpu.memory_space<vmem>>, vector<1x1x32xf32>
    %345 = vector.shape_cast %344 : vector<1x1x32xf32> to vector<1x32xf32>
    %c1_164 = arith.constant 1 : index
    %c0_165 = arith.constant 0 : index
    %c0_166 = arith.constant 0 : index
    %346 = vector.load %arg16[%c1_164, %c0_165, %c0_166] : memref<2x1x32xf32, #tpu.memory_space<vmem>>, vector<1x1x32xf32>
    %347 = vector.shape_cast %346 : vector<1x1x32xf32> to vector<1x32xf32>
    %cst_167 = arith.constant dense<0.000000e+00> : vector<10xf32>
    %348 = vector.multi_reduction <add>, %343, %cst_167 [1] : vector<10x32xf32> to vector<10xf32>
    %349 = vector.shape_cast %348 : vector<10xf32> to vector<10x1xf32>
    %cst_168 = arith.constant 3.200000e+01 : f32
    %350 = vector.broadcast %cst_168 : f32 to vector<10x1xf32>
    %351 = arith.divf %349, %350 : vector<10x1xf32>
    %352 = vector.broadcast %351 : vector<10x1xf32> to vector<10x32xf32>
    %353 = arith.subf %343, %352 : vector<10x32xf32>
    %354 = arith.mulf %353, %353 : vector<10x32xf32>
    %cst_169 = arith.constant dense<0.000000e+00> : vector<10xf32>
    %355 = vector.multi_reduction <add>, %354, %cst_169 [1] : vector<10x32xf32> to vector<10xf32>
    %356 = vector.shape_cast %355 : vector<10xf32> to vector<10x1xf32>
    %cst_170 = arith.constant 3.200000e+01 : f32
    %357 = vector.broadcast %cst_170 : f32 to vector<10x1xf32>
    %358 = arith.divf %356, %357 : vector<10x1xf32>
    %cst_171 = arith.constant 9.99999974E-6 : f32
    %359 = vector.broadcast %cst_171 : f32 to vector<10x1xf32>
    %360 = arith.addf %358, %359 : vector<10x1xf32>
    %361 = math.rsqrt %360 : vector<10x1xf32>
    %362 = vector.broadcast %361 : vector<10x1xf32> to vector<10x32xf32>
    %363 = arith.mulf %353, %362 : vector<10x32xf32>
    %364 = vector.broadcast %345 : vector<1x32xf32> to vector<10x32xf32>
    %365 = arith.mulf %363, %364 : vector<10x32xf32>
    %366 = vector.broadcast %347 : vector<1x32xf32> to vector<10x32xf32>
    %367 = arith.addf %365, %366 : vector<10x32xf32>
    %368 = vector.extract_strided_slice %367 {offsets = [0, 0], sizes = [2, 32], strides = [1, 1]} : vector<10x32xf32> to vector<2x32xf32>
    %369 = arith.truncf %368 : vector<2x32xf32> to vector<2x32xbf16>
    %c0_172 = arith.constant 0 : index
    %c0_173 = arith.constant 0 : index
    %370 = vector.load %arg17[%c0_172, %c0_173] : memref<32x128xbf16, #tpu.memory_space<vmem>>, vector<32x128xbf16>
    %cst_174 = arith.constant dense<0.000000e+00> : vector<2x128xf32>
    %371 = tpu.matmul %369, %370, %cst_174 {dimension_numbers = #tpu.dot_dimension_numbers<[1], [0], [0], [1], [0, 0, 1, 1], [], []>} : vector<2x32xbf16>, vector<32x128xbf16>, vector<2x128xf32> -> vector<2x128xf32>
    %c0_175 = arith.constant 0 : index
    %c0_176 = arith.constant 0 : index
    %372 = vector.load %arg18[%c0_175, %c0_176] : memref<1x128xf32, #tpu.memory_space<vmem>>, vector<1x128xf32>
    %373 = vector.broadcast %372 : vector<1x128xf32> to vector<2x128xf32>
    %374 = arith.addf %371, %373 : vector<2x128xf32>
    %c0_177 = arith.constant 0 : index
    %c0_178 = arith.constant 0 : index
    %375 = vector.load %arg19[%c0_177, %c0_178] : memref<2x128xf32, #tpu.memory_space<vmem>>, vector<2x128xf32>
    tpu.vector_store %arg19[%c0_177, %c0_178], %374 {strides = array<i32>} : memref<2x128xf32, #tpu.memory_space<vmem>>, vector<2x128xf32>,
    return
  }
}

</mosaic_0001>

<bundles_post_ra>
// kernel: vit_forward.1
= control target key start
LH: loop header
LB: loop body
LE: loop exit
PB: predicated region body
PF: predicated region fallthrough
CT: control target
= control target key end

     0   :  { %s8456_s0 = inlined_call_operand.vmem [shape: bf16[8,192], index: 0, kind: input, shape index: {}]   ;;  %s8457_s1 = inlined_call_operand.vmem [shape: bf16[192,32], index: 1, kind: input, shape index: {}]   ;;  %s8458_s2 = inlined_call_operand.vmem [shape: f32[1,32], index: 2, kind: input, shape index: {}]   ;;  %s8459_s3 = inlined_call_operand.vmem [shape: f32[2,32], index: 3, kind: input, shape index: {}]   ;;  %s8460_s4 = inlined_call_operand.vmem [shape: f32[10,32], index: 4, kind: input, shape index: {}]   ;;  %s8461_s5 = inlined_call_operand.vmem [shape: bf16[2,32,96], index: 5, kind: input, shape index: {}]   ;;  %s8462_s6 = inlined_call_operand.vmem [shape: f32[2,1,96], index: 6, kind: input, shape index: {}]   ;;  %s8463_s7 = inlined_call_operand.vmem [shape: bf16[2,32,32], index: 7, kind: input, shape index: {}]   ;;  %s8464_s8 = inlined_call_operand.vmem [shape: f32[2,1,32], index: 8, kind: input, shape index: {}]   ;;  %s8465_s9 = inlined_call_operand.vmem [shape: f32[2,1,32], index: 9, kind: input, shape index: {}]   ;;  %s8466_s10 = inlined_call_operand.vmem [shape: f32[2,1,32], index: 10, kind: input, shape index: {}]   ;;  %s8467_s11 = inlined_call_operand.vmem [shape: bf16[2,32,64], index: 11, kind: input, shape index: {}]   ;;  %s8468_s12 = inlined_call_operand.vmem [shape: f32[2,1,64], index: 12, kind: input, shape index: {}]   ;;  %s8469_s13 = inlined_call_operand.vmem [shape: bf16[2,64,32], index: 13, kind: input, shape index: {}]   ;;  %s8470_s14 = inlined_call_operand.vmem [shape: f32[2,1,32], index: 14, kind: input, shape index: {}]   ;;  %s8471_s15 = inlined_call_operand.vmem [shape: f32[2,1,32], index: 15, kind: input, shape index: {}]   ;;  %s8472_s16 = inlined_call_operand.vmem [shape: f32[2,1,32], index: 16, kind: input, shape index: {}]   ;;  %s8473_s17 = inlined_call_operand.vmem [shape: bf16[32,128], index: 17, kind: input, shape index: {}]   ;;  %s8474_s18 = inlined_call_operand.vmem [shape: f32[1,128], index: 18, kind: input, shape index: {}]   ;;  %s8475_s19 = inlined_call_operand.hbm [shape: f32[2,128], index: 19, kind: output, shape index: {}]  }
   0x1   :  { %8487 = sst [smem:[#allocation6_spill]] %s8456_s0 }
   0x2   :  { %8488 = sst [smem:[#allocation7_spill]] %s8457_s1 }
   0x3   :  { %8489 = sst [smem:[#allocation8_spill]] %s8458_s2 }
   0x4   :  { %8490 = sst [smem:[#allocation9_spill]] %s8459_s3 }
   0x5   :  { %s8491_s20 = sld [smem:[#allocation7_spill]]  ;;  %v7193_v1 = vmov 0   ;;  %vm174_vm0 = vcmask 523264  }
   0x6   :  { %178 = vmatprep.subr.bf16.mxu0 %v7193_v1  ;;  %s8492_s28 = sld [smem:[#allocation6_spill]] }
   0xb   :  { %v6961_v0 = vld [vmem:[%s8491_s20 + $0x38] sm:$0xff]   ;;  %v6962_v2 = vld [vmem:[%s8491_s20 + $0x30] sm:$0xff]   ;;  %v6963_v3 = vld [vmem:[%s8491_s20 + $0x28] sm:$0xff]  }
   0xc   :  { %179 = vmatpush1.bf16.msra.mxu0 %v6961_v0  ;;  %v6964_v4 = vld [vmem:[%s8491_s20 + $0x20] sm:$0xff]   ;;  %v6965_v5 = vld [vmem:[%s8491_s20 + $0x18] sm:$0xff]   ;;  %v6966_v8 = vld [vmem:[%s8491_s20 + $0x10] sm:$0xff]  }
   0xd   :  { %180 = vmatprep.subr.bf16.mxu0 %v7193_v1  ;;  %v64_v6 = vld [vmem:[%s8492_s28] sm:$0xff]  ;;  %v6967_v9 = vld [vmem:[%s8491_s20 + $0x8] sm:$0xff]  }
   0xe   :  { %v6018_v7 = vcombine.high %v64_v6, %v64_v6  ;;  %v6968_v10 = vld [vmem:[%s8491_s20] sm:$0xff]  }
  0x10   :  { %181 = vmatpush1.bf16.msra.mxu0 %v6962_v2  ;;  %6031 = vmatprep.mubr.msk.bf16.mxu0 %vm174_vm0, %v6018_v7 }
  0x11   :  { %182 = vmatprep.subr.bf16.mxu0 %v7193_v1 }
  0x14   :  { %183 = vmatpush1.bf16.msra.mxu0 %v6963_v3 }
  0x15   :  { %184 = vmatprep.subr.bf16.mxu0 %v7193_v1 }
  0x18   :  { %185 = vmatpush1.bf16.msra.mxu0 %v6964_v4 }
  0x19   :  { %186 = vmatprep.subr.bf16.mxu0 %v7193_v1 }
  0x1c   :  { %187 = vmatpush1.bf16.msra.mxu0 %v6965_v5 }
  0x1d   :  { %188 = vmatprep.subr.bf16.mxu0 %v7193_v1 }
  0x20   :  { %189 = vmatpush1.bf16.msra.mxu0 %v6966_v8 }
  0x21   :  { %190 = vmatprep.subr.bf16.mxu0 %v7193_v1 }
  0x24   :  { %191 = vmatpush1.bf16.msra.mxu0 %v6967_v9 }
  0x25   :  { %192 = vmatprep.subr.bf16.mxu0 %v7193_v1 }
  0x26   :  { %24 = vsyncpa [#allocation4], 0  ;;  %v6969_v11 = vld [vmem:[%s8491_s20 + $0x58] sm:$0xff]   ;;  %v6970_v12 = vld [vmem:[%s8491_s20 + $0x50] sm:$0xff]   ;;  %v6017_v15 = vcombine.low %v64_v6, %v64_v6  ;;  %s8493_s30 = sld [smem:[#allocation9_spill]]  ;;  %vm219_vm1 = vcmask 254976   ;;  %v303_v35 = vlaneseq }
  0x27   :  { %v6971_v13 = vld [vmem:[%s8491_s20 + $0x48] sm:$0xff]   ;;  %v6972_v14 = vld [vmem:[%s8491_s20 + $0x40] sm:$0xff]   ;;  %v7194_v18 = vmov 0.0   ;;  %vm7195_vm2 = vmmov 0   ;;  %s8494_s24 = sld [smem:[#allocation8_spill]]  ;;  %vm221_vm3 = vcmask 261120  }
  0x28   :  { %193 = vmatpush1.bf16.msra.mxu0 %v6968_v10  ;;  %v6975_v17 = vld [vmem:[%s8461_s5 + $0x8] sm:$0xff]   ;;  %6381 = vmatprep.subr.bf16.mxu1 %v7194_v18  ;;  %v6976_v19 = vld [vmem:[%s8461_s5] sm:$0xff]   ;;  %v7196_v33 = vmov 1966171168   ;;  %v7390_v38 = vshrl.u32 %v303_v35, 7  ;;  %s7197_s29 = smov 96  }
  0x29   :  { %202 = vmatprep.subr.bf16.mxu0 %v7193_v1  ;;  %6385 = vmatprep.mubr.msk.bf16.mxu1 %vm7195_vm2, %v7194_v18  ;;  %v225_v26 = vld [vmem:[%s8460_s4] sm:$0xff]  ;;  %v226_v27 = vld [vmem:[%s8460_s4 + $0x8] sm:$0x3]  ;;  %v301_v34 = vunpack.c.l.s4 %v7196_v33  ;;  %vm354_vm4 = vcmask 64512   ;;  %vm654_vm5 = vcmask 9216   ;;  %s7198_s0 = smov 64  }
  0x2a   :  { %6382 = vmatpush3.bf16.msra.mxu1 %v6975_v17  ;;  %v6032_v39 = vld [vmem:[%s8462_s6] ss:$0 sm:$0xff]  ;;  %vm721_vm6 = vcmask 1040384   ;;  %s7200_s21 = smov 120   ;;  %vm717_vm7 = vcmask 15360   ;;  %vm989_vm8 = vcmask 58368  }
  0x2b   :  { %6383 = vmatprep.subr.bf16.mxu1 %v7194_v18  ;;  %v302_v37 = vunpack.c.0.s8 %v301_v34  ;;  %s7202_s1 = smov 56   ;;  %s7203_s20 = smov 80   ;;  %vm1581_vm9 = vcmask 130112   ;;  %vm2175_vm10 = vcmask 195712   ;;  %vm1583_vm11 = vcmask 123968  }
  0x2c   :  { %203 = vmatpush2.bf16.msra.mxu0 %v6969_v11  ;;  %v218_v16 = vld [vmem:[%s8493_s30] sm:$0x3]  ;;  %s7199_s30 = smov 88   ;;  %s7204_s22 = smov 112   ;;  %vm2177_vm12 = vcmask 189568   ;;  %vm2769_vm13 = vcmask 261312  }
  0x2d   :  { %204 = vmatprep.subr.bf16.mxu0 %v7193_v1  ;;  %220 = vst.msk [vmem:[#allocation2] sm:$0x3] %vm219_vm1, %v218_v16  ;;  %v6016_v20 = vld [vmem:[%s8494_s24] ss:$0 sm:$0xff]  ;;  %v7396_v44 = vsub.s32 %v302_v37, %v7390_v38  ;;  %s7205_s2 = smov 48   ;;  %s7206_s23 = smov 72  }
  0x2e   :  { %6384 = vmatpush3.bf16.msra.mxu1 %v6976_v19  ;;  %s8485_s24 = smov 104   ;;  %s8483_s25 = smov 40   ;;  %vm2771_vm14 = vcmask 255168  }
  0x2f   :  { %6389 = vmatprep.subr.bf16.mxu1 %v7194_v18  ;;  %s8481_s3 = smov 8   ;;  %s8477_s26 = smov 16  }
  0x30   :  { %205 = vmatpush2.bf16.msra.mxu0 %v6970_v12  ;;  %s8479_s27 = smov 24  }
  0x31   :  { %206 = vmatprep.subr.bf16.mxu0 %v7193_v1 }
  0x34   :  { %207 = vmatpush2.bf16.msra.mxu0 %v6971_v13 }
  0x35   :  { %208 = vmatprep.subr.bf16.mxu0 %v7193_v1 }
  0x38   :  { %209 = vmatpush2.bf16.msra.mxu0 %v6972_v14 }
  0x39   :  { %6419 = vmatprep.subr.bf16.mxu0 %v7194_v18 }
  0x3b   :  { %211 = vmatmul.mubr.bf16.vlgmr.msra.gmra.mxu0 %v6017_v15 }
  0x3c   :  { %6421 = vmatprep.mubr.msk.bf16.mxu0 %vm7195_vm2, %v7194_v18 }
  0xfb   :  { %v212_v21 = vpop.f32.mrf.mxu0 }
  0xfc   :  { %v213_v22 = vadd.f32 %v6016_v20, %v212_v21 }
  0xfd   :  { %v214_v23 = vpop.f32.mrf.mxu0 }
  0xfe   :  { %222 = vst.msk [vmem:[#allocation2 + $0x2] sm:$0xff] %vm221_vm3, %v213_v22 }
  0xff   :  { %v215_v24 = vpop.f32.mrf.mxu0 }
 0x101   :  { %v216_v25 = vpop.f32.mrf.mxu0 }
 0x105   :  { %v223_v28 = vld [vmem:[#allocation2] sm:$0xff]  ;;  %v224_v29 = vld [vmem:[#allocation2 + $0x8] sm:$0x3] }
 0x106   :  { %v7381_v30 = vadd.f32 %v225_v26, %v223_v28  ;;  %v7383_v31 = vadd.f32 %v226_v27, %v224_v29 }
 0x108   :  { %v229_v32 = vpack.c.bf16 %v7383_v31, %v7381_v30 }
 0x10a   :  { %6386 = vmatmul.mubr.msk.bf16.vlgmr.msra.gmra.mxu1 %vm221_vm3, %v229_v32 }
 0x10b   :  { %6391 = vmatprep.mubr.msk.bf16.mxu1 %vm7195_vm2, %v7194_v18 }
 0x1ca   :  { %v290_v36 = vpop.f32.mrf.mxu1 }
 0x1cb   :  { %v291_v42 = vadd.f32 %v6032_v39, %v290_v36 }
 0x1cc   :  { %v6387_v40 = vpop.f32.mrf.mxu1 }
 0x1ce   :  { %v293_v41 = vpop.f32.mrf.mxu1 }
 0x1cf   :  { %v294_v43 = vadd.f32 %v6032_v39, %v293_v41 }
 0x1d0   :  { %v6388_v45 = vpop.f32.mrf.mxu1 }
 0x1d1   :  { %v297_v46 = vpack.c.bf16 %v294_v43, %v291_v42  ;;  %v6036_v47 = vpack.c.bf16 %v294_v43, %v294_v43 }
 0x1d3   :  { %v306_v48 = vrot.slane %v297_v46, %v7396_v44  ;;  %v313_v49 = vrot.slane %v6036_v47, %v7396_v44 }
 0x1d5   :  { %v314_v50 = vcombine.high %v306_v48, %v306_v48  ;;  %v321_v51 = vrot.slane %v306_v48, %v7396_v44  ;;  %v328_v55 = vrot.slane %v313_v49, %v7396_v44 }
 0x1d7   :  { %v335_v52 = vrot.slane %v314_v50, %v7396_v44  ;;  %v336_v53 = vcombine.high %v321_v51, %v321_v51  ;;  %v344_v54 = vrot.slane %v321_v51, %v7396_v44  ;;  %v593_v63 = vrot.slane %v328_v55, %v7396_v44 }
 0x1d9   :  { %v337_v56 = vcombine.high %v335_v52, %v335_v52  ;;  %v7405_v57 = vrot.slane %v344_v54, %v7396_v44  ;;  %v407_v58 = vrot.slane %v335_v52, %v7396_v44  ;;  %v469_v59 = vrot.slane %v336_v53, %v7396_v44 }
 0x1da   :  { %v7427_v1 = vrot.slane %v593_v63, %v7396_v44 }
 0x1db   :  { %v7410_v60 = vrot.slane %v469_v59, %v7396_v44  ;;  %v531_v61 = vrot.slane %v337_v56, %v7396_v44  ;;  %352 = vrot.lane.b32.xlu0 %v7405_v57, %s7197_s29  ;;  %v7416_v62 = vrot.slane %v407_v58, %v7396_v44 }
 0x1dd   :  { %477 = vrot.lane.b32.xlu1 %v7410_v60, %s7197_s29  ;;  %v7422_v0 = vrot.slane %v531_v61, %v7396_v44 }
 0x1df   :  { %415 = vrot.lane.b32.xlu0 %v7416_v62, %s7197_s29 }
 0x1e1   :  { %539 = vrot.lane.b32.xlu1 %v7422_v0, %s7197_s29 }
 0x1e3   :  { %601 = vrot.lane.b32.xlu0 %v7427_v1, %s7197_s29 }
 0x24d   :  { %v353_v2 = vpop.permute.xlu0 %352 }
 0x24e   :  { %v359_v3 = vsel %vm354_vm4, %v353_v2, 0 }
 0x24f   :  { %6390 = vmatpush3.bf16.xpose.msra.mxu1 %v359_v3  ;;  %v478_v6 = vpop.permute.xlu1 %477 }
 0x250   :  { %6395 = vmatprep.subr.bf16.mxu1 %v7194_v18  ;;  %v483_v7 = vsel %vm354_vm4, %v478_v6, 0 }
 0x251   :  { %v416_v4 = vpop.permute.xlu0 %415 }
 0x252   :  { %v421_v5 = vsel %vm354_vm4, %v416_v4, 0 }
 0x253   :  { %v540_v8 = vpop.permute.xlu1 %539 }
 0x254   :  { %v545_v9 = vsel %vm354_vm4, %v540_v8, 0 }
 0x255   :  { %v602_v10 = vpop.permute.xlu0 %601 }
 0x256   :  { %6392 = vmatmul.mubr.msk.bf16.vlgmr.msra.gmra.mxu1 %vm354_vm4, %v321_v51  ;;  %v607_v11 = vsel %vm354_vm4, %v602_v10, 0 }
 0x257   :  { %6396 = vmatpush3.bf16.xpose.msra.mxu1 %v421_v5  ;;  %6397 = vmatprep.mubr.msk.bf16.mxu1 %vm7195_vm2, %v7194_v18 }
 0x258   :  { %6401 = vmatprep.subr.bf16.mxu1 %v7194_v18 }
 0x25e   :  { %6398 = vmatmul.mubr.msk.bf16.vlgmr.msra.gmra.mxu1 %vm354_vm4, %v335_v52 }
 0x25f   :  { %6402 = vmatpush3.bf16.xpose.msra.mxu1 %v483_v7  ;;  %6403 = vmatprep.mubr.msk.bf16.mxu1 %vm7195_vm2, %v7194_v18 }
 0x260   :  { %6407 = vmatprep.subr.bf16.mxu1 %v7194_v18 }
 0x266   :  { %6404 = vmatmul.mubr.msk.bf16.vlgmr.msra.gmra.mxu1 %vm354_vm4, %v336_v53 }
 0x267   :  { %6408 = vmatpush3.bf16.xpose.msra.mxu1 %v545_v9  ;;  %6409 = vmatprep.mubr.msk.bf16.mxu1 %vm7195_vm2, %v7194_v18 }
 0x268   :  { %6413 = vmatprep.subr.bf16.mxu1 %v7194_v18 }
 0x26e   :  { %6410 = vmatmul.mubr.msk.bf16.vlgmr.msra.gmra.mxu1 %vm354_vm4, %v337_v56 }
 0x26f   :  { %6414 = vmatpush3.bf16.xpose.msra.mxu1 %v607_v11  ;;  %6415 = vmatprep.mubr.msk.bf16.mxu1 %vm7195_vm2, %v7194_v18 }
 0x270   :  { %6425 = vmatprep.subr.bf16.mxu1 %v7194_v18 }
 0x276   :  { %6416 = vmatmul.mubr.msk.bf16.vlgmr.msra.gmra.mxu1 %vm354_vm4, %v328_v55 }
 0x277   :  { %6427 = vmatprep.mubr.msk.bf16.mxu1 %vm7195_vm2, %v7194_v18 }
 0x316   :  { %v395_v12 = vpop.f32.mrf.mxu1 }
 0x317   :  { %v649_v13 = vmul.f32 0.35355338, %v395_v12 }
 0x318   :  { %v6393_v14 = vpop.f32.mrf.mxu1 }
 0x319   :  { %v655_v15 = vsel %vm654_vm5, %v649_v13, -inf }
 0x31a   :  { %656 = vmax.xlane.f32.xlu1 %v655_v15  ;;  %v398_v16 = vpop.f32.mrf.mxu1 }
 0x31c   :  { %v6394_v17 = vpop.f32.mrf.mxu1 }
 0x31e   :  { %v457_v19 = vpop.f32.mrf.mxu1 }
 0x31f   :  { %v650_v20 = vmul.f32 0.35355338, %v457_v19 }
 0x320   :  { %v6399_v21 = vpop.f32.mrf.mxu1 }
 0x321   :  { %v658_v22 = vsel %vm654_vm5, %v650_v20, -inf }
 0x322   :  { %659 = vmax.xlane.f32.xlu0 %v658_v22  ;;  %v460_v23 = vpop.f32.mrf.mxu1 }
 0x324   :  { %v6400_v24 = vpop.f32.mrf.mxu1 }
 0x326   :  { %v519_v25 = vpop.f32.mrf.mxu1 }
 0x327   :  { %v651_v26 = vmul.f32 0.35355338, %v519_v25 }
 0x328   :  { %v6405_v27 = vpop.f32.mrf.mxu1 }
 0x329   :  { %v661_v28 = vsel %vm654_vm5, %v651_v26, -inf }
 0x32a   :  { %662 = vmax.xlane.f32.xlu0 %v661_v28  ;;  %v522_v29 = vpop.f32.mrf.mxu1 }
 0x32c   :  { %v6406_v32 = vpop.f32.mrf.mxu1 }
 0x32e   :  { %v581_v33 = vpop.f32.mrf.mxu1 }
 0x32f   :  { %v652_v34 = vmul.f32 0.35355338, %v581_v33 }
 0x330   :  { %v6411_v35 = vpop.f32.mrf.mxu1 }
 0x331   :  { %v664_v36 = vsel %vm654_vm5, %v652_v34, -inf }
 0x332   :  { %665 = vmax.xlane.f32.xlu1 %v664_v36  ;;  %v584_v37 = vpop.f32.mrf.mxu1 }
 0x334   :  { %v6412_v39 = vpop.f32.mrf.mxu1 }
 0x336   :  { %v643_v40 = vpop.f32.mrf.mxu1 }
 0x337   :  { %v653_v41 = vmul.f32 0.35355338, %v643_v40 }
 0x338   :  { %v6417_v42 = vpop.f32.mrf.mxu1 }
 0x339   :  { %v667_v43 = vsel %vm654_vm5, %v653_v41, -inf }
 0x33a   :  { %668 = vmax.xlane.f32.xlu0 %v667_v43  ;;  %v646_v45 = vpop.f32.mrf.mxu1 }
 0x33c   :  { %v6418_v46 = vpop.f32.mrf.mxu1 }
 0x343   :  { %765 = vrot.lane.b32.xlu1 %v7416_v62, %s7198_s0 }
 0x347   :  { %813 = vrot.lane.b32.xlu1 %v7410_v60, %s7198_s0 }
 0x350   :  { %715 = vrot.lane.b32.xlu0 %v7405_v57, %s7198_s0 }
 0x3a3   :  { %v657_v47 = vpop.xlane.xlu1 %656 }
 0x3a4   :  { %v670_v48 = vsub.f32 %v649_v13, %v657_v47 }
 0x3a6   :  { %v675_v49 = vmul.f32 1.442695, %v670_v48 }
 0x3a8   :  { %6997 = vpow2.f32 %v675_v49 }
 0x3ab   :  { %v660_v50 = vpop.xlane.xlu0 %659 }
 0x3ac   :  { %v671_v51 = vsub.f32 %v650_v20, %v660_v50 }
 0x3ae   :  { %v677_v52 = vmul.f32 1.442695, %v671_v51 }
 0x3b0   :  { %6999 = vpow2.f32 %v677_v52 }
 0x3b3   :  { %v663_v59 = vpop.xlane.xlu0 %662 }
 0x3b4   :  { %v672_v5 = vsub.f32 %v651_v26, %v663_v59 }
 0x3b5   :  { %v6998_v53 = vpop.eup %6997 }
 0x3b6   :  { %v685_v54 = vsel %vm654_vm5, %v6998_v53, 0.0  ;;  %v679_v6 = vmul.f32 1.442695, %v672_v5 }
 0x3b7   :  { %686 = vadd.xlane.f32.xlu1 %v685_v54 }
 0x3b8   :  { %7001 = vpow2.f32 %v679_v6 }
 0x3bb   :  { %v666_v55 = vpop.xlane.xlu1 %665 }
 0x3bc   :  { %v673_v7 = vsub.f32 %v652_v34, %v666_v55 }
 0x3bd   :  { %v7000_v56 = vpop.eup %6999 }
 0x3be   :  { %v688_v58 = vsel %vm654_vm5, %v7000_v56, 0.0  ;;  %v681_v8 = vmul.f32 1.442695, %v673_v7 }
 0x3bf   :  { %v766_v61 = vpop.permute.xlu1 %765  ;;  %689 = vadd.xlane.f32.xlu0 %v688_v58 }
 0x3c0   :  { %v771_v63 = vsel %vm721_vm6, %v766_v61, 0  ;;  %7003 = vpow2.f32 %v681_v8 }
 0x3c1   :  { %6426 = vmatpush3.bf16.msra.mxu1 %v771_v63 }
 0x3c2   :  { %6437 = vmatprep.subr.bf16.mxu1 %v7194_v18 }
 0x3c3   :  { %v669_v2 = vpop.xlane.xlu0 %668  ;;  %v814_v17 = vpop.permute.xlu1 %813 }
 0x3c4   :  { %v674_v13 = vsub.f32 %v653_v41, %v669_v2  ;;  %v819_v24 = vsel %vm721_vm6, %v814_v17, 0 }
 0x3c5   :  { %v7002_v9 = vpop.eup %7001 }
 0x3c6   :  { %v691_v10 = vsel %vm654_vm5, %v7002_v9, 0.0  ;;  %v683_v14 = vmul.f32 1.442695, %v674_v13 }
 0x3c7   :  { %v716_v3 = vpop.permute.xlu0 %715 }
 0x3c8   :  { %v723_v4 = vsel %vm721_vm6, %v716_v3, 0  ;;  %909 = vrot.lane.b32.xlu1 %v7427_v1, %s7198_s0  ;;  %7005 = vpow2.f32 %v683_v14 }
 0x3c9   :  { %6420 = vmatpush3.bf16.msra.mxu0 %v723_v4 }
 0x3ca   :  { %6431 = vmatprep.subr.bf16.mxu0 %v7194_v18 }
 0x3cd   :  { %v7004_v11 = vpop.eup %7003 }
 0x3ce   :  { %v694_v12 = vsel %vm654_vm5, %v7004_v11, 0.0 }
 0x3d5   :  { %861 = vrot.lane.b32.xlu0 %v7422_v0, %s7198_s0  ;;  %v7493_v15 = vpop.eup %7005 }
 0x3d6   :  { %v697_v16 = vsel %vm654_vm5, %v7493_v15, 0.0 }
 0x3ec   :  { %692 = vadd.xlane.f32.xlu1 %v691_v10 }
 0x3f4   :  { %695 = vadd.xlane.f32.xlu0 %v694_v12  ;;  %v7201_v12 = vmov 1983009808  }
 0x3f5   :  { %v965_v13 = vunpack.c.l.s4 %v7201_v12 }
 0x3fd   :  { %1043 = vrot.lane.b32.xlu1 %v7416_v62, %s7199_s30 }
 0x40a   :  { %993 = vrot.lane.b32.xlu0 %v7405_v57, %s7199_s30 }
 0x40e   :  { %991 = vrot.lane.b32.xlu0 %v7405_v57, %s7200_s21 }
 0x412   :  { %1041 = vrot.lane.b32.xlu0 %v7416_v62, %s7200_s21 }
 0x416   :  { %1091 = vrot.lane.b32.xlu0 %v7410_v60, %s7200_s21 }
 0x41a   :  { %1141 = vrot.lane.b32.xlu0 %v7422_v0, %s7200_s21 }
 0x421   :  { %698 = vadd.xlane.f32.xlu1 %v697_v16  ;;  %v966_v16 = vunpack.c.0.s8 %v965_v13 }
 0x432   :  { %1093 = vrot.lane.b32.xlu1 %v7410_v60, %s7199_s30 }
 0x436   :  { %1143 = vrot.lane.b32.xlu1 %v7422_v0, %s7199_s30 }
 0x43a   :  { %1193 = vrot.lane.b32.xlu1 %v7427_v1, %s7199_s30 }
 0x43e   :  { %1191 = vrot.lane.b32.xlu1 %v7427_v1, %s7200_s21 }
 0x440   :  { %v687_v19 = vpop.xlane.xlu1 %686 }
 0x441   :  { %7007 = vrcp.f32 %v687_v19 }
 0x444   :  { %v910_v32 = vpop.permute.xlu1 %909 }
 0x445   :  { %v915_v39 = vsel %vm721_vm6, %v910_v32, 0 }
 0x448   :  { %v690_v20 = vpop.xlane.xlu0 %689 }
 0x449   :  { %7009 = vrcp.f32 %v690_v20 }
 0x44c   :  { %v862_v27 = vpop.permute.xlu0 %861 }
 0x44d   :  { %v867_v29 = vsel %vm721_vm6, %v862_v27, 0 }
 0x44e   :  { %v7008_v21 = vpop.eup %7007 }
 0x44f   :  { %v705_v22 = vmul.f32 %v7008_v21, %v6998_v53  ;;  %v7553_v21 = vsub.s32 %v966_v16, %v7390_v38 }
 0x451   :  { %v710_v23 = vpack.c.bf16 %v705_v22, %v705_v22 }
 0x453   :  { %6422 = vmatmul.mubr.msk.bf16.vlgmr.msra.gmra.mxu0 %vm717_vm7, %v710_v23 }
 0x454   :  { %6432 = vmatpush3.bf16.msra.mxu0 %v819_v24  ;;  %6433 = vmatprep.mubr.msk.bf16.mxu0 %vm7195_vm2, %v7194_v18 }
 0x455   :  { %6443 = vmatprep.subr.bf16.mxu0 %v7194_v18 }
 0x456   :  { %v7010_v25 = vpop.eup %7009 }
 0x457   :  { %v706_v26 = vmul.f32 %v7010_v25, %v7000_v56 }
 0x459   :  { %v711_v28 = vpack.c.bf16 %v706_v26, %v706_v26 }
 0x45b   :  { %6428 = vmatmul.mubr.msk.bf16.vlgmr.msra.gmra.mxu1 %vm717_vm7, %v711_v28 }
 0x45c   :  { %6438 = vmatpush3.bf16.msra.mxu1 %v867_v29  ;;  %6439 = vmatprep.mubr.msk.bf16.mxu1 %vm7195_vm2, %v7194_v18 }
 0x45d   :  { %6449 = vmatprep.subr.bf16.mxu1 %v7194_v18 }
 0x475   :  { %v693_v33 = vpop.xlane.xlu1 %692 }
 0x476   :  { %7011 = vrcp.f32 %v693_v33 }
 0x479   :  { %v1044_v47 = vpop.permute.xlu1 %1043 }
 0x47a   :  { %v1049_v61 = vsel %vm354_vm4, %v1044_v47, 0 }
 0x47d   :  { %v696_v34 = vpop.xlane.xlu0 %695 }
 0x47e   :  { %7013 = vrcp.f32 %v696_v34 }
 0x481   :  { %v994_v42 = vpop.permute.xlu0 %993 }
 0x482   :  { %v999_v45 = vsel %vm354_vm4, %v994_v42, 0 }
 0x483   :  { %v7012_v35 = vpop.eup %7011 }
 0x484   :  { %v707_v36 = vmul.f32 %v7012_v35, %v7002_v9 }
 0x485   :  { %v992_v46 = vpop.permute.xlu0 %991 }
 0x486   :  { %v712_v37 = vpack.c.bf16 %v707_v36, %v707_v36 }
 0x488   :  { %6434 = vmatmul.mubr.msk.bf16.vlgmr.msra.gmra.mxu0 %vm717_vm7, %v712_v37 }
 0x489   :  { %6444 = vmatpush3.bf16.msra.mxu0 %v915_v39  ;;  %6445 = vmatprep.mubr.msk.bf16.mxu0 %vm7195_vm2, %v7194_v18  ;;  %v1042_v51 = vpop.permute.xlu0 %1041 }
 0x48a   :  { %6455 = vmatprep.subr.bf16.mxu0 %v7194_v18 }
 0x48b   :  { %v7014_v40 = vpop.eup %7013 }
 0x48c   :  { %v708_v41 = vmul.f32 %v7014_v40, %v7004_v11 }
 0x48d   :  { %v1092_v53 = vpop.permute.xlu0 %1091 }
 0x48e   :  { %v713_v43 = vpack.c.bf16 %v708_v41, %v708_v41 }
 0x490   :  { %6440 = vmatmul.mubr.msk.bf16.vlgmr.msra.gmra.mxu1 %vm717_vm7, %v713_v43 }
 0x491   :  { %6450 = vmatpush3.bf16.xpose.msra.mxu1 %v999_v45  ;;  %6451 = vmatprep.mubr.msk.bf16.mxu1 %vm7195_vm2, %v7194_v18  ;;  %v1142_v3 = vpop.permute.xlu0 %1141 }
 0x492   :  { %6461 = vmatprep.subr.bf16.mxu1 %v7194_v18 }
 0x498   :  { %6452 = vmatmul.mubr.msk.bf16.vlgmr.msra.gmra.mxu1 %vm354_vm4, %v992_v46 }
 0x499   :  { %6463 = vmatprep.mubr.msk.bf16.mxu1 %vm7195_vm2, %v7194_v18 }
 0x4aa   :  { %v699_v48 = vpop.xlane.xlu1 %698 }
 0x4ab   :  { %7015 = vrcp.f32 %v699_v48 }
 0x4ae   :  { %v1094_v49 = vpop.permute.xlu1 %1093 }
 0x4af   :  { %v1099_v50 = vsel %vm354_vm4, %v1094_v49, 0 }
 0x4b0   :  { %6462 = vmatpush3.bf16.xpose.msra.mxu1 %v1099_v50 }
 0x4b1   :  { %6473 = vmatprep.subr.bf16.mxu1 %v7194_v18 }
 0x4b2   :  { %v1144_v52 = vpop.permute.xlu1 %1143 }
 0x4b3   :  { %v1149_v2 = vsel %vm354_vm4, %v1144_v52, 0 }
 0x4b6   :  { %v1194_v54 = vpop.permute.xlu1 %1193 }
 0x4b7   :  { %v1199_v55 = vsel %vm354_vm4, %v1194_v54, 0  ;;  %6464 = vmatmul.mubr.msk.bf16.vlgmr.msra.gmra.mxu1 %vm354_vm4, %v1092_v53 }
 0x4b8   :  { %v7016_v56 = vpop.eup %7015  ;;  %6474 = vmatpush3.bf16.xpose.msra.mxu1 %v1199_v55  ;;  %6475 = vmatprep.mubr.msk.bf16.mxu1 %vm7195_vm2, %v7194_v18 }
 0x4b9   :  { %v709_v58 = vmul.f32 %v7016_v56, %v7493_v15  ;;  %6485 = vmatprep.subr.bf16.mxu1 %v7194_v18 }
 0x4ba   :  { %v1192_v63 = vpop.permute.xlu1 %1191 }
 0x4bb   :  { %v714_v59 = vpack.c.bf16 %v709_v58, %v709_v58 }
 0x4bd   :  { %6446 = vmatmul.mubr.msk.bf16.vlgmr.msra.gmra.mxu0 %vm717_vm7, %v714_v59 }
 0x4be   :  { %6456 = vmatpush3.bf16.xpose.msra.mxu0 %v1049_v61  ;;  %6457 = vmatprep.mubr.msk.bf16.mxu0 %vm7195_vm2, %v7194_v18 }
 0x4bf   :  { %6476 = vmatmul.mubr.msk.bf16.vlgmr.msra.gmra.mxu1 %vm354_vm4, %v1192_v63  ;;  %6467 = vmatprep.subr.bf16.mxu0 %v7194_v18 }
 0x4c0   :  { %6487 = vmatprep.mubr.msk.bf16.mxu1 %vm7195_vm2, %v7194_v18 }
 0x4c5   :  { %6458 = vmatmul.mubr.msk.bf16.vlgmr.msra.gmra.mxu0 %vm354_vm4, %v1042_v51 }
 0x4c6   :  { %6468 = vmatpush3.bf16.xpose.msra.mxu0 %v1149_v2  ;;  %6469 = vmatprep.mubr.msk.bf16.mxu0 %vm7195_vm2, %v7194_v18 }
 0x4c7   :  { %6479 = vmatprep.subr.bf16.mxu0 %v7194_v18 }
 0x4cd   :  { %6470 = vmatmul.mubr.msk.bf16.vlgmr.msra.gmra.mxu0 %vm354_vm4, %v1142_v3 }
 0x4ce   :  { %6481 = vmatprep.mubr.msk.bf16.mxu0 %vm7195_vm2, %v7194_v18 }
 0x513   :  { %v759_v4 = vpop.f32.mrf.mxu0 }
 0x515   :  { %v6423_v5 = vpop.f32.mrf.mxu0 }
 0x517   :  { %v762_v6 = vpop.f32.mrf.mxu0 }
 0x519   :  { %v6424_v7 = vpop.f32.mrf.mxu0 }
 0x51b   :  { %v807_v8 = vpop.f32.mrf.mxu1 }
 0x51c   :  { %v962_v20 = vcombine.low %v759_v4, %v807_v8 }
 0x51d   :  { %v6429_v9 = vpop.f32.mrf.mxu1 }
 0x51e   :  { %v970_v25 = vrot.slane %v962_v20, %v7553_v21 }
 0x51f   :  { %v810_v10 = vpop.f32.mrf.mxu1 }
 0x521   :  { %v6430_v11 = vpop.f32.mrf.mxu1 }
 0x548   :  { %v855_v14 = vpop.f32.mrf.mxu0 }
 0x54a   :  { %v6435_v15 = vpop.f32.mrf.mxu0 }
 0x54c   :  { %v858_v17 = vpop.f32.mrf.mxu0 }
 0x54e   :  { %v6436_v19 = vpop.f32.mrf.mxu0 }
 0x550   :  { %v903_v22 = vpop.f32.mrf.mxu1 }
 0x551   :  { %v963_v23 = vcombine.low %v855_v14, %v903_v22 }
 0x552   :  { %v6441_v24 = vpop.f32.mrf.mxu1 }
 0x553   :  { %v977_v26 = vrot.slane %v963_v23, %v7553_v21 }
 0x554   :  { %v906_v27 = vpop.f32.mrf.mxu1 }
 0x555   :  { %v978_v28 = vcombine.low %v970_v25, %v977_v26 }
 0x556   :  { %v6442_v29 = vpop.f32.mrf.mxu1 }
 0x557   :  { %988 = vst.msk [vmem:[#allocation2] sm:$0xff] %vm354_vm4, %v978_v28 }
 0x558   :  { %v1035_v32 = vpop.f32.mrf.mxu1 }
 0x559   :  { %v1241_v33 = vmul.f32 0.35355338, %v1035_v32 }
 0x55a   :  { %v6453_v34 = vpop.f32.mrf.mxu1 }
 0x55b   :  { %v1246_v35 = vsel %vm654_vm5, %v1241_v33, -inf }
 0x55c   :  { %1247 = vmax.xlane.f32.xlu0 %v1246_v35  ;;  %v1038_v38 = vpop.f32.mrf.mxu1 }
 0x55e   :  { %v6454_v36 = vpop.f32.mrf.mxu1 }
 0x577   :  { %v1135_v37 = vpop.f32.mrf.mxu1 }
 0x578   :  { %v1243_v39 = vmul.f32 0.35355338, %v1135_v37 }
 0x579   :  { %v6465_v40 = vpop.f32.mrf.mxu1 }
 0x57a   :  { %v1252_v41 = vsel %vm654_vm5, %v1243_v39, -inf }
 0x57b   :  { %1253 = vmax.xlane.f32.xlu0 %v1252_v41  ;;  %v1138_v42 = vpop.f32.mrf.mxu1 }
 0x57d   :  { %v951_v43 = vpop.f32.mrf.mxu0  ;;  %v6466_v45 = vpop.f32.mrf.mxu1 }
 0x57e   :  { %v985_v46 = vrot.slane %v951_v43, %v7553_v21 }
 0x57f   :  { %v6447_v47 = vpop.f32.mrf.mxu0  ;;  %v1235_v48 = vpop.f32.mrf.mxu1 }
 0x580   :  { %990 = vst.msk [vmem:[#allocation2 + $0x8] sm:$0x3] %vm989_vm8, %v985_v46  ;;  %v1245_v58 = vmul.f32 0.35355338, %v1235_v48 }
 0x581   :  { %v954_v49 = vpop.f32.mrf.mxu0  ;;  %v6477_v50 = vpop.f32.mrf.mxu1 }
 0x582   :  { %v1258_v2 = vsel %vm654_vm5, %v1245_v58, -inf }
 0x583   :  { %v6448_v51 = vpop.f32.mrf.mxu0  ;;  %v1238_v52 = vpop.f32.mrf.mxu1 }
 0x585   :  { %v1085_v53 = vpop.f32.mrf.mxu0  ;;  %v6478_v54 = vpop.f32.mrf.mxu1 }
 0x586   :  { %v1242_v55 = vmul.f32 0.35355338, %v1085_v53 }
 0x587   :  { %v6459_v56 = vpop.f32.mrf.mxu0 }
 0x588   :  { %v1249_v59 = vsel %vm654_vm5, %v1242_v55, -inf }
 0x589   :  { %1250 = vmax.xlane.f32.xlu1 %v1249_v59  ;;  %v1088_v61 = vpop.f32.mrf.mxu0 }
 0x58b   :  { %v6460_v63 = vpop.f32.mrf.mxu0 }
 0x58d   :  { %v1185_v3 = vpop.f32.mrf.mxu0  ;;  %1259 = vmax.xlane.f32.xlu1 %v1258_v2 }
 0x58e   :  { %v1244_v4 = vmul.f32 0.35355338, %v1185_v3 }
 0x58f   :  { %v6471_v5 = vpop.f32.mrf.mxu0 }
 0x590   :  { %v1255_v6 = vsel %vm654_vm5, %v1244_v4, -inf }
 0x591   :  { %v1188_v7 = vpop.f32.mrf.mxu0  ;;  %1256 = vmax.xlane.f32.xlu0 %v1255_v6 }
 0x593   :  { %v6472_v8 = vpop.f32.mrf.mxu0 }
 0x59e   :  { %1306 = vrot.lane.b32.xlu1 %v7405_v57, %s7202_s1 }
 0x5a2   :  { %1402 = vrot.lane.b32.xlu1 %v7410_v60, %s7202_s1 }
 0x5a6   :  { %1450 = vrot.lane.b32.xlu1 %v7422_v0, %s7202_s1 }
 0x5a7   :  { %1354 = vrot.lane.b32.xlu0 %v7416_v62, %s7202_s1 }
 0x5e5   :  { %v1248_v9 = vpop.xlane.xlu0 %1247 }
 0x5e6   :  { %v1261_v10 = vsub.f32 %v1241_v33, %v1248_v9 }
 0x5e8   :  { %v1266_v11 = vmul.f32 1.442695, %v1261_v10 }
 0x5ea   :  { %7017 = vpow2.f32 %v1266_v11 }
 0x5f7   :  { %v7018_v12 = vpop.eup %7017 }
 0x5f8   :  { %v1276_v13 = vsel %vm654_vm5, %v7018_v12, 0.0 }
 0x5f9   :  { %1277 = vadd.xlane.f32.xlu0 %v1276_v13 }
 0x604   :  { %v1254_v14 = vpop.xlane.xlu0 %1253 }
 0x605   :  { %v1263_v15 = vsub.f32 %v1243_v39, %v1254_v14 }
 0x607   :  { %v1270_v16 = vmul.f32 1.442695, %v1263_v15 }
 0x609   :  { %7019 = vpow2.f32 %v1270_v16 }
 0x612   :  { %v1251_v17 = vpop.xlane.xlu1 %1250 }
 0x613   :  { %v1262_v19 = vsub.f32 %v1242_v55, %v1251_v17 }
 0x615   :  { %v1268_v20 = vmul.f32 1.442695, %v1262_v19 }
 0x616   :  { %v7020_v22 = vpop.eup %7019  ;;  %v1260_v23 = vpop.xlane.xlu1 %1259 }
 0x617   :  { %7021 = vpow2.f32 %v1268_v20  ;;  %v1282_v24 = vsel %vm654_vm5, %v7020_v22, 0.0  ;;  %v1265_v37 = vsub.f32 %v1245_v58, %v1260_v23 }
 0x618   :  { %1283 = vadd.xlane.f32.xlu0 %v1282_v24 }
 0x619   :  { %v1274_v39 = vmul.f32 1.442695, %v1265_v37 }
 0x61a   :  { %v1257_v25 = vpop.xlane.xlu0 %1256  ;;  %v1307_v26 = vpop.permute.xlu1 %1306 }
 0x61b   :  { %v1264_v27 = vsub.f32 %v1244_v4, %v1257_v25  ;;  %v1312_v28 = vsel %vm721_vm6, %v1307_v26, 0 }
 0x61c   :  { %6480 = vmatpush3.bf16.msra.mxu0 %v1312_v28 }
 0x61d   :  { %v1272_v29 = vmul.f32 1.442695, %v1264_v27  ;;  %6491 = vmatprep.subr.bf16.mxu0 %v7194_v18 }
 0x61e   :  { %v1355_v32 = vpop.permute.xlu0 %1354  ;;  %v1403_v46 = vpop.permute.xlu1 %1402 }
 0x61f   :  { %7023 = vpow2.f32 %v1272_v29  ;;  %v1360_v33 = vsel %vm721_vm6, %v1355_v32, 0  ;;  %v1408_v48 = vsel %vm721_vm6, %v1403_v46, 0 }
 0x620   :  { %6486 = vmatpush3.bf16.msra.mxu1 %v1360_v33  ;;  %7025 = vpow2.f32 %v1274_v39 }
 0x621   :  { %6497 = vmatprep.subr.bf16.mxu1 %v7194_v18 }
 0x622   :  { %v1451_v50 = vpop.permute.xlu1 %1450 }
 0x623   :  { %v1456_v2 = vsel %vm721_vm6, %v1451_v50, 0 }
 0x624   :  { %v7022_v34 = vpop.eup %7021 }
 0x625   :  { %v1279_v35 = vsel %vm654_vm5, %v7022_v34, 0.0 }
 0x626   :  { %1280 = vadd.xlane.f32.xlu1 %v1279_v35 }
 0x62c   :  { %v7024_v38 = vpop.eup %7023 }
 0x62d   :  { %v1285_v36 = vsel %vm654_vm5, %v7024_v38, 0.0  ;;  %v7589_v40 = vpop.eup %7025 }
 0x62e   :  { %1498 = vrot.lane.b32.xlu0 %v7427_v1, %s7202_s1  ;;  %1286 = vadd.xlane.f32.xlu1 %v1285_v36  ;;  %v1288_v41 = vsel %vm654_vm5, %v7589_v40, 0.0 }
 0x63f   :  { %1587 = vrot.lane.b32.xlu1 %v7405_v57, %s7203_s20 }
 0x643   :  { %1585 = vrot.lane.b32.xlu1 %v7405_v57, %s7204_s22 }
 0x647   :  { %1635 = vrot.lane.b32.xlu1 %v7416_v62, %s7204_s22 }
 0x64b   :  { %1685 = vrot.lane.b32.xlu1 %v7410_v60, %s7204_s22 }
 0x64d   :  { %1289 = vadd.xlane.f32.xlu0 %v1288_v41 }
 0x64f   :  { %1735 = vrot.lane.b32.xlu1 %v7422_v0, %s7204_s22 }
 0x663   :  { %1637 = vrot.lane.b32.xlu0 %v7416_v62, %s7203_s20 }
 0x667   :  { %1687 = vrot.lane.b32.xlu0 %v7410_v60, %s7203_s20 }
 0x66b   :  { %1737 = vrot.lane.b32.xlu0 %v7422_v0, %s7203_s20 }
 0x66f   :  { %1787 = vrot.lane.b32.xlu0 %v7427_v1, %s7203_s20 }
 0x673   :  { %1785 = vrot.lane.b32.xlu0 %v7427_v1, %s7204_s22 }
 0x682   :  { %v1278_v42 = vpop.xlane.xlu0 %1277 }
 0x683   :  { %7027 = vrcp.f32 %v1278_v42 }
 0x690   :  { %v7028_v43 = vpop.eup %7027 }
 0x691   :  { %v1296_v45 = vmul.f32 %v7028_v43, %v7018_v12 }
 0x693   :  { %v1301_v47 = vpack.c.bf16 %v1296_v45, %v1296_v45 }
 0x695   :  { %6482 = vmatmul.mubr.msk.bf16.vlgmr.msra.gmra.mxu0 %vm717_vm7, %v1301_v47 }
 0x696   :  { %6492 = vmatpush3.bf16.msra.mxu0 %v1408_v48  ;;  %6493 = vmatprep.mubr.msk.bf16.mxu0 %vm7195_vm2, %v7194_v18 }
 0x697   :  { %6503 = vmatprep.subr.bf16.mxu0 %v7194_v18 }
 0x6a1   :  { %v1284_v49 = vpop.xlane.xlu0 %1283 }
 0x6a2   :  { %7029 = vrcp.f32 %v1284_v49 }
 0x6a5   :  { %v1499_v54 = vpop.permute.xlu0 %1498 }
 0x6a6   :  { %v1504_v56 = vsel %vm721_vm6, %v1499_v54, 0 }
 0x6af   :  { %v7030_v51 = vpop.eup %7029  ;;  %v1281_v52 = vpop.xlane.xlu1 %1280 }
 0x6b0   :  { %7031 = vrcp.f32 %v1281_v52  ;;  %v1298_v53 = vmul.f32 %v7030_v51, %v7020_v22 }
 0x6b2   :  { %v1303_v55 = vpack.c.bf16 %v1298_v53, %v1298_v53 }
 0x6b4   :  { %6494 = vmatmul.mubr.msk.bf16.vlgmr.msra.gmra.mxu0 %vm717_vm7, %v1303_v55 }
 0x6b5   :  { %6504 = vmatpush3.bf16.msra.mxu0 %v1504_v56  ;;  %6505 = vmatprep.mubr.msk.bf16.mxu0 %vm7195_vm2, %v7194_v18 }
 0x6b6   :  { %6515 = vmatprep.subr.bf16.mxu0 %v7194_v18 }
 0x6b7   :  { %v1287_v58 = vpop.xlane.xlu1 %1286 }
 0x6b8   :  { %7033 = vrcp.f32 %v1287_v58 }
 0x6bb   :  { %v1588_v5 = vpop.permute.xlu1 %1587 }
 0x6bc   :  { %v1593_v7 = vsel %vm354_vm4, %v1588_v5, 0 }
 0x6bd   :  { %v7032_v59 = vpop.eup %7031 }
 0x6be   :  { %v1297_v61 = vmul.f32 %v7032_v59, %v7022_v34 }
 0x6bf   :  { %v1586_v8 = vpop.permute.xlu1 %1585 }
 0x6c0   :  { %v1302_v63 = vpack.c.bf16 %v1297_v61, %v1297_v61 }
 0x6c2   :  { %6488 = vmatmul.mubr.msk.bf16.vlgmr.msra.gmra.mxu1 %vm717_vm7, %v1302_v63 }
 0x6c3   :  { %6498 = vmatpush3.bf16.msra.mxu1 %v1456_v2  ;;  %6499 = vmatprep.mubr.msk.bf16.mxu1 %vm7195_vm2, %v7194_v18  ;;  %v1636_v13 = vpop.permute.xlu1 %1635 }
 0x6c4   :  { %6509 = vmatprep.subr.bf16.mxu1 %v7194_v18 }
 0x6c5   :  { %v7034_v3 = vpop.eup %7033 }
 0x6c6   :  { %v1299_v4 = vmul.f32 %v7034_v3, %v7024_v38 }
 0x6c7   :  { %v1686_v17 = vpop.permute.xlu1 %1685 }
 0x6c8   :  { %v1304_v6 = vpack.c.bf16 %v1299_v4, %v1299_v4 }
 0x6ca   :  { %6500 = vmatmul.mubr.msk.bf16.vlgmr.msra.gmra.mxu1 %vm717_vm7, %v1304_v6 }
 0x6cb   :  { %6510 = vmatpush3.bf16.xpose.msra.mxu1 %v1593_v7  ;;  %6511 = vmatprep.mubr.msk.bf16.mxu1 %vm7195_vm2, %v7194_v18  ;;  %v1736_v26 = vpop.permute.xlu1 %1735 }
 0x6cc   :  { %6521 = vmatprep.subr.bf16.mxu1 %v7194_v18 }
 0x6d2   :  { %6512 = vmatmul.mubr.msk.bf16.vlgmr.msra.gmra.mxu1 %vm354_vm4, %v1586_v8 }
 0x6d3   :  { %6523 = vmatprep.mubr.msk.bf16.mxu1 %vm7195_vm2, %v7194_v18 }
 0x6d6   :  { %v1290_v9 = vpop.xlane.xlu0 %1289 }
 0x6d7   :  { %7035 = vrcp.f32 %v1290_v9 }
 0x6da   :  { %v1638_v10 = vpop.permute.xlu0 %1637 }
 0x6db   :  { %v1643_v23 = vsel %vm354_vm4, %v1638_v10, 0 }
 0x6de   :  { %v1688_v11 = vpop.permute.xlu0 %1687 }
 0x6df   :  { %v1693_v12 = vsel %vm354_vm4, %v1688_v11, 0 }
 0x6e0   :  { %6522 = vmatpush3.bf16.xpose.msra.mxu1 %v1693_v12 }
 0x6e1   :  { %6533 = vmatprep.subr.bf16.mxu1 %v7194_v18 }
 0x6e2   :  { %v1738_v14 = vpop.permute.xlu0 %1737 }
 0x6e3   :  { %v1743_v25 = vsel %vm354_vm4, %v1738_v14, 0 }
 0x6e4   :  { %v7036_v15 = vpop.eup %7035 }
 0x6e5   :  { %v1300_v16 = vmul.f32 %v7036_v15, %v7589_v40 }
 0x6e6   :  { %v1788_v19 = vpop.permute.xlu0 %1787 }
 0x6e7   :  { %v1793_v20 = vsel %vm354_vm4, %v1788_v19, 0  ;;  %6524 = vmatmul.mubr.msk.bf16.vlgmr.msra.gmra.mxu1 %vm354_vm4, %v1686_v17  ;;  %v1305_v22 = vpack.c.bf16 %v1300_v16, %v1300_v16 }
 0x6e8   :  { %6534 = vmatpush3.bf16.xpose.msra.mxu1 %v1793_v20  ;;  %6535 = vmatprep.mubr.msk.bf16.mxu1 %vm7195_vm2, %v7194_v18 }
 0x6e9   :  { %6506 = vmatmul.mubr.msk.bf16.vlgmr.msra.gmra.mxu0 %vm717_vm7, %v1305_v22  ;;  %6545 = vmatprep.subr.bf16.mxu1 %v7194_v18 }
 0x6ea   :  { %6516 = vmatpush3.bf16.xpose.msra.mxu0 %v1643_v23  ;;  %6517 = vmatprep.mubr.msk.bf16.mxu0 %vm7195_vm2, %v7194_v18  ;;  %v1786_v24 = vpop.permute.xlu0 %1785 }
 0x6eb   :  { %6527 = vmatprep.subr.bf16.mxu0 %v7194_v18 }
 0x6ef   :  { %6536 = vmatmul.mubr.msk.bf16.vlgmr.msra.gmra.mxu1 %vm354_vm4, %v1786_v24 }
 0x6f0   :  { %6547 = vmatprep.mubr.msk.bf16.mxu1 %vm7195_vm2, %v7194_v18 }
 0x6f1   :  { %6518 = vmatmul.mubr.msk.bf16.vlgmr.msra.gmra.mxu0 %vm354_vm4, %v1636_v13 }
 0x6f2   :  { %6528 = vmatpush3.bf16.xpose.msra.mxu0 %v1743_v25  ;;  %6529 = vmatprep.mubr.msk.bf16.mxu0 %vm7195_vm2, %v7194_v18 }
 0x6f3   :  { %6539 = vmatprep.subr.bf16.mxu0 %v7194_v18 }
 0x6f9   :  { %6530 = vmatmul.mubr.msk.bf16.vlgmr.msra.gmra.mxu0 %vm354_vm4, %v1736_v26 }
 0x6fa   :  { %6541 = vmatprep.mubr.msk.bf16.mxu0 %vm7195_vm2, %v7194_v18 }
 0x755   :  { %v1348_v27 = vpop.f32.mrf.mxu0 }
 0x757   :  { %v6483_v28 = vpop.f32.mrf.mxu0 }
 0x759   :  { %v1351_v29 = vpop.f32.mrf.mxu0 }
 0x75b   :  { %v6484_v32 = vpop.f32.mrf.mxu0 }
 0x774   :  { %v1444_v33 = vpop.f32.mrf.mxu0 }
 0x776   :  { %v6495_v34 = vpop.f32.mrf.mxu0 }
 0x778   :  { %v1447_v35 = vpop.f32.mrf.mxu0 }
 0x77a   :  { %v6496_v38 = vpop.f32.mrf.mxu0 }
 0x782   :  { %v1396_v36 = vpop.f32.mrf.mxu1 }
 0x783   :  { %v1551_v37 = vcombine.low %v1348_v27, %v1396_v36 }
 0x784   :  { %v6489_v39 = vpop.f32.mrf.mxu1 }
 0x785   :  { %v7655_v46 = vrot.slane %v1551_v37, %v7553_v21 }
 0x786   :  { %v1399_v40 = vpop.f32.mrf.mxu1 }
 0x788   :  { %v6490_v41 = vpop.f32.mrf.mxu1 }
 0x78a   :  { %v1492_v42 = vpop.f32.mrf.mxu1 }
 0x78b   :  { %v1552_v43 = vcombine.low %v1444_v33, %v1492_v42 }
 0x78c   :  { %v6501_v45 = vpop.f32.mrf.mxu1 }
 0x78d   :  { %v7658_v47 = vrot.slane %v1552_v43, %v7553_v21 }
 0x78e   :  { %v1495_v48 = vpop.f32.mrf.mxu1 }
 0x78f   :  { %v1567_v49 = vcombine.low %v7655_v46, %v7658_v47 }
 0x790   :  { %v6502_v50 = vpop.f32.mrf.mxu1 }
 0x792   :  { %v1629_v51 = vpop.f32.mrf.mxu1 }
 0x793   :  { %v1835_v52 = vmul.f32 0.35355338, %v1629_v51 }
 0x794   :  { %v6513_v53 = vpop.f32.mrf.mxu1 }
 0x795   :  { %v1840_v54 = vsel %vm654_vm5, %v1835_v52, -inf }
 0x796   :  { %1841 = vmax.xlane.f32.xlu1 %v1840_v54  ;;  %v1632_v55 = vpop.f32.mrf.mxu1 }
 0x798   :  { %v6514_v56 = vpop.f32.mrf.mxu1 }
 0x7a7   :  { %v1729_v58 = vpop.f32.mrf.mxu1 }
 0x7a8   :  { %v1837_v12 = vmul.f32 0.35355338, %v1729_v58 }
 0x7a9   :  { %v7663_v59 = vpop.f32.mrf.mxu0  ;;  %v6525_v61 = vpop.f32.mrf.mxu1 }
 0x7aa   :  { %v1846_v19 = vsel %vm654_vm5, %v1837_v12, -inf  ;;  %v1574_v46 = vrot.slane %v7663_v59, %v7553_v21 }
 0x7ab   :  { %v6507_v63 = vpop.f32.mrf.mxu0  ;;  %v1732_v2 = vpop.f32.mrf.mxu1 }
 0x7ad   :  { %v1543_v3 = vpop.f32.mrf.mxu0  ;;  %v6526_v4 = vpop.f32.mrf.mxu1 }
 0x7af   :  { %v6508_v5 = vpop.f32.mrf.mxu0  ;;  %v1829_v6 = vpop.f32.mrf.mxu1 }
 0x7b0   :  { %v1839_v17 = vmul.f32 0.35355338, %v1829_v6 }
 0x7b1   :  { %v1679_v7 = vpop.f32.mrf.mxu0  ;;  %v6537_v8 = vpop.f32.mrf.mxu1 }
 0x7b2   :  { %v1836_v9 = vmul.f32 0.35355338, %v1679_v7  ;;  %v1852_v25 = vsel %vm654_vm5, %v1839_v17, -inf }
 0x7b3   :  { %v6519_v10 = vpop.f32.mrf.mxu0  ;;  %v1832_v11 = vpop.f32.mrf.mxu1 }
 0x7b4   :  { %v1843_v13 = vsel %vm654_vm5, %v1836_v9, -inf }
 0x7b5   :  { %1844 = vmax.xlane.f32.xlu0 %v1843_v13  ;;  %v1682_v14 = vpop.f32.mrf.mxu0  ;;  %v6538_v15 = vpop.f32.mrf.mxu1 }
 0x7b7   :  { %v6520_v16 = vpop.f32.mrf.mxu0 }
 0x7b9   :  { %v1779_v20 = vpop.f32.mrf.mxu0  ;;  %1847 = vmax.xlane.f32.xlu0 %v1846_v19 }
 0x7ba   :  { %v1838_v22 = vmul.f32 0.35355338, %v1779_v20 }
 0x7bb   :  { %v6531_v23 = vpop.f32.mrf.mxu0 }
 0x7bc   :  { %v1849_v24 = vsel %vm654_vm5, %v1838_v22, -inf }
 0x7bd   :  { %v1782_v26 = vpop.f32.mrf.mxu0  ;;  %1850 = vmax.xlane.f32.xlu1 %v1849_v24  ;;  %1853 = vmax.xlane.f32.xlu0 %v1852_v25 }
 0x7bf   :  { %v6532_v27 = vpop.f32.mrf.mxu0 }
 0x7ce   :  { %1948 = vrot.lane.b32.xlu1 %v7416_v62, %s7205_s2 }
 0x7d2   :  { %1996 = vrot.lane.b32.xlu1 %v7410_v60, %s7205_s2 }
 0x7d3   :  { %1900 = vrot.lane.b32.xlu0 %v7405_v57, %s7205_s2 }
 0x81f   :  { %v1842_v28 = vpop.xlane.xlu1 %1841 }
 0x820   :  { %v1855_v29 = vsub.f32 %v1835_v52, %v1842_v28 }
 0x822   :  { %v1860_v32 = vmul.f32 1.442695, %v1855_v29 }
 0x824   :  { %7037 = vpow2.f32 %v1860_v32 }
 0x831   :  { %v7038_v33 = vpop.eup %7037 }
 0x832   :  { %v1870_v34 = vsel %vm654_vm5, %v7038_v33, 0.0 }
 0x833   :  { %1871 = vadd.xlane.f32.xlu1 %v1870_v34 }
 0x83e   :  { %v1845_v35 = vpop.xlane.xlu0 %1844 }
 0x83f   :  { %v1856_v38 = vsub.f32 %v1836_v9, %v1845_v35 }
 0x841   :  { %v1862_v36 = vmul.f32 1.442695, %v1856_v38 }
 0x842   :  { %v1848_v37 = vpop.xlane.xlu0 %1847 }
 0x843   :  { %7039 = vpow2.f32 %v1862_v36  ;;  %v1857_v48 = vsub.f32 %v1837_v12, %v1848_v37 }
 0x844   :  { %2092 = vrot.lane.b32.xlu1 %v7427_v1, %s7205_s2 }
 0x845   :  { %v1864_v52 = vmul.f32 1.442695, %v1857_v48 }
 0x846   :  { %v1851_v39 = vpop.xlane.xlu1 %1850  ;;  %v1854_v40 = vpop.xlane.xlu0 %1853 }
 0x847   :  { %7041 = vpow2.f32 %v1864_v52  ;;  %v1858_v55 = vsub.f32 %v1838_v22, %v1851_v39  ;;  %v1859_v61 = vsub.f32 %v1839_v17, %v1854_v40 }
 0x849   :  { %v1866_v56 = vmul.f32 1.442695, %v1858_v55  ;;  %v1868_v2 = vmul.f32 1.442695, %v1859_v61 }
 0x84a   :  { %v1949_v41 = vpop.permute.xlu1 %1948  ;;  %v1901_v42 = vpop.permute.xlu0 %1900 }
 0x84b   :  { %v1954_v43 = vsel %vm721_vm6, %v1949_v41, 0  ;;  %v1906_v45 = vsel %vm721_vm6, %v1901_v42, 0  ;;  %7043 = vpow2.f32 %v1866_v56 }
 0x84c   :  { %6540 = vmatpush3.bf16.msra.mxu0 %v1906_v45  ;;  %6546 = vmatpush3.bf16.msra.mxu1 %v1954_v43  ;;  %7045 = vpow2.f32 %v1868_v2 }
 0x84d   :  { %6551 = vmatprep.subr.bf16.mxu0 %v7194_v18  ;;  %6557 = vmatprep.subr.bf16.mxu1 %v7194_v18 }
 0x84e   :  { %v1997_v5 = vpop.permute.xlu1 %1996 }
 0x84f   :  { %v2002_v10 = vsel %vm721_vm6, %v1997_v5, 0 }
 0x850   :  { %v7040_v50 = vpop.eup %7039 }
 0x851   :  { %v1873_v51 = vsel %vm654_vm5, %v7040_v50, 0.0 }
 0x852   :  { %1874 = vadd.xlane.f32.xlu0 %v1873_v51 }
 0x854   :  { %v7042_v53 = vpop.eup %7041 }
 0x855   :  { %v1876_v54 = vsel %vm654_vm5, %v7042_v53, 0.0 }
 0x858   :  { %v7044_v58 = vpop.eup %7043 }
 0x859   :  { %v1879_v63 = vsel %vm654_vm5, %v7044_v58, 0.0  ;;  %v7689_v3 = vpop.eup %7045 }
 0x85a   :  { %v1882_v4 = vsel %vm654_vm5, %v7689_v3, 0.0 }
 0x868   :  { %1877 = vadd.xlane.f32.xlu1 %v1876_v54  ;;  %2044 = vrot.lane.b32.xlu0 %v7422_v0, %s7205_s2 }
 0x879   :  { %2231 = vrot.lane.b32.xlu1 %v7416_v62, %s7206_s23 }
 0x887   :  { %1880 = vadd.xlane.f32.xlu0 %v1879_v63 }
 0x89d   :  { %2181 = vrot.lane.b32.xlu0 %v7405_v57, %s7206_s23  ;;  %1883 = vadd.xlane.f32.xlu1 %v1882_v4 }
 0x8a1   :  { %2179 = vrot.lane.b32.xlu0 %v7405_v57, %s8485_s24 }
 0x8a5   :  { %2229 = vrot.lane.b32.xlu0 %v7416_v62, %s8485_s24 }
 0x8a9   :  { %2279 = vrot.lane.b32.xlu0 %v7410_v60, %s8485_s24 }
 0x8ad   :  { %2329 = vrot.lane.b32.xlu0 %v7422_v0, %s8485_s24 }
 0x8ae   :  { %2281 = vrot.lane.b32.xlu1 %v7410_v60, %s7206_s23 }
 0x8b2   :  { %2331 = vrot.lane.b32.xlu1 %v7422_v0, %s7206_s23 }
 0x8b6   :  { %2381 = vrot.lane.b32.xlu1 %v7427_v1, %s7206_s23 }
 0x8ba   :  { %2379 = vrot.lane.b32.xlu1 %v7427_v1, %s8485_s24 }
 0x8bc   :  { %v1872_v6 = vpop.xlane.xlu1 %1871 }
 0x8bd   :  { %7047 = vrcp.f32 %v1872_v6 }
 0x8c0   :  { %v2093_v16 = vpop.permute.xlu1 %2092 }
 0x8c1   :  { %v2098_v24 = vsel %vm721_vm6, %v2093_v16, 0 }
 0x8ca   :  { %v7048_v7 = vpop.eup %7047 }
 0x8cb   :  { %v1890_v8 = vmul.f32 %v7048_v7, %v7038_v33 }
 0x8cd   :  { %v1895_v9 = vpack.c.bf16 %v1890_v8, %v1890_v8 }
 0x8cf   :  { %6542 = vmatmul.mubr.msk.bf16.vlgmr.msra.gmra.mxu0 %vm717_vm7, %v1895_v9 }
 0x8d0   :  { %6552 = vmatpush3.bf16.msra.mxu0 %v2002_v10  ;;  %6553 = vmatprep.mubr.msk.bf16.mxu0 %vm7195_vm2, %v7194_v18 }
 0x8d1   :  { %6563 = vmatprep.subr.bf16.mxu0 %v7194_v18 }
 0x8db   :  { %v1875_v11 = vpop.xlane.xlu0 %1874 }
 0x8dc   :  { %7049 = vrcp.f32 %v1875_v11 }
 0x8df   :  { %v2045_v14 = vpop.permute.xlu0 %2044 }
 0x8e0   :  { %v2050_v17 = vsel %vm721_vm6, %v2045_v14, 0 }
 0x8e9   :  { %v7050_v12 = vpop.eup %7049 }
 0x8ea   :  { %v1891_v13 = vmul.f32 %v7050_v12, %v7040_v50 }
 0x8ec   :  { %v1896_v15 = vpack.c.bf16 %v1891_v13, %v1891_v13 }
 0x8ee   :  { %6548 = vmatmul.mubr.msk.bf16.vlgmr.msra.gmra.mxu1 %vm717_vm7, %v1896_v15 }
 0x8ef   :  { %6558 = vmatpush3.bf16.msra.mxu1 %v2050_v17  ;;  %6559 = vmatprep.mubr.msk.bf16.mxu1 %vm7195_vm2, %v7194_v18 }
 0x8f0   :  { %6569 = vmatprep.subr.bf16.mxu1 %v7194_v18 }
 0x8f1   :  { %v1878_v19 = vpop.xlane.xlu1 %1877 }
 0x8f2   :  { %7051 = vrcp.f32 %v1878_v19 }
 0x8f5   :  { %v2232_v32 = vpop.permute.xlu1 %2231 }
 0x8f6   :  { %v2237_v50 = vsel %vm354_vm4, %v2232_v32, 0 }
 0x8ff   :  { %v7052_v20 = vpop.eup %7051 }
 0x900   :  { %v1892_v22 = vmul.f32 %v7052_v20, %v7042_v53 }
 0x902   :  { %v1897_v23 = vpack.c.bf16 %v1892_v22, %v1892_v22 }
 0x904   :  { %6554 = vmatmul.mubr.msk.bf16.vlgmr.msra.gmra.mxu0 %vm717_vm7, %v1897_v23 }
 0x905   :  { %6564 = vmatpush3.bf16.msra.mxu0 %v2098_v24  ;;  %6565 = vmatprep.mubr.msk.bf16.mxu0 %vm7195_vm2, %v7194_v18 }
 0x906   :  { %6575 = vmatprep.subr.bf16.mxu0 %v7194_v18 }
 0x910   :  { %v1881_v25 = vpop.xlane.xlu0 %1880 }
 0x911   :  { %7053 = vrcp.f32 %v1881_v25 }
 0x914   :  { %v2182_v28 = vpop.permute.xlu0 %2181 }
 0x915   :  { %v2187_v33 = vsel %vm354_vm4, %v2182_v28, 0 }
 0x918   :  { %v2180_v34 = vpop.permute.xlu0 %2179 }
 0x91c   :  { %v2230_v37 = vpop.permute.xlu0 %2229 }
 0x91e   :  { %v7054_v26 = vpop.eup %7053 }
 0x91f   :  { %v1893_v27 = vmul.f32 %v7054_v26, %v7044_v58 }
 0x920   :  { %v2280_v40 = vpop.permute.xlu0 %2279 }
 0x921   :  { %v1898_v29 = vpack.c.bf16 %v1893_v27, %v1893_v27 }
 0x923   :  { %6560 = vmatmul.mubr.msk.bf16.vlgmr.msra.gmra.mxu1 %vm717_vm7, %v1898_v29 }
 0x924   :  { %6570 = vmatpush3.bf16.xpose.msra.mxu1 %v2187_v33  ;;  %6571 = vmatprep.mubr.msk.bf16.mxu1 %vm7195_vm2, %v7194_v18  ;;  %v2330_v53 = vpop.permute.xlu0 %2329 }
 0x925   :  { %6581 = vmatprep.subr.bf16.mxu1 %v7194_v18 }
 0x926   :  { %v1884_v35 = vpop.xlane.xlu1 %1883 }
 0x927   :  { %7055 = vrcp.f32 %v1884_v35 }
 0x92a   :  { %v2282_v38 = vpop.permute.xlu1 %2281 }
 0x92b   :  { %v2287_v36 = vsel %vm354_vm4, %v2282_v38, 0  ;;  %6572 = vmatmul.mubr.msk.bf16.vlgmr.msra.gmra.mxu1 %vm354_vm4, %v2180_v34 }
 0x92c   :  { %6582 = vmatpush3.bf16.xpose.msra.mxu1 %v2287_v36  ;;  %6583 = vmatprep.mubr.msk.bf16.mxu1 %vm7195_vm2, %v7194_v18 }
 0x92d   :  { %6593 = vmatprep.subr.bf16.mxu1 %v7194_v18 }
 0x92e   :  { %v2332_v39 = vpop.permute.xlu1 %2331 }
 0x92f   :  { %v2337_v52 = vsel %vm354_vm4, %v2332_v39, 0 }
 0x932   :  { %v2382_v41 = vpop.permute.xlu1 %2381 }
 0x933   :  { %v2387_v42 = vsel %vm354_vm4, %v2382_v41, 0  ;;  %6584 = vmatmul.mubr.msk.bf16.vlgmr.msra.gmra.mxu1 %vm354_vm4, %v2280_v40 }
 0x934   :  { %v7056_v43 = vpop.eup %7055  ;;  %6594 = vmatpush3.bf16.xpose.msra.mxu1 %v2387_v42  ;;  %6595 = vmatprep.mubr.msk.bf16.mxu1 %vm7195_vm2, %v7194_v18 }
 0x935   :  { %v1894_v45 = vmul.f32 %v7056_v43, %v7689_v3  ;;  %6605 = vmatprep.subr.bf16.mxu1 %v7194_v18 }
 0x936   :  { %v2380_v51 = vpop.permute.xlu1 %2379 }
 0x937   :  { %v1899_v48 = vpack.c.bf16 %v1894_v45, %v1894_v45 }
 0x939   :  { %6566 = vmatmul.mubr.msk.bf16.vlgmr.msra.gmra.mxu0 %vm717_vm7, %v1899_v48 }
 0x93a   :  { %6576 = vmatpush3.bf16.xpose.msra.mxu0 %v2237_v50  ;;  %6577 = vmatprep.mubr.msk.bf16.mxu0 %vm7195_vm2, %v7194_v18 }
 0x93b   :  { %6596 = vmatmul.mubr.msk.bf16.vlgmr.msra.gmra.mxu1 %vm354_vm4, %v2380_v51  ;;  %6587 = vmatprep.subr.bf16.mxu0 %v7194_v18 }
 0x93c   :  { %6607 = vmatprep.mubr.msk.bf16.mxu1 %vm7195_vm2, %v7194_v18 }
 0x941   :  { %6578 = vmatmul.mubr.msk.bf16.vlgmr.msra.gmra.mxu0 %vm354_vm4, %v2230_v37 }
 0x942   :  { %6588 = vmatpush3.bf16.xpose.msra.mxu0 %v2337_v52  ;;  %6589 = vmatprep.mubr.msk.bf16.mxu0 %vm7195_vm2, %v7194_v18 }
 0x943   :  { %6599 = vmatprep.subr.bf16.mxu0 %v7194_v18 }
 0x949   :  { %6590 = vmatmul.mubr.msk.bf16.vlgmr.msra.gmra.mxu0 %vm354_vm4, %v2330_v53 }
 0x94a   :  { %6601 = vmatprep.mubr.msk.bf16.mxu0 %vm7195_vm2, %v7194_v18 }
 0x98f   :  { %v1942_v54 = vpop.f32.mrf.mxu0 }
 0x991   :  { %v6543_v55 = vpop.f32.mrf.mxu0 }
 0x993   :  { %v1945_v56 = vpop.f32.mrf.mxu0 }
 0x995   :  { %v6544_v58 = vpop.f32.mrf.mxu0 }
 0x9ae   :  { %v1990_v61 = vpop.f32.mrf.mxu1 }
 0x9af   :  { %v2145_v63 = vcombine.low %v1942_v54, %v1990_v61 }
 0x9b0   :  { %v6549_v2 = vpop.f32.mrf.mxu1 }
 0x9b1   :  { %v7759_v12 = vrot.slane %v2145_v63, %v7553_v21 }
 0x9b2   :  { %v1993_v3 = vpop.f32.mrf.mxu1 }
 0x9b4   :  { %v6550_v4 = vpop.f32.mrf.mxu1 }
 0x9c4   :  { %v2038_v5 = vpop.f32.mrf.mxu0 }
 0x9c6   :  { %v6555_v6 = vpop.f32.mrf.mxu0 }
 0x9c8   :  { %v2041_v7 = vpop.f32.mrf.mxu0 }
 0x9ca   :  { %v6556_v8 = vpop.f32.mrf.mxu0 }
 0x9e3   :  { %v2086_v9 = vpop.f32.mrf.mxu1 }
 0x9e4   :  { %v2146_v10 = vcombine.low %v2038_v5, %v2086_v9 }
 0x9e5   :  { %v6561_v11 = vpop.f32.mrf.mxu1 }
 0x9e6   :  { %v7762_v13 = vrot.slane %v2146_v10, %v7553_v21 }
 0x9e7   :  { %v2089_v14 = vpop.f32.mrf.mxu1 }
 0x9e8   :  { %v2161_v15 = vcombine.low %v7759_v12, %v7762_v13 }
 0x9e9   :  { %v6562_v16 = vpop.f32.mrf.mxu1 }
 0x9eb   :  { %v2223_v17 = vpop.f32.mrf.mxu1 }
 0x9ec   :  { %v2429_v19 = vmul.f32 0.35355338, %v2223_v17 }
 0x9ed   :  { %v6573_v20 = vpop.f32.mrf.mxu1 }
 0x9ee   :  { %v2434_v22 = vsel %vm654_vm5, %v2429_v19, -inf }
 0x9ef   :  { %2435 = vmax.xlane.f32.xlu0 %v2434_v22  ;;  %v2226_v23 = vpop.f32.mrf.mxu1 }
 0x9f1   :  { %v6574_v24 = vpop.f32.mrf.mxu1 }
 0x9f3   :  { %v2323_v25 = vpop.f32.mrf.mxu1 }
 0x9f4   :  { %v7767_v26 = vmul.f32 0.35355338, %v2323_v25 }
 0x9f5   :  { %v6585_v27 = vpop.f32.mrf.mxu1 }
 0x9f6   :  { %v2440_v28 = vsel %vm654_vm5, %v7767_v26, -inf }
 0x9f7   :  { %2441 = vmax.xlane.f32.xlu0 %v2440_v28  ;;  %v2326_v29 = vpop.f32.mrf.mxu1 }
 0x9f9   :  { %v7771_v32 = vpop.f32.mrf.mxu0  ;;  %v6586_v33 = vpop.f32.mrf.mxu1 }
 0x9fa   :  { %v2168_v47 = vrot.slane %v7771_v32, %v7553_v21 }
 0x9fb   :  { %v6567_v34 = vpop.f32.mrf.mxu0  ;;  %v2423_v35 = vpop.f32.mrf.mxu1 }
 0x9fc   :  { %v2433_v45 = vmul.f32 0.35355338, %v2423_v35 }
 0x9fd   :  { %v2137_v38 = vpop.f32.mrf.mxu0  ;;  %v6597_v36 = vpop.f32.mrf.mxu1 }
 0x9fe   :  { %v2446_v52 = vsel %vm654_vm5, %v2433_v45, -inf }
 0x9ff   :  { %v6568_v37 = vpop.f32.mrf.mxu0  ;;  %v2426_v39 = vpop.f32.mrf.mxu1 }
 0xa01   :  { %v2273_v40 = vpop.f32.mrf.mxu0  ;;  %v6598_v41 = vpop.f32.mrf.mxu1 }
 0xa02   :  { %v2430_v42 = vmul.f32 0.35355338, %v2273_v40 }
 0xa03   :  { %v6579_v43 = vpop.f32.mrf.mxu0 }
 0xa04   :  { %v2437_v48 = vsel %vm654_vm5, %v2430_v42, -inf }
 0xa05   :  { %2438 = vmax.xlane.f32.xlu1 %v2437_v48  ;;  %v2276_v50 = vpop.f32.mrf.mxu0 }
 0xa07   :  { %v6580_v51 = vpop.f32.mrf.mxu0 }
 0xa09   :  { %v2373_v53 = vpop.f32.mrf.mxu0  ;;  %2447 = vmax.xlane.f32.xlu1 %v2446_v52 }
 0xa0a   :  { %v2432_v54 = vmul.f32 0.35355338, %v2373_v53 }
 0xa0b   :  { %v6591_v55 = vpop.f32.mrf.mxu0 }
 0xa0c   :  { %v2443_v56 = vsel %vm654_vm5, %v2432_v54, -inf }
 0xa0d   :  { %v2376_v58 = vpop.f32.mrf.mxu0  ;;  %2444 = vmax.xlane.f32.xlu0 %v2443_v56 }
 0xa0f   :  { %v6592_v61 = vpop.f32.mrf.mxu0 }
 0xa1a   :  { %2494 = vrot.lane.b32.xlu1 %v7405_v57, %s8483_s25 }
 0xa1e   :  { %2590 = vrot.lane.b32.xlu1 %v7410_v60, %s8483_s25 }
 0xa78   :  { %v2436_v63 = vpop.xlane.xlu0 %2435 }
 0xa79   :  { %v2449_v2 = vsub.f32 %v2429_v19, %v2436_v63 }
 0xa7b   :  { %v2454_v3 = vmul.f32 1.442695, %v2449_v2 }
 0xa7d   :  { %7057 = vpow2.f32 %v2454_v3 }
 0xa80   :  { %v2442_v9 = vpop.xlane.xlu0 %2441 }
 0xa81   :  { %v2451_v22 = vsub.f32 %v7767_v26, %v2442_v9 }
 0xa83   :  { %v2458_v24 = vmul.f32 1.442695, %v2451_v22 }
 0xa8a   :  { %v7058_v4 = vpop.eup %7057 }
 0xa8b   :  { %v2464_v5 = vsel %vm654_vm5, %v7058_v4, 0.0 }
 0xa8c   :  { %2465 = vadd.xlane.f32.xlu0 %v2464_v5 }
 0xa8e   :  { %v2439_v6 = vpop.xlane.xlu1 %2438 }
 0xa8f   :  { %v2450_v7 = vsub.f32 %v2430_v42, %v2439_v6 }
 0xa91   :  { %v2456_v8 = vmul.f32 1.442695, %v2450_v7 }
 0xa92   :  { %v2448_v10 = vpop.xlane.xlu1 %2447 }
 0xa93   :  { %7059 = vpow2.f32 %v2456_v8  ;;  %v2453_v25 = vsub.f32 %v2433_v45, %v2448_v10 }
 0xa95   :  { %v2462_v27 = vmul.f32 1.442695, %v2453_v25 }
 0xa96   :  { %v2445_v11 = vpop.xlane.xlu0 %2444  ;;  %v2495_v14 = vpop.permute.xlu1 %2494 }
 0xa97   :  { %v2452_v57 = vsub.f32 %v2432_v54, %v2445_v11  ;;  %v2500_v16 = vsel %vm721_vm6, %v2495_v14, 0 }
 0xa98   :  { %6600 = vmatpush3.bf16.msra.mxu0 %v2500_v16 }
 0xa99   :  { %v2460_v60 = vmul.f32 1.442695, %v2452_v57  ;;  %6611 = vmatprep.subr.bf16.mxu0 %v7194_v18 }
 0xa9a   :  { %v2591_v29 = vpop.permute.xlu1 %2590 }
 0xa9b   :  { %7061 = vpow2.f32 %v2460_v60  ;;  %v2596_v59 = vsel %vm721_vm6, %v2591_v29, 0  ;;  %v6977_v60 = vld [vmem:[%s8463_s7 + $0x8] sm:$0xff]  }
 0xa9c   :  { %7063 = vpow2.f32 %v2458_v24 }
 0xa9d   :  { %7065 = vpow2.f32 %v2462_v27 }
 0xaa0   :  { %v7060_v17 = vpop.eup %7059 }
 0xaa1   :  { %v2467_v19 = vsel %vm654_vm5, %v7060_v17, 0.0 }
 0xaa2   :  { %2542 = vrot.lane.b32.xlu0 %v7416_v62, %s8483_s25  ;;  %2468 = vadd.xlane.f32.xlu1 %v2467_v19 }
 0xaa8   :  { %v7062_v20 = vpop.eup %7061 }
 0xaa9   :  { %v2473_v23 = vsel %vm654_vm5, %v7062_v20, 0.0  ;;  %v7790_v28 = vpop.eup %7063 }
 0xaaa   :  { %2474 = vadd.xlane.f32.xlu1 %v2473_v23  ;;  %v2470_v62 = vsel %vm654_vm5, %v7790_v28, 0.0  ;;  %v7798_v26 = vpop.eup %7065 }
 0xabb   :  { %2638 = vrot.lane.b32.xlu1 %v7422_v0, %s8483_s25  ;;  %v2476_v0 = vsel %vm654_vm5, %v7798_v26, 0.0 }
 0xabf   :  { %1575 = vrot.lane.b32.xlu1 %v1567_v49, %s8481_s3 }
 0xac1   :  { %2471 = vadd.xlane.f32.xlu0 %v2470_v62 }
 0xac3   :  { %2169 = vrot.lane.b32.xlu1 %v2161_v15, %s8477_s26 }
 0xac5   :  { %2477 = vadd.xlane.f32.xlu0 %v2476_v0 }
 0xadb   :  { %2686 = vrot.lane.b32.xlu0 %v7427_v1, %s8483_s25 }
 0xadf   :  { %1577 = vrot.lane.b32.xlu0 %v1574_v46, %s8481_s3 }
 0xae3   :  { %2171 = vrot.lane.b32.xlu0 %v2168_v47, %s8477_s26  ;;  %s7212_s26 = smov [#allocation3]  }
 0xae4   :  { %s6008_s4 = sshll.u32 %s7212_s26, 4  ;;  %s6009_s4 = int_to_ptr.vmem [resolvable:$true] %s6008_s4 }
 0xae5   :  { %p7176_p1 = scmp.lt.s32.totalorder %s6009_s4, %s6009_s4 }
 0xb15   :  { %v2466_v49 = vpop.xlane.xlu0 %2465 }
 0xb16   :  { %7067 = vrcp.f32 %v2466_v49 }
 0xb19   :  { %v2543_v12 = vpop.permute.xlu0 %2542 }
 0xb1a   :  { %v2548_v13 = vsel %vm721_vm6, %v2543_v12, 0 }
 0xb1b   :  { %6606 = vmatpush3.bf16.msra.mxu1 %v2548_v13 }
 0xb1c   :  { %6617 = vmatprep.subr.bf16.mxu1 %v7194_v18 }
 0xb23   :  { %v7068_v15 = vpop.eup %7067 }
 0xb24   :  { %v2484_v1 = vmul.f32 %v7068_v15, %v7058_v4 }
 0xb26   :  { %v2489_v33 = vpack.c.bf16 %v2484_v1, %v2484_v1 }
 0xb28   :  { %6602 = vmatmul.mubr.msk.bf16.vlgmr.msra.gmra.mxu0 %vm717_vm7, %v2489_v33  ;;  %v6077_v33 = vld [vmem:[%s8464_s8] ss:$0 sm:$0xff] }
 0xb29   :  { %6612 = vmatpush3.bf16.msra.mxu0 %v2596_v59  ;;  %6613 = vmatprep.mubr.msk.bf16.mxu0 %vm7195_vm2, %v7194_v18 }
 0xb2a   :  { %6623 = vmatprep.subr.bf16.mxu0 %v7194_v18 }
 0xb2b   :  { %v2469_v32 = vpop.xlane.xlu1 %2468 }
 0xb2c   :  { %7069 = vrcp.f32 %v2469_v32 }
 0xb33   :  { %v2475_v34 = vpop.xlane.xlu1 %2474 }
 0xb34   :  { %7071 = vrcp.f32 %v2475_v34 }
 0xb37   :  { %v2639_v35 = vpop.permute.xlu1 %2638 }
 0xb38   :  { %v2644_v40 = vsel %vm721_vm6, %v2639_v35, 0 }
 0xb39   :  { %v7070_v38 = vpop.eup %7069 }
 0xb3a   :  { %v2485_v36 = vmul.f32 %v7070_v38, %v7060_v17 }
 0xb3b   :  { %v1576_v37 = vpop.permute.xlu1 %1575 }
 0xb3c   :  { %1582 = vst.msk [vmem:[#allocation2] sm:$0xff] %vm1581_vm9, %v1576_v37  ;;  %v2490_v39 = vpack.c.bf16 %v2485_v36, %v2485_v36 }
 0xb3e   :  { %6608 = vmatmul.mubr.msk.bf16.vlgmr.msra.gmra.mxu1 %vm717_vm7, %v2490_v39 }
 0xb3f   :  { %6618 = vmatpush3.bf16.msra.mxu1 %v2644_v40  ;;  %v2170_v41 = vpop.permute.xlu1 %2169  ;;  %6619 = vmatprep.mubr.msk.bf16.mxu1 %vm7195_vm2, %v7194_v18 }
 0xb40   :  { %2176 = vst.msk [vmem:[#allocation2] sm:$0xff] %vm2175_vm10, %v2170_v41  ;;  %6629 = vmatprep.subr.bf16.mxu1 %v7194_v18 }
 0xb41   :  { %v7072_v42 = vpop.eup %7071 }
 0xb42   :  { %v2487_v43 = vmul.f32 %v7072_v42, %v7062_v20  ;;  %v6978_v20 = vld [vmem:[%s8463_s7] sm:$0xff]  }
 0xb44   :  { %v2492_v45 = vpack.c.bf16 %v2487_v43, %v2487_v43 }
 0xb46   :  { %6620 = vmatmul.mubr.msk.bf16.vlgmr.msra.gmra.mxu1 %vm717_vm7, %v2492_v45 }
 0xb47   :  { %6633 = vmatprep.mubr.msk.bf16.mxu1 %vm7195_vm2, %v7194_v18  ;;  %6630 = vmatpush3.bf16.msra.mxu1 %v6977_v60 }
 0xb48   :  { %6631 = vmatprep.subr.bf16.mxu1 %v7194_v18 }
 0xb4a   :  { %v2472_v48 = vpop.xlane.xlu0 %2471 }
 0xb4b   :  { %7073 = vrcp.f32 %v2472_v48  ;;  %6632 = vmatpush3.bf16.msra.mxu1 %v6978_v20  ;;  %v6984_v20 = vld [vmem:[%s8469_s13] sm:$0xff]  }
 0xb4c   :  { %6645 = vmatprep.subr.bf16.mxu1 %v7194_v18 }
 0xb4e   :  { %v2478_v50 = vpop.xlane.xlu0 %2477 }
 0xb4f   :  { %7075 = vrcp.f32 %v2478_v50 }
 0xb52   :  { %v2687_v51 = vpop.permute.xlu0 %2686 }
 0xb53   :  { %v2692_v61 = vsel %vm721_vm6, %v2687_v51, 0 }
 0xb56   :  { %v1578_v52 = vpop.permute.xlu0 %1577 }
 0xb57   :  { %1584 = vst.msk [vmem:[#allocation2 + $0x8] sm:$0x3] %vm1583_vm11, %v1578_v52 }
 0xb58   :  { %v7074_v53 = vpop.eup %7073 }
 0xb59   :  { %v2486_v54 = vmul.f32 %v7074_v53, %v7790_v28 }
 0xb5a   :  { %v2172_v55 = vpop.permute.xlu0 %2171 }
 0xb5b   :  { %2178 = vst.msk [vmem:[#allocation2 + $0x8] sm:$0x3] %vm2177_vm12, %v2172_v55  ;;  %v2491_v56 = vpack.c.bf16 %v2486_v54, %v2486_v54  ;;  %v6980_v55 = vld [vmem:[%s8467_s11] sm:$0xff]  }
 0xb5c   :  { %v7076_v58 = vpop.eup %7075 }
 0xb5d   :  { %6614 = vmatmul.mubr.msk.bf16.vlgmr.msra.gmra.mxu0 %vm717_vm7, %v2491_v56  ;;  %v2488_v63 = vmul.f32 %v7076_v58, %v7798_v26  ;;  %v6981_v56 = vld [vmem:[%s8469_s13 + $0x18] sm:$0xff]  }
 0xb5e   :  { %6624 = vmatpush3.bf16.msra.mxu0 %v2692_v61  ;;  %6625 = vmatprep.mubr.msk.bf16.mxu0 %vm7195_vm2, %v7194_v18 }
 0xb5f   :  { %6637 = vmatprep.subr.bf16.mxu0 %v7194_v18  ;;  %v2493_v2 = vpack.c.bf16 %v2488_v63, %v2488_v63 }
 0xb65   :  { %6626 = vmatmul.mubr.msk.bf16.vlgmr.msra.gmra.mxu0 %vm717_vm7, %v2493_v2 }
 0xb66   :  { %6641 = vmatprep.mubr.msk.bf16.mxu0 %vm7195_vm2, %v7194_v18 }
 0xbe8   :  { %v2536_v3 = vpop.f32.mrf.mxu0 }
 0xbea   :  { %v6603_v4 = vpop.f32.mrf.mxu0 }
 0xbec   :  { %v2539_v5 = vpop.f32.mrf.mxu0 }
 0xbee   :  { %v6604_v6 = vpop.f32.mrf.mxu0 }
 0xbfe   :  { %v2584_v7 = vpop.f32.mrf.mxu1 }
 0xbff   :  { %v2739_v17 = vcombine.low %v2536_v3, %v2584_v7  ;;  %v6081_v7 = vld [vmem:[%s8465_s9] ss:$0 sm:$0xff] }
 0xc00   :  { %v6609_v8 = vpop.f32.mrf.mxu1 }
 0xc01   :  { %v2747_v24 = vrot.slane %v2739_v17, %v7553_v21  ;;  %v6982_v17 = vld [vmem:[%s8469_s13 + $0x10] sm:$0xff]  }
 0xc02   :  { %v2587_v9 = vpop.f32.mrf.mxu1 }
 0xc04   :  { %v6610_v10 = vpop.f32.mrf.mxu1 }
 0xc06   :  { %v2680_v11 = vpop.f32.mrf.mxu1 }
 0xc08   :  { %v6621_v14 = vpop.f32.mrf.mxu1 }
 0xc0a   :  { %v2683_v57 = vpop.f32.mrf.mxu1 }
 0xc0c   :  { %v6622_v16 = vpop.f32.mrf.mxu1 }
 0xc1d   :  { %v2632_v19 = vpop.f32.mrf.mxu0 }
 0xc1e   :  { %v2740_v22 = vcombine.low %v2632_v19, %v2680_v11  ;;  %v6082_v11 = vld [vmem:[%s8466_s10] ss:$0 sm:$0xff]  ;;  %v6983_v19 = vld [vmem:[%s8469_s13 + $0x8] sm:$0xff]  }
 0xc1f   :  { %v6615_v23 = vpop.f32.mrf.mxu0 }
 0xc20   :  { %v2754_v25 = vrot.slane %v2740_v22, %v7553_v21  ;;  %v6083_v22 = vld [vmem:[%s8468_s12] ss:$0 sm:$0xff] }
 0xc21   :  { %v2635_v27 = vpop.f32.mrf.mxu0 }
 0xc22   :  { %v2755_v28 = vcombine.low %v2747_v24, %v2754_v25 }
 0xc23   :  { %v6616_v62 = vpop.f32.mrf.mxu0 }
 0xc24   :  { %2763 = vrot.lane.b32.xlu1 %v2755_v28, %s8479_s27 }
 0xc25   :  { %v2728_v26 = vpop.f32.mrf.mxu0 }
 0xc26   :  { %v2762_v0 = vrot.slane %v2728_v26, %v7553_v21 }
 0xc27   :  { %v6627_v46 = vpop.f32.mrf.mxu0 }
 0xc28   :  { %2765 = vrot.lane.b32.xlu0 %v2762_v0, %s8479_s27 }
 0xc29   :  { %v2731_v47 = vpop.f32.mrf.mxu0 }
 0xc2a   :  { %v6087_v47 = vld [vmem:[%s8470_s14] ss:$0 sm:$0xff] }
 0xc2b   :  { %v6628_v49 = vpop.f32.mrf.mxu0 }
 0xc96   :  { %v2764_v12 = vpop.permute.xlu1 %2763 }
 0xc97   :  { %2770 = vst.msk [vmem:[#allocation2] sm:$0xff] %vm2769_vm13, %v2764_v12 }
 0xc9a   :  { %v2766_v13 = vpop.permute.xlu0 %2765 }
 0xc9b   :  { %2772 = vst.msk [vmem:[#allocation2 + $0x8] sm:$0x3] %vm2771_vm14, %v2766_v13 }
 0xc9e   :  { %v2773_v15 = vld [vmem:[#allocation2] sm:$0xff] }
 0xca2   :  { %v2774_v1 = vld [vmem:[#allocation2 + $0x8] sm:$0x3] }
 0xca3   :  { %v2775_v29 = vpack.c.bf16 %v2774_v1, %v2773_v15 }
 0xca5   :  { %6634 = vmatmul.mubr.msk.bf16.vlgmr.msra.gmra.mxu1 %vm221_vm3, %v2775_v29 }
 0xca6   :  { %6653 = vmatprep.mubr.msk.bf16.mxu1 %vm7195_vm2, %v7194_v18  ;;  %6646 = vmatpush3.bf16.msra.mxu1 %v6981_v56 }
 0xca7   :  { %6647 = vmatprep.subr.bf16.mxu1 %v7194_v18 }
 0xcaa   :  { %6648 = vmatpush3.bf16.msra.mxu1 %v6982_v17 }
 0xcab   :  { %6649 = vmatprep.subr.bf16.mxu1 %v7194_v18 }
 0xcae   :  { %6650 = vmatpush3.bf16.msra.mxu1 %v6983_v19 }
 0xcaf   :  { %6651 = vmatprep.subr.bf16.mxu1 %v7194_v18 }
 0xcb2   :  { %6652 = vmatpush3.bf16.msra.mxu1 %v6984_v20 }
 0xcb3   :  { %6671 = vmatprep.subr.bf16.mxu1 %v7194_v18 }
 0xd65   :  { %v2836_v59 = vpop.f32.mrf.mxu1 }
 0xd66   :  { %v2837_v32 = vadd.f32 %v6077_v33, %v2836_v59 }
 0xd67   :  { %v6635_v34 = vpop.f32.mrf.mxu1 }
 0xd68   :  { %v2843_v35 = vadd.f32 %v2837_v32, %v7381_v30 }
 0xd69   :  { %v2839_v38 = vpop.f32.mrf.mxu1 }
 0xd6a   :  { %v2840_v36 = vadd.f32 %v6077_v33, %v2839_v38  ;;  %v2847_v37 = vsel %vm221_vm3, %v2843_v35, 0.0 }
 0xd6b   :  { %2848 = vadd.xlane.f32.xlu1 %v2847_v37  ;;  %v6636_v39 = vpop.f32.mrf.mxu1 }
 0xd6c   :  { %v2844_v40 = vadd.f32 %v2840_v36, %v7383_v31  ;;  %v6979_v31 = vld [vmem:[%s8467_s11 + $0x8] sm:$0xff]  }
 0xd6d   :  { %6638 = vmatpush3.bf16.msra.mxu0 %v6979_v31 }
 0xd6e   :  { %v2850_v41 = vsel %vm219_vm1, %v2844_v40, 0.0  ;;  %6639 = vmatprep.subr.bf16.mxu0 %v7194_v18 }
 0xd6f   :  { %2851 = vadd.xlane.f32.xlu0 %v2850_v41 }
 0xd71   :  { %6640 = vmatpush3.bf16.msra.mxu0 %v6980_v55 }
 0xd72   :  { %6657 = vmatprep.subr.bf16.mxu0 %v7194_v18 }
 0xdf4   :  { %v2849_v42 = vpop.xlane.xlu1 %2848 }
 0xdf5   :  { %v2854_v43 = vmul.f32 0.03125, %v2849_v42 }
 0xdf7   :  { %v2856_v45 = vsub.f32 %v2843_v35, %v2854_v43 }
 0xdf8   :  { %v2852_v48 = vpop.xlane.xlu0 %2851 }
 0xdf9   :  { %v2855_v50 = vmul.f32 0.03125, %v2852_v48  ;;  %v2858_v51 = vmul.f32 %v2856_v45, %v2856_v45  ;;  %v6985_v48 = vld [vmem:[%s8461_s5 + $0x18] sm:$0xff]  }
 0xdfb   :  { %v2857_v52 = vsub.f32 %v2844_v40, %v2855_v50  ;;  %v2860_v30 = vsel %vm221_vm3, %v2858_v51, 0.0  ;;  %v6986_v50 = vld [vmem:[%s8461_s5 + $0x10] sm:$0xff]  }
 0xdfc   :  { %2861 = vadd.xlane.f32.xlu0 %v2860_v30 }
 0xdfd   :  { %v2859_v53 = vmul.f32 %v2857_v52, %v2857_v52 }
 0xdff   :  { %v2863_v54 = vsel %vm219_vm1, %v2859_v53, 0.0 }
 0xe00   :  { %2864 = vadd.xlane.f32.xlu1 %v2863_v54 }
 0xe85   :  { %v2862_v58 = vpop.xlane.xlu0 %2861 }
 0xe86   :  { %v2866_v61 = vmul.f32 0.03125, %v2862_v58  ;;  %v6093_v58 = vld [vmem:[%s8471_s15] ss:$0 sm:$0xff] }
 0xe88   :  { %v2868_v63 = vadd.f32 1e-05, %v2866_v61 }
 0xe89   :  { %v2865_v2 = vpop.xlane.xlu1 %2864 }
 0xe8a   :  { %7077 = vrsqrt.f32 %v2868_v63  ;;  %v2867_v3 = vmul.f32 0.03125, %v2865_v2 }
 0xe8c   :  { %v2869_v4 = vadd.f32 1e-05, %v2867_v3  ;;  %v6094_v3 = vld [vmem:[%s8472_s16] ss:$0 sm:$0xff] }
 0xe8e   :  { %7079 = vrsqrt.f32 %v2869_v4 }
 0xe97   :  { %v7078_v5 = vpop.eup %7077 }
 0xe98   :  { %v2872_v6 = vmul.f32 %v7078_v5, %v2856_v45 }
 0xe9a   :  { %v2880_v10 = vmul.f32 %v6081_v7, %v2872_v6 }
 0xe9b   :  { %v7080_v8 = vpop.eup %7079 }
 0xe9c   :  { %v2873_v9 = vmul.f32 %v7080_v8, %v2857_v52  ;;  %v2888_v57 = vadd.f32 %v6082_v11, %v2880_v10 }
 0xe9e   :  { %v2881_v14 = vmul.f32 %v6081_v7, %v2873_v9  ;;  %v6100_v9 = vld [vmem:[%s8462_s6 + $0x1] ss:$0 sm:$0xff]  ;;  %s8495_s6 = smov 104  }
 0xea0   :  { %v2889_v16 = vadd.f32 %v6082_v11, %v2881_v14 }
 0xea2   :  { %v2890_v60 = vpack.c.bf16 %v2889_v16, %v2888_v57 }
 0xea4   :  { %6642 = vmatmul.mubr.msk.bf16.vlgmr.msra.gmra.mxu0 %vm221_vm3, %v2890_v60 }
 0xea5   :  { %6661 = vmatprep.mubr.msk.bf16.mxu0 %vm7195_vm2, %v7194_v18  ;;  %6658 = vmatpush3.bf16.msra.mxu0 %v6985_v48 }
 0xea6   :  { %6659 = vmatprep.subr.bf16.mxu0 %v7194_v18 }
 0xea9   :  { %6660 = vmatpush3.bf16.msra.mxu0 %v6986_v50 }
 0xeaa   :  { %6665 = vmatprep.subr.bf16.mxu0 %v7194_v18 }
 0xf64   :  { %v2951_v23 = vpop.f32.mrf.mxu0 }
 0xf65   :  { %v2952_v25 = vadd.f32 %v6083_v22, %v2951_v23 }
 0xf66   :  { %v6643_v24 = vpop.f32.mrf.mxu0 }
 0xf67   :  { %v2958_v26 = vmax.f32 %v2952_v25, 0.0 }
 0xf68   :  { %v2954_v27 = vpop.f32.mrf.mxu0 }
 0xf69   :  { %v2955_v28 = vadd.f32 %v6083_v22, %v2954_v27 }
 0xf6a   :  { %v6644_v62 = vpop.f32.mrf.mxu0 }
 0xf6b   :  { %v2959_v0 = vmax.f32 %v2955_v28, 0.0 }
 0xf6d   :  { %v2960_v46 = vpack.c.bf16 %v2959_v0, %v2958_v26 }
 0xf6f   :  { %6654 = vmatmul.mubr.msk.bf16.vlgmr.msra.gmra.mxu1 %vm174_vm0, %v2960_v46 }
 0xf70   :  { %6673 = vmatprep.mubr.msk.bf16.mxu1 %vm7195_vm2, %v7194_v18 }
0x102f   :  { %v3037_v49 = vpop.f32.mrf.mxu1 }
0x1030   :  { %v3038_v12 = vadd.f32 %v6087_v47, %v3037_v49 }
0x1031   :  { %v6655_v13 = vpop.f32.mrf.mxu1 }
0x1032   :  { %v3044_v15 = vadd.f32 %v3038_v12, %v2888_v57 }
0x1033   :  { %v3040_v1 = vpop.f32.mrf.mxu1 }
0x1034   :  { %v3041_v29 = vadd.f32 %v6087_v47, %v3040_v1  ;;  %v3048_v33 = vsel %vm221_vm3, %v3044_v15, 0.0 }
0x1035   :  { %3049 = vadd.xlane.f32.xlu0 %v3048_v33  ;;  %v6656_v59 = vpop.f32.mrf.mxu1 }
0x1036   :  { %v3045_v32 = vadd.f32 %v3041_v29, %v2889_v16 }
0x1038   :  { %v3051_v34 = vsel %vm219_vm1, %v3045_v32, 0.0 }
0x1039   :  { %3052 = vadd.xlane.f32.xlu1 %v3051_v34 }
0x10be   :  { %v3050_v35 = vpop.xlane.xlu0 %3049 }
0x10bf   :  { %v3054_v38 = vmul.f32 0.03125, %v3050_v35 }
0x10c1   :  { %v3056_v36 = vsub.f32 %v3044_v15, %v3054_v38 }
0x10c2   :  { %v3053_v37 = vpop.xlane.xlu1 %3052 }
0x10c3   :  { %v3055_v39 = vmul.f32 0.03125, %v3053_v37  ;;  %v3058_v40 = vmul.f32 %v3056_v36, %v3056_v36 }
0x10c5   :  { %v3057_v41 = vsub.f32 %v3045_v32, %v3055_v39  ;;  %v3060_v42 = vsel %vm221_vm3, %v3058_v40, 0.0 }
0x10c6   :  { %3061 = vadd.xlane.f32.xlu0 %v3060_v42 }
0x10c7   :  { %v3059_v43 = vmul.f32 %v3057_v41, %v3057_v41 }
0x10c9   :  { %v3063_v45 = vsel %vm219_vm1, %v3059_v43, 0.0 }
0x10ca   :  { %3064 = vadd.xlane.f32.xlu1 %v3063_v45 }
0x114f   :  { %v3062_v51 = vpop.xlane.xlu0 %3061 }
0x1150   :  { %v3066_v52 = vmul.f32 0.03125, %v3062_v51 }
0x1152   :  { %v3068_v30 = vadd.f32 1e-05, %v3066_v52 }
0x1153   :  { %v3065_v53 = vpop.xlane.xlu1 %3064 }
0x1154   :  { %7081 = vrsqrt.f32 %v3068_v30  ;;  %v3067_v54 = vmul.f32 0.03125, %v3065_v53 }
0x1156   :  { %v3069_v31 = vadd.f32 1e-05, %v3067_v54 }
0x1158   :  { %7083 = vrsqrt.f32 %v3069_v31 }
0x1161   :  { %v7082_v55 = vpop.eup %7081 }
0x1162   :  { %v3072_v56 = vmul.f32 %v7082_v55, %v3056_v36 }
0x1164   :  { %v3080_v2 = vmul.f32 %v6093_v58, %v3072_v56 }
0x1165   :  { %v7084_v61 = vpop.eup %7083 }
0x1166   :  { %v3073_v63 = vmul.f32 %v7084_v61, %v3057_v41  ;;  %v7930_v5 = vadd.f32 %v6094_v3, %v3080_v2 }
0x1168   :  { %v3081_v4 = vmul.f32 %v6093_v58, %v3073_v63 }
0x116a   :  { %v7932_v6 = vadd.f32 %v6094_v3, %v3081_v4 }
0x116c   :  { %v3090_v7 = vpack.c.bf16 %v7932_v6, %v7930_v5 }
0x116e   :  { %6662 = vmatmul.mubr.msk.bf16.vlgmr.msra.gmra.mxu0 %vm221_vm3, %v3090_v7 }
0x116f   :  { %6667 = vmatprep.mubr.msk.bf16.mxu0 %vm7195_vm2, %v7194_v18 }
0x122e   :  { %v3153_v8 = vpop.f32.mrf.mxu0 }
0x122f   :  { %v3154_v14 = vadd.f32 %v6100_v9, %v3153_v8 }
0x1230   :  { %v6663_v10 = vpop.f32.mrf.mxu0 }
0x1232   :  { %v3156_v11 = vpop.f32.mrf.mxu0 }
0x1233   :  { %v3157_v57 = vadd.f32 %v6100_v9, %v3156_v11 }
0x1234   :  { %v6664_v16 = vpop.f32.mrf.mxu0 }
0x1235   :  { %v3160_v60 = vpack.c.bf16 %v3157_v57, %v3154_v14  ;;  %v6104_v17 = vpack.c.bf16 %v3157_v57, %v3157_v57 }
0x1237   :  { %v3169_v19 = vrot.slane %v3160_v60, %v7396_v44  ;;  %v3176_v23 = vrot.slane %v6104_v17, %v7396_v44 }
0x1239   :  { %v3177_v20 = vcombine.high %v3169_v19, %v3169_v19  ;;  %v3184_v22 = vrot.slane %v3169_v19, %v7396_v44  ;;  %v3191_v0 = vrot.slane %v3176_v23, %v7396_v44 }
0x123b   :  { %v3198_v24 = vrot.slane %v3177_v20, %v7396_v44  ;;  %v3199_v25 = vcombine.high %v3184_v22, %v3184_v22  ;;  %v3207_v27 = vrot.slane %v3184_v22, %v7396_v44  ;;  %v3455_v15 = vrot.slane %v3191_v0, %v7396_v44 }
0x123d   :  { %v3200_v28 = vcombine.high %v3198_v24, %v3198_v24  ;;  %v7948_v62 = vrot.slane %v3207_v27, %v7396_v44  ;;  %v3269_v26 = vrot.slane %v3198_v24, %v7396_v44  ;;  %v3331_v47 = vrot.slane %v3199_v25, %v7396_v44 }
0x123e   :  { %v7973_v1 = vrot.slane %v3455_v15, %v7396_v44 }
0x123f   :  { %v7953_v46 = vrot.slane %v3269_v26, %v7396_v44  ;;  %v3393_v49 = vrot.slane %v3200_v28, %v7396_v44  ;;  %3215 = vrot.lane.b32.xlu0 %v7948_v62, %s7197_s29  ;;  %v7965_v13 = vrot.slane %v3331_v47, %v7396_v44 }
0x1241   :  { %v7960_v12 = vrot.slane %v3393_v49, %v7396_v44  ;;  %3277 = vrot.lane.b32.xlu1 %v7953_v46, %s7197_s29 }
0x1243   :  { %3401 = vrot.lane.b32.xlu0 %v7960_v12, %s7197_s29 }
0x1245   :  { %3339 = vrot.lane.b32.xlu1 %v7965_v13, %s7197_s29 }
0x1249   :  { %3463 = vrot.lane.b32.xlu1 %v7973_v1, %s7197_s29  ;;  %s8496_s29 = smov 40  }
0x12b1   :  { %v3216_v29 = vpop.permute.xlu0 %3215 }
0x12b2   :  { %v3221_v33 = vsel %vm354_vm4, %v3216_v29, 0 }
0x12b3   :  { %6666 = vmatpush3.bf16.xpose.msra.mxu0 %v3221_v33  ;;  %v3278_v59 = vpop.permute.xlu1 %3277 }
0x12b4   :  { %v3283_v32 = vsel %vm354_vm4, %v3278_v59, 0  ;;  %6677 = vmatprep.subr.bf16.mxu0 %v7194_v18 }
0x12b5   :  { %6672 = vmatpush3.bf16.xpose.msra.mxu1 %v3283_v32  ;;  %v3402_v35 = vpop.permute.xlu0 %3401 }
0x12b6   :  { %6683 = vmatprep.subr.bf16.mxu1 %v7194_v18  ;;  %v3407_v38 = vsel %vm354_vm4, %v3402_v35, 0 }
0x12b7   :  { %v3340_v34 = vpop.permute.xlu1 %3339 }
0x12b8   :  { %v3345_v44 = vsel %vm354_vm4, %v3340_v34, 0 }
0x12ba   :  { %6668 = vmatmul.mubr.msk.bf16.vlgmr.msra.gmra.mxu0 %vm354_vm4, %v3184_v22 }
0x12bb   :  { %6678 = vmatpush3.bf16.xpose.msra.mxu0 %v3345_v44  ;;  %6679 = vmatprep.mubr.msk.bf16.mxu0 %vm7195_vm2, %v7194_v18  ;;  %v3464_v36 = vpop.permute.xlu1 %3463 }
0x12bc   :  { %6674 = vmatmul.mubr.msk.bf16.vlgmr.msra.gmra.mxu1 %vm354_vm4, %v3198_v24  ;;  %6689 = vmatprep.subr.bf16.mxu0 %v7194_v18  ;;  %v3469_v37 = vsel %vm354_vm4, %v3464_v36, 0 }
0x12bd   :  { %6684 = vmatpush3.bf16.xpose.msra.mxu1 %v3407_v38  ;;  %6685 = vmatprep.mubr.msk.bf16.mxu1 %vm7195_vm2, %v7194_v18 }
0x12be   :  { %6695 = vmatprep.subr.bf16.mxu1 %v7194_v18 }
0x12c2   :  { %6680 = vmatmul.mubr.msk.bf16.vlgmr.msra.gmra.mxu0 %vm354_vm4, %v3199_v25 }
0x12c3   :  { %6690 = vmatpush3.bf16.xpose.msra.mxu0 %v3469_v37  ;;  %6691 = vmatprep.mubr.msk.bf16.mxu0 %vm7195_vm2, %v7194_v18 }
0x12c4   :  { %6686 = vmatmul.mubr.msk.bf16.vlgmr.msra.gmra.mxu1 %vm354_vm4, %v3200_v28  ;;  %6701 = vmatprep.subr.bf16.mxu0 %v7194_v18 }
0x12c5   :  { %6697 = vmatprep.mubr.msk.bf16.mxu1 %vm7195_vm2, %v7194_v18 }
0x12ca   :  { %6692 = vmatmul.mubr.msk.bf16.vlgmr.msra.gmra.mxu0 %vm354_vm4, %v3191_v0 }
0x12cb   :  { %6703 = vmatprep.mubr.msk.bf16.mxu0 %vm7195_vm2, %v7194_v18 }
0x137a   :  { %v3257_v39 = vpop.f32.mrf.mxu0 }
0x137b   :  { %v3511_v40 = vmul.f32 0.35355338, %v3257_v39 }
0x137c   :  { %v6669_v41 = vpop.f32.mrf.mxu0  ;;  %v3319_v42 = vpop.f32.mrf.mxu1 }
0x137d   :  { %v3512_v43 = vmul.f32 0.35355338, %v3319_v42  ;;  %v3516_v45 = vsel %vm654_vm5, %v3511_v40, -inf }
0x137e   :  { %3517 = vmax.xlane.f32.xlu0 %v3516_v45  ;;  %v3260_v48 = vpop.f32.mrf.mxu0  ;;  %v6675_v50 = vpop.f32.mrf.mxu1 }
0x137f   :  { %v3519_v51 = vsel %vm654_vm5, %v3512_v43, -inf }
0x1380   :  { %v6670_v52 = vpop.f32.mrf.mxu0  ;;  %3520 = vmax.xlane.f32.xlu1 %v3519_v51  ;;  %v3322_v30 = vpop.f32.mrf.mxu1 }
0x1382   :  { %v6676_v53 = vpop.f32.mrf.mxu1  ;;  %v3381_v54 = vpop.f32.mrf.mxu0 }
0x1383   :  { %v3513_v31 = vmul.f32 0.35355338, %v3381_v54 }
0x1384   :  { %v6681_v55 = vpop.f32.mrf.mxu0  ;;  %v3443_v56 = vpop.f32.mrf.mxu1 }
0x1385   :  { %v3514_v58 = vmul.f32 0.35355338, %v3443_v56  ;;  %v3522_v61 = vsel %vm654_vm5, %v3513_v31, -inf }
0x1386   :  { %3523 = vmax.xlane.f32.xlu0 %v3522_v61  ;;  %v3384_v63 = vpop.f32.mrf.mxu0  ;;  %v6687_v2 = vpop.f32.mrf.mxu1 }
0x1387   :  { %v3525_v7 = vsel %vm654_vm5, %v3514_v58, -inf }
0x1388   :  { %v6682_v3 = vpop.f32.mrf.mxu0  ;;  %v3446_v4 = vpop.f32.mrf.mxu1 }
0x138a   :  { %v3505_v8 = vpop.f32.mrf.mxu0  ;;  %3526 = vmax.xlane.f32.xlu0 %v3525_v7  ;;  %v6688_v9 = vpop.f32.mrf.mxu1 }
0x138b   :  { %v3515_v10 = vmul.f32 0.35355338, %v3505_v8 }
0x138c   :  { %v6693_v11 = vpop.f32.mrf.mxu0 }
0x138d   :  { %v3528_v14 = vsel %vm654_vm5, %v3515_v10, -inf }
0x138e   :  { %v3508_v57 = vpop.f32.mrf.mxu0  ;;  %3529 = vmax.xlane.f32.xlu1 %v3528_v14 }
0x1390   :  { %v6694_v16 = vpop.f32.mrf.mxu0 }
0x139f   :  { %3576 = vrot.lane.b32.xlu1 %v7948_v62, %s7198_s0 }
0x13a0   :  { %3624 = vrot.lane.b32.xlu0 %v7953_v46, %s7198_s0 }
0x13a3   :  { %3672 = vrot.lane.b32.xlu1 %v7965_v13, %s7198_s0 }
0x13a7   :  { %3720 = vrot.lane.b32.xlu1 %v7960_v12, %s7198_s0 }
0x1407   :  { %v3518_v60 = vpop.xlane.xlu0 %3517 }
0x1408   :  { %v3531_v17 = vsub.f32 %v3511_v40, %v3518_v60 }
0x1409   :  { %v3521_v19 = vpop.xlane.xlu1 %3520 }
0x140a   :  { %v3536_v20 = vmul.f32 1.442695, %v3531_v17  ;;  %v3532_v22 = vsub.f32 %v3512_v43, %v3521_v19 }
0x140c   :  { %7085 = vpow2.f32 %v3536_v20  ;;  %v3538_v23 = vmul.f32 1.442695, %v3532_v22 }
0x140e   :  { %7087 = vpow2.f32 %v3538_v23 }
0x140f   :  { %v3524_v24 = vpop.xlane.xlu0 %3523 }
0x1410   :  { %v3533_v25 = vsub.f32 %v3513_v31, %v3524_v24 }
0x1412   :  { %v3540_v27 = vmul.f32 1.442695, %v3533_v25 }
0x1413   :  { %v3527_v28 = vpop.xlane.xlu0 %3526 }
0x1414   :  { %7089 = vpow2.f32 %v3540_v27  ;;  %v3534_v26 = vsub.f32 %v3514_v58, %v3527_v28 }
0x1416   :  { %v3542_v0 = vmul.f32 1.442695, %v3534_v26 }
0x1417   :  { %v3530_v47 = vpop.xlane.xlu1 %3529  ;;  %v3625_v49 = vpop.permute.xlu0 %3624 }
0x1418   :  { %7091 = vpow2.f32 %v3542_v0  ;;  %v3630_v15 = vsel %vm721_vm6, %v3625_v49, 0  ;;  %v3535_v39 = vsub.f32 %v3515_v10, %v3530_v47 }
0x1419   :  { %v7086_v29 = vpop.eup %7085  ;;  %6702 = vmatpush3.bf16.msra.mxu0 %v3630_v15 }
0x141a   :  { %v3546_v33 = vsel %vm654_vm5, %v7086_v29, 0.0  ;;  %6713 = vmatprep.subr.bf16.mxu0 %v7194_v18  ;;  %v3544_v40 = vmul.f32 1.442695, %v3535_v39 }
0x141b   :  { %v7088_v59 = vpop.eup %7087  ;;  %v3577_v32 = vpop.permute.xlu1 %3576  ;;  %3547 = vadd.xlane.f32.xlu0 %v3546_v33 }
0x141c   :  { %v3582_v34 = vsel %vm721_vm6, %v3577_v32, 0  ;;  %v3549_v35 = vsel %vm654_vm5, %v7088_v59, 0.0  ;;  %7093 = vpow2.f32 %v3544_v40 }
0x141d   :  { %3550 = vadd.xlane.f32.xlu1 %v3549_v35  ;;  %6696 = vmatpush3.bf16.msra.mxu1 %v3582_v34 }
0x141e   :  { %6707 = vmatprep.subr.bf16.mxu1 %v7194_v18 }
0x141f   :  { %v3673_v43 = vpop.permute.xlu1 %3672 }
0x1420   :  { %v3678_v56 = vsel %vm721_vm6, %v3673_v43, 0 }
0x1421   :  { %v7090_v44 = vpop.eup %7089 }
0x1422   :  { %v3552_v38 = vsel %vm654_vm5, %v7090_v44, 0.0 }
0x1423   :  { %3553 = vadd.xlane.f32.xlu0 %v3552_v38  ;;  %v3721_v45 = vpop.permute.xlu1 %3720 }
0x1424   :  { %v3726_v61 = vsel %vm721_vm6, %v3721_v45, 0 }
0x1425   :  { %v7092_v36 = vpop.eup %7091 }
0x1426   :  { %v3555_v37 = vsel %vm654_vm5, %v7092_v36, 0.0 }
0x1427   :  { %3556 = vadd.xlane.f32.xlu1 %v3555_v37 }
0x1429   :  { %v8035_v41 = vpop.eup %7093 }
0x142a   :  { %v3558_v42 = vsel %vm654_vm5, %v8035_v41, 0.0 }
0x1438   :  { %3851 = vrot.lane.b32.xlu1 %v7948_v62, %s7199_s30 }
0x1439   :  { %3768 = vrot.lane.b32.xlu0 %v7973_v1, %s7198_s0  ;;  %s8497_s0 = smov 8  }
0x143c   :  { %3849 = vrot.lane.b32.xlu1 %v7948_v62, %s7200_s21 }
0x1440   :  { %3899 = vrot.lane.b32.xlu1 %v7953_v46, %s7200_s21 }
0x1444   :  { %3949 = vrot.lane.b32.xlu1 %v7965_v13, %s7200_s21 }
0x1448   :  { %3999 = vrot.lane.b32.xlu1 %v7960_v12, %s7200_s21 }
0x1458   :  { %3559 = vadd.xlane.f32.xlu0 %v3558_v42 }
0x146e   :  { %3901 = vrot.lane.b32.xlu0 %v7953_v46, %s7199_s30 }
0x1472   :  { %3951 = vrot.lane.b32.xlu0 %v7965_v13, %s7199_s30 }
0x1476   :  { %4001 = vrot.lane.b32.xlu0 %v7960_v12, %s7199_s30 }
0x147a   :  { %4051 = vrot.lane.b32.xlu0 %v7973_v1, %s7199_s30  ;;  %s8498_s30 = smov 16  }
0x147e   :  { %4049 = vrot.lane.b32.xlu0 %v7973_v1, %s7200_s21 }
0x14a4   :  { %v3548_v48 = vpop.xlane.xlu0 %3547 }
0x14a5   :  { %7095 = vrcp.f32 %v3548_v48 }
0x14a6   :  { %v3551_v50 = vpop.xlane.xlu1 %3550 }
0x14a7   :  { %7097 = vrcp.f32 %v3551_v50 }
0x14ac   :  { %v3554_v51 = vpop.xlane.xlu0 %3553 }
0x14ad   :  { %7099 = vrcp.f32 %v3554_v51 }
0x14b0   :  { %v3557_v52 = vpop.xlane.xlu1 %3556  ;;  %v3769_v3 = vpop.permute.xlu0 %3768 }
0x14b1   :  { %7101 = vrcp.f32 %v3557_v52  ;;  %v3774_v8 = vsel %vm721_vm6, %v3769_v3, 0 }
0x14b2   :  { %v7096_v30 = vpop.eup %7095 }
0x14b3   :  { %v3566_v53 = vmul.f32 %v7096_v30, %v7086_v29 }
0x14b4   :  { %v7098_v54 = vpop.eup %7097  ;;  %v3852_v10 = vpop.permute.xlu1 %3851 }
0x14b5   :  { %v3571_v31 = vpack.c.bf16 %v3566_v53, %v3566_v53  ;;  %v3567_v55 = vmul.f32 %v7098_v54, %v7088_v59  ;;  %v3857_v14 = vsel %vm354_vm4, %v3852_v10, 0 }
0x14b7   :  { %6698 = vmatmul.mubr.msk.bf16.vlgmr.msra.gmra.mxu1 %vm717_vm7, %v3571_v31  ;;  %v3572_v58 = vpack.c.bf16 %v3567_v55, %v3567_v55 }
0x14b8   :  { %6708 = vmatpush3.bf16.msra.mxu1 %v3678_v56  ;;  %6709 = vmatprep.mubr.msk.bf16.mxu1 %vm7195_vm2, %v7194_v18  ;;  %v3850_v57 = vpop.permute.xlu1 %3849 }
0x14b9   :  { %6704 = vmatmul.mubr.msk.bf16.vlgmr.msra.gmra.mxu0 %vm717_vm7, %v3572_v58  ;;  %6719 = vmatprep.subr.bf16.mxu1 %v7194_v18 }
0x14ba   :  { %v7100_v63 = vpop.eup %7099  ;;  %6714 = vmatpush3.bf16.msra.mxu0 %v3726_v61  ;;  %6715 = vmatprep.mubr.msk.bf16.mxu0 %vm7195_vm2, %v7194_v18 }
0x14bb   :  { %v3568_v2 = vmul.f32 %v7100_v63, %v7090_v44  ;;  %6725 = vmatprep.subr.bf16.mxu0 %v7194_v18 }
0x14bc   :  { %v3900_v20 = vpop.permute.xlu1 %3899 }
0x14bd   :  { %v3573_v4 = vpack.c.bf16 %v3568_v2, %v3568_v2 }
0x14be   :  { %v7102_v7 = vpop.eup %7101 }
0x14bf   :  { %6710 = vmatmul.mubr.msk.bf16.vlgmr.msra.gmra.mxu1 %vm717_vm7, %v3573_v4  ;;  %v3569_v9 = vmul.f32 %v7102_v7, %v7092_v36 }
0x14c0   :  { %6720 = vmatpush3.bf16.msra.mxu1 %v3774_v8  ;;  %6721 = vmatprep.mubr.msk.bf16.mxu1 %vm7195_vm2, %v7194_v18  ;;  %v3950_v25 = vpop.permute.xlu1 %3949 }
0x14c1   :  { %v3574_v11 = vpack.c.bf16 %v3569_v9, %v3569_v9  ;;  %6731 = vmatprep.subr.bf16.mxu1 %v7194_v18 }
0x14c3   :  { %6716 = vmatmul.mubr.msk.bf16.vlgmr.msra.gmra.mxu0 %vm717_vm7, %v3574_v11 }
0x14c4   :  { %6726 = vmatpush3.bf16.xpose.msra.mxu0 %v3857_v14  ;;  %6727 = vmatprep.mubr.msk.bf16.mxu0 %vm7195_vm2, %v7194_v18  ;;  %v4000_v15 = vpop.permute.xlu1 %3999 }
0x14c5   :  { %6737 = vmatprep.subr.bf16.mxu0 %v7194_v18 }
0x14cb   :  { %6728 = vmatmul.mubr.msk.bf16.vlgmr.msra.gmra.mxu0 %vm354_vm4, %v3850_v57 }
0x14cc   :  { %6739 = vmatprep.mubr.msk.bf16.mxu0 %vm7195_vm2, %v7194_v18 }
0x14e1   :  { %v3560_v16 = vpop.xlane.xlu0 %3559 }
0x14e2   :  { %7103 = vrcp.f32 %v3560_v16 }
0x14e5   :  { %v3902_v60 = vpop.permute.xlu0 %3901 }
0x14e6   :  { %v3907_v0 = vsel %vm354_vm4, %v3902_v60, 0 }
0x14e9   :  { %v3952_v17 = vpop.permute.xlu0 %3951 }
0x14ea   :  { %v3957_v19 = vsel %vm354_vm4, %v3952_v17, 0 }
0x14eb   :  { %6738 = vmatpush3.bf16.xpose.msra.mxu0 %v3957_v19 }
0x14ec   :  { %6749 = vmatprep.subr.bf16.mxu0 %v7194_v18 }
0x14ed   :  { %v4002_v22 = vpop.permute.xlu0 %4001 }
0x14ee   :  { %v4007_v49 = vsel %vm354_vm4, %v4002_v22, 0 }
0x14ef   :  { %v7104_v23 = vpop.eup %7103 }
0x14f0   :  { %v3570_v24 = vmul.f32 %v7104_v23, %v8035_v41 }
0x14f1   :  { %v4052_v27 = vpop.permute.xlu0 %4051 }
0x14f2   :  { %v3575_v28 = vpack.c.bf16 %v3570_v24, %v3570_v24  ;;  %v4057_v26 = vsel %vm354_vm4, %v4052_v27, 0  ;;  %6740 = vmatmul.mubr.msk.bf16.vlgmr.msra.gmra.mxu0 %vm354_vm4, %v3950_v25 }
0x14f3   :  { %6750 = vmatpush3.bf16.xpose.msra.mxu0 %v4057_v26  ;;  %6751 = vmatprep.mubr.msk.bf16.mxu0 %vm7195_vm2, %v7194_v18 }
0x14f4   :  { %6722 = vmatmul.mubr.msk.bf16.vlgmr.msra.gmra.mxu1 %vm717_vm7, %v3575_v28  ;;  %6761 = vmatprep.subr.bf16.mxu0 %v7194_v18 }
0x14f5   :  { %6732 = vmatpush3.bf16.xpose.msra.mxu1 %v3907_v0  ;;  %6733 = vmatprep.mubr.msk.bf16.mxu1 %vm7195_vm2, %v7194_v18  ;;  %v4050_v47 = vpop.permute.xlu0 %4049 }
0x14f6   :  { %6743 = vmatprep.subr.bf16.mxu1 %v7194_v18 }
0x14fa   :  { %6752 = vmatmul.mubr.msk.bf16.vlgmr.msra.gmra.mxu0 %vm354_vm4, %v4050_v47 }
0x14fb   :  { %6763 = vmatprep.mubr.msk.bf16.mxu0 %vm7195_vm2, %v7194_v18 }
0x14fc   :  { %6734 = vmatmul.mubr.msk.bf16.vlgmr.msra.gmra.mxu1 %vm354_vm4, %v3900_v20 }
0x14fd   :  { %6744 = vmatpush3.bf16.xpose.msra.mxu1 %v4007_v49  ;;  %6745 = vmatprep.mubr.msk.bf16.mxu1 %vm7195_vm2, %v7194_v18 }
0x14fe   :  { %6755 = vmatprep.subr.bf16.mxu1 %v7194_v18 }
0x1504   :  { %6746 = vmatmul.mubr.msk.bf16.vlgmr.msra.gmra.mxu1 %vm354_vm4, %v4000_v15 }
0x1505   :  { %6757 = vmatprep.mubr.msk.bf16.mxu1 %vm7195_vm2, %v7194_v18 }
0x1577   :  { %v3618_v29 = vpop.f32.mrf.mxu1 }
0x1579   :  { %v6699_v33 = vpop.f32.mrf.mxu1  ;;  %v3666_v59 = vpop.f32.mrf.mxu0 }
0x157a   :  { %v3821_v39 = vcombine.low %v3618_v29, %v3666_v59 }
0x157b   :  { %v3621_v32 = vpop.f32.mrf.mxu1  ;;  %v6705_v34 = vpop.f32.mrf.mxu0 }
0x157c   :  { %v3829_v48 = vrot.slane %v3821_v39, %v7553_v21 }
0x157d   :  { %v6700_v35 = vpop.f32.mrf.mxu1  ;;  %v3669_v44 = vpop.f32.mrf.mxu0 }
0x157f   :  { %v6706_v38 = vpop.f32.mrf.mxu0  ;;  %v3714_v36 = vpop.f32.mrf.mxu1 }
0x1581   :  { %v6711_v37 = vpop.f32.mrf.mxu1 }
0x1583   :  { %v3717_v40 = vpop.f32.mrf.mxu1  ;;  %v3762_v41 = vpop.f32.mrf.mxu0 }
0x1584   :  { %v3822_v42 = vcombine.low %v3714_v36, %v3762_v41 }
0x1585   :  { %v6712_v43 = vpop.f32.mrf.mxu1  ;;  %v6717_v45 = vpop.f32.mrf.mxu0 }
0x1586   :  { %v3836_v50 = vrot.slane %v3822_v42, %v7553_v21 }
0x1587   :  { %v3765_v51 = vpop.f32.mrf.mxu0 }
0x1588   :  { %v3837_v52 = vcombine.low %v3829_v48, %v3836_v50 }
0x1589   :  { %v6718_v30 = vpop.f32.mrf.mxu0 }
0x158a   :  { %3847 = vst.msk [vmem:[#allocation2] sm:$0xff] %vm354_vm4, %v3837_v52 }
0x158b   :  { %v3893_v53 = vpop.f32.mrf.mxu0 }
0x158c   :  { %v4099_v54 = vmul.f32 0.35355338, %v3893_v53 }
0x158d   :  { %v6729_v31 = vpop.f32.mrf.mxu0 }
0x158e   :  { %v4104_v55 = vsel %vm654_vm5, %v4099_v54, -inf }
0x158f   :  { %4105 = vmax.xlane.f32.xlu1 %v4104_v55  ;;  %v3896_v56 = vpop.f32.mrf.mxu0 }
0x1591   :  { %v6730_v58 = vpop.f32.mrf.mxu0 }
0x15b2   :  { %v3993_v61 = vpop.f32.mrf.mxu0 }
0x15b3   :  { %v4101_v19 = vmul.f32 0.35355338, %v3993_v61 }
0x15b4   :  { %v3810_v63 = vpop.f32.mrf.mxu1  ;;  %v6741_v2 = vpop.f32.mrf.mxu0 }
0x15b5   :  { %v3844_v3 = vrot.slane %v3810_v63, %v7553_v21  ;;  %v4110_v27 = vsel %vm654_vm5, %v4101_v19, -inf }
0x15b6   :  { %v6723_v4 = vpop.f32.mrf.mxu1  ;;  %v3996_v7 = vpop.f32.mrf.mxu0 }
0x15b7   :  { %3848 = vst.msk [vmem:[#allocation2 + $0x8] sm:$0x3] %vm989_vm8, %v3844_v3 }
0x15b8   :  { %v3813_v8 = vpop.f32.mrf.mxu1  ;;  %v6742_v9 = vpop.f32.mrf.mxu0 }
0x15ba   :  { %v6724_v10 = vpop.f32.mrf.mxu1  ;;  %v4093_v11 = vpop.f32.mrf.mxu0 }
0x15bb   :  { %v4103_v25 = vmul.f32 0.35355338, %v4093_v11 }
0x15bc   :  { %v3943_v14 = vpop.f32.mrf.mxu1  ;;  %v6753_v57 = vpop.f32.mrf.mxu0 }
0x15bd   :  { %v4100_v16 = vmul.f32 0.35355338, %v3943_v14  ;;  %v4116_v47 = vsel %vm654_vm5, %v4103_v25, -inf }
0x15be   :  { %v6735_v60 = vpop.f32.mrf.mxu1  ;;  %v4096_v17 = vpop.f32.mrf.mxu0 }
0x15bf   :  { %v4107_v20 = vsel %vm654_vm5, %v4100_v16, -inf }
0x15c0   :  { %v6754_v22 = vpop.f32.mrf.mxu0  ;;  %4108 = vmax.xlane.f32.xlu0 %v4107_v20  ;;  %v3946_v23 = vpop.f32.mrf.mxu1 }
0x15c2   :  { %v6736_v24 = vpop.f32.mrf.mxu1 }
0x15c4   :  { %4111 = vmax.xlane.f32.xlu0 %v4110_v27  ;;  %v4043_v28 = vpop.f32.mrf.mxu1 }
0x15c5   :  { %v4102_v26 = vmul.f32 0.35355338, %v4043_v28 }
0x15c6   :  { %v6747_v0 = vpop.f32.mrf.mxu1 }
0x15c7   :  { %v4113_v49 = vsel %vm654_vm5, %v4102_v26, -inf }
0x15c8   :  { %4117 = vmax.xlane.f32.xlu0 %v4116_v47  ;;  %4114 = vmax.xlane.f32.xlu1 %v4113_v49  ;;  %v4046_v15 = vpop.f32.mrf.mxu1 }
0x15ca   :  { %v6748_v29 = vpop.f32.mrf.mxu1 }
0x15d9   :  { %4212 = vrot.lane.b32.xlu1 %v7953_v46, %s7202_s1 }
0x15dd   :  { %4260 = vrot.lane.b32.xlu1 %v7965_v13, %s7202_s1 }
0x15de   :  { %4164 = vrot.lane.b32.xlu0 %v7948_v62, %s7202_s1 }
0x1618   :  { %v4106_v33 = vpop.xlane.xlu1 %4105 }
0x1619   :  { %v4119_v59 = vsub.f32 %v4099_v54, %v4106_v33 }
0x161b   :  { %v4124_v32 = vmul.f32 1.442695, %v4119_v59 }
0x161d   :  { %7105 = vpow2.f32 %v4124_v32 }
0x162a   :  { %v7106_v34 = vpop.eup %7105 }
0x162b   :  { %v4134_v35 = vsel %vm654_vm5, %v7106_v34, 0.0 }
0x162c   :  { %4135 = vadd.xlane.f32.xlu1 %v4134_v35 }
0x163d   :  { %4356 = vrot.lane.b32.xlu1 %v7973_v1, %s7202_s1 }
0x1649   :  { %v4109_v44 = vpop.xlane.xlu0 %4108 }
0x164a   :  { %v4120_v38 = vsub.f32 %v4100_v16, %v4109_v44 }
0x164c   :  { %v4126_v36 = vmul.f32 1.442695, %v4120_v38 }
0x164d   :  { %v4112_v37 = vpop.xlane.xlu0 %4111 }
0x164e   :  { %7107 = vpow2.f32 %v4126_v36  ;;  %v4121_v39 = vsub.f32 %v4101_v19, %v4112_v37 }
0x1650   :  { %v4128_v40 = vmul.f32 1.442695, %v4121_v39 }
0x1651   :  { %v4118_v41 = vpop.xlane.xlu0 %4117  ;;  %v4115_v42 = vpop.xlane.xlu1 %4114 }
0x1652   :  { %7109 = vpow2.f32 %v4128_v40  ;;  %v4122_v54 = vsub.f32 %v4102_v26, %v4115_v42  ;;  %v4123_v31 = vsub.f32 %v4103_v25, %v4118_v41 }
0x1654   :  { %v4130_v55 = vmul.f32 1.442695, %v4122_v54  ;;  %v4132_v56 = vmul.f32 1.442695, %v4123_v31 }
0x1655   :  { %v4165_v43 = vpop.permute.xlu0 %4164  ;;  %v4213_v45 = vpop.permute.xlu1 %4212 }
0x1656   :  { %v4170_v48 = vsel %vm721_vm6, %v4165_v43, 0  ;;  %v4218_v50 = vsel %vm721_vm6, %v4213_v45, 0  ;;  %7111 = vpow2.f32 %v4130_v55 }
0x1657   :  { %6756 = vmatpush3.bf16.msra.mxu1 %v4170_v48  ;;  %6762 = vmatpush3.bf16.msra.mxu0 %v4218_v50  ;;  %7113 = vpow2.f32 %v4132_v56 }
0x1658   :  { %6767 = vmatprep.subr.bf16.mxu1 %v7194_v18  ;;  %6773 = vmatprep.subr.bf16.mxu0 %v7194_v18 }
0x1659   :  { %v4261_v3 = vpop.permute.xlu1 %4260 }
0x165a   :  { %v4266_v10 = vsel %vm721_vm6, %v4261_v3, 0 }
0x165b   :  { %v7108_v51 = vpop.eup %7107 }
0x165c   :  { %v4137_v52 = vsel %vm654_vm5, %v7108_v51, 0.0 }
0x165d   :  { %4138 = vadd.xlane.f32.xlu0 %v4137_v52 }
0x165f   :  { %v7110_v30 = vpop.eup %7109 }
0x1660   :  { %v4140_v53 = vsel %vm654_vm5, %v7110_v30, 0.0 }
0x1661   :  { %4141 = vadd.xlane.f32.xlu1 %v4140_v53 }
0x1663   :  { %v7112_v58 = vpop.eup %7111 }
0x1664   :  { %v4143_v61 = vsel %vm654_vm5, %v7112_v58, 0.0  ;;  %v7114_v63 = vpop.eup %7113 }
0x1665   :  { %v4146_v2 = vsel %vm654_vm5, %v7114_v63, 0.0 }
0x1672   :  { %4493 = vrot.lane.b32.xlu1 %v7953_v46, %s7203_s20 }
0x1673   :  { %4308 = vrot.lane.b32.xlu0 %v7960_v12, %s7202_s1 }
0x1692   :  { %4144 = vadd.xlane.f32.xlu0 %v4143_v61 }
0x1696   :  { %4147 = vadd.xlane.f32.xlu1 %v4146_v2 }
0x16a7   :  { %4543 = vrot.lane.b32.xlu1 %v7965_v13, %s7203_s20 }
0x16a8   :  { %4443 = vrot.lane.b32.xlu0 %v7948_v62, %s7203_s20 }
0x16ab   :  { %4593 = vrot.lane.b32.xlu1 %v7960_v12, %s7203_s20 }
0x16ac   :  { %4441 = vrot.lane.b32.xlu0 %v7948_v62, %s7204_s22 }
0x16af   :  { %4643 = vrot.lane.b32.xlu1 %v7973_v1, %s7203_s20 }
0x16b0   :  { %4491 = vrot.lane.b32.xlu0 %v7953_v46, %s7204_s22 }
0x16b3   :  { %4641 = vrot.lane.b32.xlu1 %v7973_v1, %s7204_s22 }
0x16b4   :  { %4541 = vrot.lane.b32.xlu0 %v7965_v13, %s7204_s22 }
0x16b5   :  { %v4136_v4 = vpop.xlane.xlu1 %4135 }
0x16b6   :  { %7115 = vrcp.f32 %v4136_v4 }
0x16b8   :  { %4591 = vrot.lane.b32.xlu0 %v7960_v12, %s7204_s22 }
0x16b9   :  { %v4357_v11 = vpop.permute.xlu1 %4356 }
0x16ba   :  { %v4362_v25 = vsel %vm721_vm6, %v4357_v11, 0 }
0x16c3   :  { %v7116_v7 = vpop.eup %7115 }
0x16c4   :  { %v4154_v8 = vmul.f32 %v7116_v7, %v7106_v34 }
0x16c6   :  { %v4159_v9 = vpack.c.bf16 %v4154_v8, %v4154_v8 }
0x16c8   :  { %6758 = vmatmul.mubr.msk.bf16.vlgmr.msra.gmra.mxu1 %vm717_vm7, %v4159_v9 }
0x16c9   :  { %6768 = vmatpush3.bf16.msra.mxu1 %v4266_v10  ;;  %6769 = vmatprep.mubr.msk.bf16.mxu1 %vm7195_vm2, %v7194_v18 }
0x16ca   :  { %6779 = vmatprep.subr.bf16.mxu1 %v7194_v18 }
0x16e6   :  { %v4139_v14 = vpop.xlane.xlu0 %4138 }
0x16e7   :  { %7117 = vrcp.f32 %v4139_v14 }
0x16ea   :  { %v4142_v57 = vpop.xlane.xlu1 %4141  ;;  %v4309_v17 = vpop.permute.xlu0 %4308 }
0x16eb   :  { %7119 = vrcp.f32 %v4142_v57  ;;  %v4314_v22 = vsel %vm721_vm6, %v4309_v17, 0 }
0x16ee   :  { %v4494_v27 = vpop.permute.xlu1 %4493 }
0x16ef   :  { %v4499_v44 = vsel %vm354_vm4, %v4494_v27, 0 }
0x16f4   :  { %v7118_v16 = vpop.eup %7117 }
0x16f5   :  { %v4155_v60 = vmul.f32 %v7118_v16, %v7108_v51 }
0x16f7   :  { %v4160_v19 = vpack.c.bf16 %v4155_v60, %v4155_v60 }
0x16f8   :  { %v7120_v20 = vpop.eup %7119 }
0x16f9   :  { %v4156_v23 = vmul.f32 %v7120_v20, %v7110_v30  ;;  %6764 = vmatmul.mubr.msk.bf16.vlgmr.msra.gmra.mxu0 %vm717_vm7, %v4160_v19 }
0x16fa   :  { %6774 = vmatpush3.bf16.msra.mxu0 %v4314_v22  ;;  %6775 = vmatprep.mubr.msk.bf16.mxu0 %vm7195_vm2, %v7194_v18 }
0x16fb   :  { %v4161_v24 = vpack.c.bf16 %v4156_v23, %v4156_v23  ;;  %6785 = vmatprep.subr.bf16.mxu0 %v7194_v18 }
0x16fd   :  { %6770 = vmatmul.mubr.msk.bf16.vlgmr.msra.gmra.mxu1 %vm717_vm7, %v4161_v24 }
0x16fe   :  { %6780 = vmatpush3.bf16.msra.mxu1 %v4362_v25  ;;  %6781 = vmatprep.mubr.msk.bf16.mxu1 %vm7195_vm2, %v7194_v18 }
0x16ff   :  { %6791 = vmatprep.subr.bf16.mxu1 %v7194_v18 }
0x171b   :  { %v4145_v28 = vpop.xlane.xlu0 %4144 }
0x171c   :  { %7121 = vrcp.f32 %v4145_v28 }
0x171f   :  { %v4148_v26 = vpop.xlane.xlu1 %4147  ;;  %v4444_v47 = vpop.permute.xlu0 %4443 }
0x1720   :  { %7123 = vrcp.f32 %v4148_v26  ;;  %v4449_v33 = vsel %vm354_vm4, %v4444_v47, 0 }
0x1723   :  { %v4442_v32 = vpop.permute.xlu0 %4441  ;;  %v4544_v34 = vpop.permute.xlu1 %4543 }
0x1724   :  { %v4549_v37 = vsel %vm354_vm4, %v4544_v34, 0 }
0x1727   :  { %v4492_v38 = vpop.permute.xlu0 %4491  ;;  %v4594_v36 = vpop.permute.xlu1 %4593 }
0x1728   :  { %v4599_v39 = vsel %vm354_vm4, %v4594_v36, 0 }
0x1729   :  { %v7122_v0 = vpop.eup %7121 }
0x172a   :  { %v4157_v49 = vmul.f32 %v7122_v0, %v7112_v58 }
0x172b   :  { %v4542_v40 = vpop.permute.xlu0 %4541  ;;  %v4644_v41 = vpop.permute.xlu1 %4643 }
0x172c   :  { %v4162_v15 = vpack.c.bf16 %v4157_v49, %v4157_v49  ;;  %v4649_v42 = vsel %vm354_vm4, %v4644_v41, 0 }
0x172d   :  { %v7124_v29 = vpop.eup %7123 }
0x172e   :  { %v4158_v59 = vmul.f32 %v7124_v29, %v7114_v63  ;;  %6776 = vmatmul.mubr.msk.bf16.vlgmr.msra.gmra.mxu0 %vm717_vm7, %v4162_v15 }
0x172f   :  { %6786 = vmatpush3.bf16.xpose.msra.mxu0 %v4449_v33  ;;  %6787 = vmatprep.mubr.msk.bf16.mxu0 %vm7195_vm2, %v7194_v18  ;;  %v4592_v43 = vpop.permute.xlu0 %4591  ;;  %v4642_v45 = vpop.permute.xlu1 %4641 }
0x1730   :  { %v4163_v35 = vpack.c.bf16 %v4158_v59, %v4158_v59  ;;  %6797 = vmatprep.subr.bf16.mxu0 %v7194_v18 }
0x1732   :  { %6782 = vmatmul.mubr.msk.bf16.vlgmr.msra.gmra.mxu1 %vm717_vm7, %v4163_v35 }
0x1733   :  { %6792 = vmatpush3.bf16.xpose.msra.mxu1 %v4499_v44  ;;  %6793 = vmatprep.mubr.msk.bf16.mxu1 %vm7195_vm2, %v7194_v18 }
0x1734   :  { %6803 = vmatprep.subr.bf16.mxu1 %v7194_v18 }
0x1736   :  { %6788 = vmatmul.mubr.msk.bf16.vlgmr.msra.gmra.mxu0 %vm354_vm4, %v4442_v32 }
0x1737   :  { %6798 = vmatpush3.bf16.xpose.msra.mxu0 %v4549_v37  ;;  %6799 = vmatprep.mubr.msk.bf16.mxu0 %vm7195_vm2, %v7194_v18 }
0x1738   :  { %6809 = vmatprep.subr.bf16.mxu0 %v7194_v18 }
0x173a   :  { %6794 = vmatmul.mubr.msk.bf16.vlgmr.msra.gmra.mxu1 %vm354_vm4, %v4492_v38 }
0x173b   :  { %6804 = vmatpush3.bf16.xpose.msra.mxu1 %v4599_v39  ;;  %6805 = vmatprep.mubr.msk.bf16.mxu1 %vm7195_vm2, %v7194_v18 }
0x173c   :  { %6815 = vmatprep.subr.bf16.mxu1 %v7194_v18 }
0x173e   :  { %6800 = vmatmul.mubr.msk.bf16.vlgmr.msra.gmra.mxu0 %vm354_vm4, %v4542_v40 }
0x173f   :  { %6810 = vmatpush3.bf16.xpose.msra.mxu0 %v4649_v42  ;;  %6811 = vmatprep.mubr.msk.bf16.mxu0 %vm7195_vm2, %v7194_v18 }
0x1740   :  { %6821 = vmatprep.subr.bf16.mxu0 %v7194_v18 }
0x1742   :  { %6806 = vmatmul.mubr.msk.bf16.vlgmr.msra.gmra.mxu1 %vm354_vm4, %v4592_v43 }
0x1743   :  { %6817 = vmatprep.mubr.msk.bf16.mxu1 %vm7195_vm2, %v7194_v18 }
0x1746   :  { %6812 = vmatmul.mubr.msk.bf16.vlgmr.msra.gmra.mxu0 %vm354_vm4, %v4642_v45 }
0x1747   :  { %6823 = vmatprep.mubr.msk.bf16.mxu0 %vm7195_vm2, %v7194_v18 }
0x1788   :  { %v4206_v48 = vpop.f32.mrf.mxu1 }
0x178a   :  { %v6759_v50 = vpop.f32.mrf.mxu1 }
0x178c   :  { %v4209_v51 = vpop.f32.mrf.mxu1 }
0x178e   :  { %v6760_v52 = vpop.f32.mrf.mxu1 }
0x17b9   :  { %v4254_v30 = vpop.f32.mrf.mxu0 }
0x17ba   :  { %v4409_v53 = vcombine.low %v4206_v48, %v4254_v30 }
0x17bb   :  { %v6765_v54 = vpop.f32.mrf.mxu0 }
0x17bc   :  { %v8192_v7 = vrot.slane %v4409_v53, %v7553_v21 }
0x17bd   :  { %v4257_v31 = vpop.f32.mrf.mxu0  ;;  %v4302_v55 = vpop.f32.mrf.mxu1 }
0x17bf   :  { %v6766_v56 = vpop.f32.mrf.mxu0  ;;  %v6771_v58 = vpop.f32.mrf.mxu1 }
0x17c1   :  { %v4305_v61 = vpop.f32.mrf.mxu1 }
0x17c3   :  { %v6772_v63 = vpop.f32.mrf.mxu1 }
0x17ee   :  { %v4350_v2 = vpop.f32.mrf.mxu0 }
0x17ef   :  { %v4410_v3 = vcombine.low %v4302_v55, %v4350_v2 }
0x17f0   :  { %v6777_v4 = vpop.f32.mrf.mxu0 }
0x17f1   :  { %v8195_v8 = vrot.slane %v4410_v3, %v7553_v21 }
0x17f2   :  { %v4353_v9 = vpop.f32.mrf.mxu0  ;;  %v8197_v10 = vpop.f32.mrf.mxu1 }
0x17f3   :  { %v4425_v11 = vcombine.low %v8192_v7, %v8195_v8 }
0x17f4   :  { %v6778_v14 = vpop.f32.mrf.mxu0  ;;  %v6783_v57 = vpop.f32.mrf.mxu1 }
0x17f6   :  { %v4401_v16 = vpop.f32.mrf.mxu1  ;;  %v4485_v60 = vpop.f32.mrf.mxu0 }
0x17f7   :  { %v4691_v17 = vmul.f32 0.35355338, %v4485_v60 }
0x17f8   :  { %v6784_v19 = vpop.f32.mrf.mxu1  ;;  %v6789_v20 = vpop.f32.mrf.mxu0 }
0x17f9   :  { %v4696_v22 = vsel %vm654_vm5, %v4691_v17, -inf }
0x17fa   :  { %4697 = vmax.xlane.f32.xlu0 %v4696_v22  ;;  %v4488_v23 = vpop.f32.mrf.mxu0  ;;  %v4535_v24 = vpop.f32.mrf.mxu1 }
0x17fb   :  { %v4692_v25 = vmul.f32 0.35355338, %v4535_v24 }
0x17fc   :  { %v6790_v27 = vpop.f32.mrf.mxu0  ;;  %v6795_v28 = vpop.f32.mrf.mxu1 }
0x17fd   :  { %v4699_v26 = vsel %vm654_vm5, %v4692_v25, -inf }
0x17fe   :  { %v4585_v0 = vpop.f32.mrf.mxu0  ;;  %4700 = vmax.xlane.f32.xlu1 %v4699_v26  ;;  %v4538_v47 = vpop.f32.mrf.mxu1 }
0x17ff   :  { %v4693_v49 = vmul.f32 0.35355338, %v4585_v0 }
0x1800   :  { %v6796_v15 = vpop.f32.mrf.mxu1  ;;  %v6801_v29 = vpop.f32.mrf.mxu0 }
0x1801   :  { %v4702_v33 = vsel %vm654_vm5, %v4693_v49, -inf }
0x1802   :  { %4703 = vmax.xlane.f32.xlu0 %v4702_v33  ;;  %v4588_v59 = vpop.f32.mrf.mxu0  ;;  %v4635_v32 = vpop.f32.mrf.mxu1 }
0x1803   :  { %v4694_v34 = vmul.f32 0.35355338, %v4635_v32 }
0x1804   :  { %v6802_v35 = vpop.f32.mrf.mxu0  ;;  %v6807_v44 = vpop.f32.mrf.mxu1 }
0x1805   :  { %v4705_v38 = vsel %vm654_vm5, %v4694_v34, -inf }
0x1806   :  { %v4685_v36 = vpop.f32.mrf.mxu0  ;;  %4706 = vmax.xlane.f32.xlu0 %v4705_v38  ;;  %v4638_v37 = vpop.f32.mrf.mxu1 }
0x1807   :  { %v4695_v39 = vmul.f32 0.35355338, %v4685_v36 }
0x1808   :  { %v6808_v40 = vpop.f32.mrf.mxu1  ;;  %v6813_v41 = vpop.f32.mrf.mxu0 }
0x1809   :  { %v4708_v42 = vsel %vm654_vm5, %v4695_v39, -inf }
0x180a   :  { %v4688_v43 = vpop.f32.mrf.mxu0  ;;  %4709 = vmax.xlane.f32.xlu1 %v4708_v42 }
0x180c   :  { %v6814_v45 = vpop.f32.mrf.mxu0 }
0x181b   :  { %4756 = vrot.lane.b32.xlu1 %v7948_v62, %s7205_s2 }
0x181c   :  { %4804 = vrot.lane.b32.xlu0 %v7953_v46, %s7205_s2 }
0x181f   :  { %4852 = vrot.lane.b32.xlu1 %v7965_v13, %s7205_s2 }
0x1823   :  { %4900 = vrot.lane.b32.xlu1 %v7960_v12, %s7205_s2 }
0x1883   :  { %v4698_v48 = vpop.xlane.xlu0 %4697 }
0x1884   :  { %v4711_v50 = vsub.f32 %v4691_v17, %v4698_v48 }
0x1886   :  { %v4716_v51 = vmul.f32 1.442695, %v4711_v50 }
0x1887   :  { %v4701_v52 = vpop.xlane.xlu1 %4700 }
0x1888   :  { %7125 = vpow2.f32 %v4716_v51  ;;  %v4712_v30 = vsub.f32 %v4692_v25, %v4701_v52 }
0x188a   :  { %v4718_v53 = vmul.f32 1.442695, %v4712_v30 }
0x188b   :  { %v4704_v54 = vpop.xlane.xlu0 %4703 }
0x188c   :  { %7127 = vpow2.f32 %v4718_v53  ;;  %v4713_v31 = vsub.f32 %v4693_v49, %v4704_v54 }
0x188e   :  { %v4720_v55 = vmul.f32 1.442695, %v4713_v31 }
0x188f   :  { %v4707_v56 = vpop.xlane.xlu0 %4706 }
0x1890   :  { %7129 = vpow2.f32 %v4720_v55  ;;  %v4714_v58 = vsub.f32 %v4694_v34, %v4707_v56 }
0x1892   :  { %v4722_v61 = vmul.f32 1.442695, %v4714_v58 }
0x1893   :  { %v4710_v63 = vpop.xlane.xlu1 %4709  ;;  %v4805_v2 = vpop.permute.xlu0 %4804 }
0x1894   :  { %7131 = vpow2.f32 %v4722_v61  ;;  %v4810_v3 = vsel %vm721_vm6, %v4805_v2, 0  ;;  %v4715_v23 = vsub.f32 %v4695_v39, %v4710_v63 }
0x1895   :  { %v7126_v4 = vpop.eup %7125  ;;  %6822 = vmatpush3.bf16.msra.mxu0 %v4810_v3 }
0x1896   :  { %v4726_v9 = vsel %vm654_vm5, %v7126_v4, 0.0  ;;  %6833 = vmatprep.subr.bf16.mxu0 %v7194_v18  ;;  %v4724_v24 = vmul.f32 1.442695, %v4715_v23 }
0x1897   :  { %v4757_v14 = vpop.permute.xlu1 %4756  ;;  %4727 = vadd.xlane.f32.xlu0 %v4726_v9 }
0x1898   :  { %v4762_v57 = vsel %vm721_vm6, %v4757_v14, 0  ;;  %7133 = vpow2.f32 %v4724_v24 }
0x1899   :  { %v7128_v16 = vpop.eup %7127  ;;  %6816 = vmatpush3.bf16.msra.mxu1 %v4762_v57 }
0x189a   :  { %v4729_v60 = vsel %vm654_vm5, %v7128_v16, 0.0  ;;  %6827 = vmatprep.subr.bf16.mxu1 %v7194_v18 }
0x189b   :  { %4730 = vadd.xlane.f32.xlu1 %v4729_v60  ;;  %v4853_v28 = vpop.permute.xlu1 %4852 }
0x189c   :  { %v4858_v34 = vsel %vm721_vm6, %v4853_v28, 0 }
0x189d   :  { %v7130_v17 = vpop.eup %7129 }
0x189e   :  { %v4732_v19 = vsel %vm654_vm5, %v7130_v17, 0.0 }
0x189f   :  { %4733 = vadd.xlane.f32.xlu0 %v4732_v19  ;;  %v4901_v26 = vpop.permute.xlu1 %4900 }
0x18a0   :  { %v4906_v36 = vsel %vm721_vm6, %v4901_v26, 0 }
0x18a1   :  { %v7132_v20 = vpop.eup %7131 }
0x18a2   :  { %v4735_v22 = vsel %vm654_vm5, %v7132_v20, 0.0 }
0x18a3   :  { %4736 = vadd.xlane.f32.xlu1 %v4735_v22 }
0x18a5   :  { %v8234_v25 = vpop.eup %7133 }
0x18a6   :  { %v4738_v27 = vsel %vm654_vm5, %v8234_v25, 0.0 }
0x18b4   :  { %5035 = vrot.lane.b32.xlu1 %v7948_v62, %s7206_s23 }
0x18b5   :  { %4948 = vrot.lane.b32.xlu0 %v7973_v1, %s7205_s2 }
0x18b8   :  { %5033 = vrot.lane.b32.xlu1 %v7948_v62, %s8495_s6 }
0x18bc   :  { %5083 = vrot.lane.b32.xlu1 %v7953_v46, %s8495_s6 }
0x18c0   :  { %5133 = vrot.lane.b32.xlu1 %v7965_v13, %s8495_s6 }
0x18c4   :  { %5183 = vrot.lane.b32.xlu1 %v7960_v12, %s8495_s6 }
0x18d4   :  { %4739 = vadd.xlane.f32.xlu0 %v4738_v27 }
0x18ea   :  { %5085 = vrot.lane.b32.xlu0 %v7953_v46, %s7206_s23 }
0x18ee   :  { %5135 = vrot.lane.b32.xlu0 %v7965_v13, %s7206_s23 }
0x18f2   :  { %5185 = vrot.lane.b32.xlu0 %v7960_v12, %s7206_s23 }
0x18f6   :  { %5235 = vrot.lane.b32.xlu0 %v7973_v1, %s7206_s23 }
0x18fa   :  { %5233 = vrot.lane.b32.xlu0 %v7973_v1, %s8495_s6 }
0x1920   :  { %v4728_v0 = vpop.xlane.xlu0 %4727 }
0x1921   :  { %7135 = vrcp.f32 %v4728_v0 }
0x1924   :  { %v4731_v47 = vpop.xlane.xlu1 %4730 }
0x1925   :  { %7137 = vrcp.f32 %v4731_v47 }
0x1928   :  { %v4734_v49 = vpop.xlane.xlu0 %4733 }
0x1929   :  { %7139 = vrcp.f32 %v4734_v49 }
0x192c   :  { %v4737_v15 = vpop.xlane.xlu1 %4736  ;;  %v4949_v39 = vpop.permute.xlu0 %4948 }
0x192d   :  { %7141 = vrcp.f32 %v4737_v15  ;;  %v4954_v43 = vsel %vm721_vm6, %v4949_v39, 0 }
0x192e   :  { %v7136_v29 = vpop.eup %7135 }
0x192f   :  { %v4746_v33 = vmul.f32 %v7136_v29, %v7126_v4 }
0x1930   :  { %v5036_v45 = vpop.permute.xlu1 %5035 }
0x1931   :  { %v4751_v59 = vpack.c.bf16 %v4746_v33, %v4746_v33  ;;  %v5041_v50 = vsel %vm354_vm4, %v5036_v45, 0 }
0x1932   :  { %v7138_v32 = vpop.eup %7137 }
0x1933   :  { %v4747_v35 = vmul.f32 %v7138_v32, %v7128_v16  ;;  %6818 = vmatmul.mubr.msk.bf16.vlgmr.msra.gmra.mxu1 %vm717_vm7, %v4751_v59 }
0x1934   :  { %6828 = vmatpush3.bf16.msra.mxu1 %v4858_v34  ;;  %6829 = vmatprep.mubr.msk.bf16.mxu1 %vm7195_vm2, %v7194_v18  ;;  %v5034_v51 = vpop.permute.xlu1 %5033 }
0x1935   :  { %v4752_v44 = vpack.c.bf16 %v4747_v35, %v4747_v35  ;;  %6839 = vmatprep.subr.bf16.mxu1 %v7194_v18 }
0x1936   :  { %v7140_v38 = vpop.eup %7139 }
0x1937   :  { %v4748_v37 = vmul.f32 %v7140_v38, %v7130_v17  ;;  %6824 = vmatmul.mubr.msk.bf16.vlgmr.msra.gmra.mxu0 %vm717_vm7, %v4752_v44 }
0x1938   :  { %6834 = vmatpush3.bf16.msra.mxu0 %v4906_v36  ;;  %6835 = vmatprep.mubr.msk.bf16.mxu0 %vm7195_vm2, %v7194_v18  ;;  %v5084_v31 = vpop.permute.xlu1 %5083 }
0x1939   :  { %v4753_v40 = vpack.c.bf16 %v4748_v37, %v4748_v37  ;;  %6845 = vmatprep.subr.bf16.mxu0 %v7194_v18 }
0x193a   :  { %v7142_v41 = vpop.eup %7141 }
0x193b   :  { %v4749_v42 = vmul.f32 %v7142_v41, %v7132_v20  ;;  %6830 = vmatmul.mubr.msk.bf16.vlgmr.msra.gmra.mxu1 %vm717_vm7, %v4753_v40 }
0x193c   :  { %6840 = vmatpush3.bf16.msra.mxu1 %v4954_v43  ;;  %6841 = vmatprep.mubr.msk.bf16.mxu1 %vm7195_vm2, %v7194_v18  ;;  %v5134_v61 = vpop.permute.xlu1 %5133 }
0x193d   :  { %v4754_v48 = vpack.c.bf16 %v4749_v42, %v4749_v42  ;;  %6851 = vmatprep.subr.bf16.mxu1 %v7194_v18 }
0x193f   :  { %6836 = vmatmul.mubr.msk.bf16.vlgmr.msra.gmra.mxu0 %vm717_vm7, %v4754_v48 }
0x1940   :  { %6846 = vmatpush3.bf16.xpose.msra.mxu0 %v5041_v50  ;;  %6847 = vmatprep.mubr.msk.bf16.mxu0 %vm7195_vm2, %v7194_v18  ;;  %v5184_v57 = vpop.permute.xlu1 %5183 }
0x1941   :  { %6857 = vmatprep.subr.bf16.mxu0 %v7194_v18 }
0x1947   :  { %6848 = vmatmul.mubr.msk.bf16.vlgmr.msra.gmra.mxu0 %vm354_vm4, %v5034_v51 }
0x1948   :  { %6859 = vmatprep.mubr.msk.bf16.mxu0 %vm7195_vm2, %v7194_v18 }
0x195d   :  { %v4740_v52 = vpop.xlane.xlu0 %4739 }
0x195e   :  { %7143 = vrcp.f32 %v4740_v52 }
0x1961   :  { %v5086_v30 = vpop.permute.xlu0 %5085 }
0x1962   :  { %v5091_v4 = vsel %vm354_vm4, %v5086_v30, 0 }
0x1965   :  { %v5136_v53 = vpop.permute.xlu0 %5135 }
0x1966   :  { %v5141_v54 = vsel %vm354_vm4, %v5136_v53, 0 }
0x1967   :  { %6858 = vmatpush3.bf16.xpose.msra.mxu0 %v5141_v54 }
0x1968   :  { %6869 = vmatprep.subr.bf16.mxu0 %v7194_v18 }
0x1969   :  { %v5186_v55 = vpop.permute.xlu0 %5185 }
0x196a   :  { %v5191_v14 = vsel %vm354_vm4, %v5186_v55, 0 }
0x196b   :  { %v7144_v56 = vpop.eup %7143 }
0x196c   :  { %v4750_v58 = vmul.f32 %v7144_v56, %v8234_v25 }
0x196d   :  { %v5236_v63 = vpop.permute.xlu0 %5235 }
0x196e   :  { %v4755_v2 = vpack.c.bf16 %v4750_v58, %v4750_v58  ;;  %v5241_v3 = vsel %vm354_vm4, %v5236_v63, 0  ;;  %6860 = vmatmul.mubr.msk.bf16.vlgmr.msra.gmra.mxu0 %vm354_vm4, %v5134_v61 }
0x196f   :  { %6870 = vmatpush3.bf16.xpose.msra.mxu0 %v5241_v3  ;;  %6871 = vmatprep.mubr.msk.bf16.mxu0 %vm7195_vm2, %v7194_v18 }
0x1970   :  { %6842 = vmatmul.mubr.msk.bf16.vlgmr.msra.gmra.mxu1 %vm717_vm7, %v4755_v2  ;;  %6881 = vmatprep.subr.bf16.mxu0 %v7194_v18 }
0x1971   :  { %6852 = vmatpush3.bf16.xpose.msra.mxu1 %v5091_v4  ;;  %6853 = vmatprep.mubr.msk.bf16.mxu1 %vm7195_vm2, %v7194_v18  ;;  %v5234_v9 = vpop.permute.xlu0 %5233 }
0x1972   :  { %6863 = vmatprep.subr.bf16.mxu1 %v7194_v18 }
0x1976   :  { %6872 = vmatmul.mubr.msk.bf16.vlgmr.msra.gmra.mxu0 %vm354_vm4, %v5234_v9 }
0x1977   :  { %6883 = vmatprep.mubr.msk.bf16.mxu0 %vm7195_vm2, %v7194_v18 }
0x1978   :  { %6854 = vmatmul.mubr.msk.bf16.vlgmr.msra.gmra.mxu1 %vm354_vm4, %v5084_v31 }
0x1979   :  { %6864 = vmatpush3.bf16.xpose.msra.mxu1 %v5191_v14  ;;  %6865 = vmatprep.mubr.msk.bf16.mxu1 %vm7195_vm2, %v7194_v18 }
0x197a   :  { %6875 = vmatprep.subr.bf16.mxu1 %v7194_v18 }
0x1980   :  { %6866 = vmatmul.mubr.msk.bf16.vlgmr.msra.gmra.mxu1 %vm354_vm4, %v5184_v57 }
0x1981   :  { %6877 = vmatprep.mubr.msk.bf16.mxu1 %vm7195_vm2, %v7194_v18 }
0x19f3   :  { %v4798_v16 = vpop.f32.mrf.mxu1 }
0x19f5   :  { %v6819_v60 = vpop.f32.mrf.mxu1 }
0x19f7   :  { %v4801_v17 = vpop.f32.mrf.mxu1  ;;  %v4846_v19 = vpop.f32.mrf.mxu0 }
0x19f8   :  { %v5001_v20 = vcombine.low %v4798_v16, %v4846_v19 }
0x19f9   :  { %v6820_v22 = vpop.f32.mrf.mxu1  ;;  %v6825_v23 = vpop.f32.mrf.mxu0 }
0x19fa   :  { %v8296_v29 = vrot.slane %v5001_v20, %v7553_v21 }
0x19fb   :  { %v4849_v24 = vpop.f32.mrf.mxu0  ;;  %v4894_v25 = vpop.f32.mrf.mxu1 }
0x19fd   :  { %v6826_v27 = vpop.f32.mrf.mxu0  ;;  %v6831_v28 = vpop.f32.mrf.mxu1 }
0x19ff   :  { %v4897_v26 = vpop.f32.mrf.mxu1  ;;  %v4942_v0 = vpop.f32.mrf.mxu0 }
0x1a00   :  { %v5002_v47 = vcombine.low %v4894_v25, %v4942_v0 }
0x1a01   :  { %v6832_v49 = vpop.f32.mrf.mxu1  ;;  %v6837_v15 = vpop.f32.mrf.mxu0 }
0x1a02   :  { %v8299_v33 = vrot.slane %v5002_v47, %v7553_v21 }
0x1a03   :  { %v4945_v59 = vpop.f32.mrf.mxu0 }
0x1a04   :  { %v5017_v32 = vcombine.low %v8296_v29, %v8299_v33 }
0x1a05   :  { %v6838_v34 = vpop.f32.mrf.mxu0 }
0x1a07   :  { %v5077_v35 = vpop.f32.mrf.mxu0 }
0x1a08   :  { %v5283_v44 = vmul.f32 0.35355338, %v5077_v35 }
0x1a09   :  { %v6849_v38 = vpop.f32.mrf.mxu0 }
0x1a0a   :  { %v5288_v36 = vsel %vm654_vm5, %v5283_v44, -inf }
0x1a0b   :  { %5289 = vmax.xlane.f32.xlu1 %v5288_v36  ;;  %v5080_v37 = vpop.f32.mrf.mxu0 }
0x1a0d   :  { %v6850_v39 = vpop.f32.mrf.mxu0 }
0x1a2e   :  { %v5177_v40 = vpop.f32.mrf.mxu0 }
0x1a2f   :  { %v5285_v56 = vmul.f32 0.35355338, %v5177_v40 }
0x1a30   :  { %v8304_v41 = vpop.f32.mrf.mxu1  ;;  %v6861_v42 = vpop.f32.mrf.mxu0 }
0x1a31   :  { %v5294_v4 = vsel %vm654_vm5, %v5285_v56, -inf }
0x1a32   :  { %v6843_v43 = vpop.f32.mrf.mxu1  ;;  %v5180_v45 = vpop.f32.mrf.mxu0 }
0x1a34   :  { %v4993_v48 = vpop.f32.mrf.mxu1  ;;  %v6862_v50 = vpop.f32.mrf.mxu0 }
0x1a36   :  { %v6844_v51 = vpop.f32.mrf.mxu1  ;;  %v5277_v52 = vpop.f32.mrf.mxu0 }
0x1a37   :  { %v5287_v3 = vmul.f32 0.35355338, %v5277_v52  ;;  %v4432_v51 = vrot.slane %v8197_v10, %v7553_v21  ;;  %v5024_v52 = vrot.slane %v8304_v41, %v7553_v21 }
0x1a38   :  { %v5127_v30 = vpop.f32.mrf.mxu1  ;;  %v6873_v53 = vpop.f32.mrf.mxu0 }
0x1a39   :  { %v5284_v54 = vmul.f32 0.35355338, %v5127_v30  ;;  %v5300_v16 = vsel %vm654_vm5, %v5287_v3, -inf }
0x1a3a   :  { %v6855_v31 = vpop.f32.mrf.mxu1  ;;  %v5280_v55 = vpop.f32.mrf.mxu0 }
0x1a3b   :  { %v5291_v58 = vsel %vm654_vm5, %v5284_v54, -inf }
0x1a3c   :  { %v6874_v61 = vpop.f32.mrf.mxu0  ;;  %5292 = vmax.xlane.f32.xlu0 %v5291_v58  ;;  %v5130_v63 = vpop.f32.mrf.mxu1 }
0x1a3e   :  { %v6856_v2 = vpop.f32.mrf.mxu1 }
0x1a40   :  { %5295 = vmax.xlane.f32.xlu0 %v5294_v4  ;;  %v5227_v9 = vpop.f32.mrf.mxu1 }
0x1a41   :  { %v5286_v14 = vmul.f32 0.35355338, %v5227_v9 }
0x1a42   :  { %v6867_v57 = vpop.f32.mrf.mxu1 }
0x1a43   :  { %v5297_v60 = vsel %vm654_vm5, %v5286_v14, -inf }
0x1a44   :  { %5301 = vmax.xlane.f32.xlu0 %v5300_v16  ;;  %5298 = vmax.xlane.f32.xlu1 %v5297_v60  ;;  %v5230_v17 = vpop.f32.mrf.mxu1 }
0x1a46   :  { %v6868_v19 = vpop.f32.mrf.mxu1 }
0x1a55   :  { %5396 = vrot.lane.b32.xlu1 %v7953_v46, %s8496_s29 }
0x1a59   :  { %5444 = vrot.lane.b32.xlu1 %v7965_v13, %s8496_s29 }
0x1a5a   :  { %5348 = vrot.lane.b32.xlu0 %v7948_v62, %s8496_s29 }
0x1a94   :  { %v5290_v20 = vpop.xlane.xlu1 %5289 }
0x1a95   :  { %v5303_v22 = vsub.f32 %v5283_v44, %v5290_v20 }
0x1a97   :  { %v5308_v23 = vmul.f32 1.442695, %v5303_v22 }
0x1a99   :  { %7145 = vpow2.f32 %v5308_v23 }
0x1aa6   :  { %v7146_v24 = vpop.eup %7145 }
0x1aa7   :  { %v5318_v25 = vsel %vm654_vm5, %v7146_v24, 0.0 }
0x1aa8   :  { %5319 = vadd.xlane.f32.xlu1 %v5318_v25 }
0x1ac5   :  { %v5293_v27 = vpop.xlane.xlu0 %5292 }
0x1ac6   :  { %v5304_v28 = vsub.f32 %v5284_v54, %v5293_v27 }
0x1ac8   :  { %v5310_v26 = vmul.f32 1.442695, %v5304_v28 }
0x1ac9   :  { %v5296_v0 = vpop.xlane.xlu0 %5295 }
0x1aca   :  { %7147 = vpow2.f32 %v5310_v26  ;;  %v5305_v46 = vsub.f32 %v5285_v56, %v5296_v0  ;;  %v6987_v26 = vld [vmem:[%s8463_s7 + $0x18] sm:$0xff]  }
0x1acc   :  { %v5312_v47 = vmul.f32 1.442695, %v5305_v46 }
0x1acd   :  { %v5302_v49 = vpop.xlane.xlu0 %5301  ;;  %v5299_v13 = vpop.xlane.xlu1 %5298 }
0x1ace   :  { %7149 = vpow2.f32 %v5312_v47  ;;  %v5307_v15 = vsub.f32 %v5287_v3, %v5302_v49  ;;  %v5306_v62 = vsub.f32 %v5286_v14, %v5299_v13  ;;  %v6988_v47 = vld [vmem:[%s8463_s7 + $0x10] sm:$0xff]   ;;  %s8499_s7 = smov 24  }
0x1ad0   :  { %v5316_v59 = vmul.f32 1.442695, %v5307_v15  ;;  %v5314_v34 = vmul.f32 1.442695, %v5306_v62 }
0x1ad1   :  { %v5349_v35 = vpop.permute.xlu0 %5348  ;;  %v5397_v44 = vpop.permute.xlu1 %5396 }
0x1ad2   :  { %7151 = vpow2.f32 %v5316_v59  ;;  %v5354_v38 = vsel %vm721_vm6, %v5349_v35, 0  ;;  %v5402_v36 = vsel %vm721_vm6, %v5397_v44, 0 }
0x1ad3   :  { %7153 = vpow2.f32 %v5314_v34  ;;  %6876 = vmatpush3.bf16.msra.mxu1 %v5354_v38  ;;  %6882 = vmatpush3.bf16.msra.mxu0 %v5402_v36 }
0x1ad4   :  { %6887 = vmatprep.subr.bf16.mxu1 %v7194_v18  ;;  %6893 = vmatprep.subr.bf16.mxu0 %v7194_v18 }
0x1ad7   :  { %v7148_v37 = vpop.eup %7147 }
0x1ad8   :  { %v5321_v39 = vsel %vm654_vm5, %v7148_v37, 0.0 }
0x1ad9   :  { %5322 = vadd.xlane.f32.xlu0 %v5321_v39 }
0x1adb   :  { %v7150_v40 = vpop.eup %7149 }
0x1adc   :  { %v5324_v42 = vsel %vm654_vm5, %v7150_v40, 0.0 }
0x1add   :  { %5325 = vadd.xlane.f32.xlu1 %v5324_v42 }
0x1adf   :  { %v7152_v43 = vpop.eup %7151 }
0x1ae0   :  { %v7154_v45 = vpop.eup %7153  ;;  %v5330_v48 = vsel %vm654_vm5, %v7152_v43, 0.0 }
0x1ae1   :  { %5331 = vadd.xlane.f32.xlu1 %v5330_v48  ;;  %v5327_v50 = vsel %vm654_vm5, %v7154_v45, 0.0 }
0x1ae2   :  { %5328 = vadd.xlane.f32.xlu0 %v5327_v50 }
0x1af2   :  { %5540 = vrot.lane.b32.xlu1 %v7973_v1, %s8496_s29  ;;  %v5445_v1 = vpop.permute.xlu1 %5444 }
0x1af6   :  { %4435 = vrot.lane.b32.xlu1 %v4432_v51, %s8497_s0 }
0x1af8   :  { %5492 = vrot.lane.b32.xlu0 %v7960_v12, %s8496_s29  ;;  %v5450_v12 = vsel %vm721_vm6, %v5445_v1, 0 }
0x1afa   :  { %5027 = vrot.lane.b32.xlu1 %v5024_v52, %s8498_s30 }
0x1afc   :  { %4433 = vrot.lane.b32.xlu0 %v4425_v11, %s8497_s0 }
0x1b00   :  { %5025 = vrot.lane.b32.xlu0 %v5017_v32, %s8498_s30 }
0x1b31   :  { %v5320_v10 = vpop.xlane.xlu1 %5319 }
0x1b32   :  { %7155 = vrcp.f32 %v5320_v10 }
0x1b3f   :  { %v7156_v30 = vpop.eup %7155 }
0x1b40   :  { %v5338_v41 = vmul.f32 %v7156_v30, %v7146_v24 }
0x1b42   :  { %v5343_v53 = vpack.c.bf16 %v5338_v41, %v5338_v41 }
0x1b44   :  { %6878 = vmatmul.mubr.msk.bf16.vlgmr.msra.gmra.mxu1 %vm717_vm7, %v5343_v53 }
0x1b45   :  { %6888 = vmatpush3.bf16.msra.mxu1 %v5450_v12  ;;  %6889 = vmatprep.mubr.msk.bf16.mxu1 %vm7195_vm2, %v7194_v18 }
0x1b46   :  { %6899 = vmatprep.subr.bf16.mxu1 %v7194_v18 }
0x1b62   :  { %v5323_v7 = vpop.xlane.xlu0 %5322 }
0x1b63   :  { %7157 = vrcp.f32 %v5323_v7 }
0x1b66   :  { %v5326_v8 = vpop.xlane.xlu1 %5325 }
0x1b67   :  { %7159 = vrcp.f32 %v5326_v8 }
0x1b6a   :  { %v5332_v11 = vpop.xlane.xlu1 %5331 }
0x1b6b   :  { %v5329_v29 = vpop.xlane.xlu0 %5328  ;;  %7161 = vrcp.f32 %v5332_v11 }
0x1b6c   :  { %7163 = vrcp.f32 %v5329_v29 }
0x1b6e   :  { %v5541_v33 = vpop.permute.xlu1 %5540 }
0x1b6f   :  { %v5493_v32 = vpop.permute.xlu0 %5492  ;;  %v5546_v16 = vsel %vm721_vm6, %v5541_v33, 0 }
0x1b70   :  { %v7158_v54 = vpop.eup %7157  ;;  %v5498_v2 = vsel %vm721_vm6, %v5493_v32, 0 }
0x1b71   :  { %v5339_v31 = vmul.f32 %v7158_v54, %v7148_v37 }
0x1b72   :  { %v4436_v55 = vpop.permute.xlu1 %4435 }
0x1b73   :  { %v5344_v56 = vpack.c.bf16 %v5339_v31, %v5339_v31  ;;  %v4434_v58 = vpop.permute.xlu0 %4433  ;;  %4440 = vst.msk [vmem:[#allocation2 + $0x8] sm:$0x3] %vm1583_vm11, %v4436_v55 }
0x1b74   :  { %v7160_v61 = vpop.eup %7159  ;;  %4439 = vst.msk [vmem:[#allocation2] sm:$0xff] %vm1581_vm9, %v4434_v58 }
0x1b75   :  { %v5340_v63 = vmul.f32 %v7160_v61, %v7150_v40  ;;  %6884 = vmatmul.mubr.msk.bf16.vlgmr.msra.gmra.mxu0 %vm717_vm7, %v5344_v56 }
0x1b76   :  { %6894 = vmatpush3.bf16.msra.mxu0 %v5498_v2  ;;  %v5028_v3 = vpop.permute.xlu1 %5027  ;;  %6895 = vmatprep.mubr.msk.bf16.mxu0 %vm7195_vm2, %v7194_v18 }
0x1b77   :  { %v5345_v4 = vpack.c.bf16 %v5340_v63, %v5340_v63  ;;  %v5026_v9 = vpop.permute.xlu0 %5025  ;;  %5032 = vst.msk [vmem:[#allocation2 + $0x8] sm:$0x3] %vm2177_vm12, %v5028_v3  ;;  %6905 = vmatprep.subr.bf16.mxu0 %v7194_v18 }
0x1b78   :  { %v7162_v14 = vpop.eup %7161  ;;  %5031 = vst.msk [vmem:[#allocation2] sm:$0xff] %vm2175_vm10, %v5026_v9  ;;  %v6990_v9 = vld [vmem:[%s8467_s11 + $0x10] sm:$0xff]  }
0x1b79   :  { %v7164_v57 = vpop.eup %7163  ;;  %6890 = vmatmul.mubr.msk.bf16.vlgmr.msra.gmra.mxu1 %vm717_vm7, %v5345_v4  ;;  %v5342_v17 = vmul.f32 %v7162_v14, %v7152_v43  ;;  %v6991_v14 = vld [vmem:[%s8469_s13 + $0x38] sm:$0xff]  }
0x1b7a   :  { %v5341_v60 = vmul.f32 %v7164_v57, %v7154_v45  ;;  %6900 = vmatpush3.bf16.msra.mxu1 %v5546_v16  ;;  %6901 = vmatprep.mubr.msk.bf16.mxu1 %vm7195_vm2, %v7194_v18 }
0x1b7b   :  { %6913 = vmatprep.subr.bf16.mxu1 %v7194_v18  ;;  %v5347_v20 = vpack.c.bf16 %v5342_v17, %v5342_v17 }
0x1b7c   :  { %v5346_v19 = vpack.c.bf16 %v5341_v60, %v5341_v60 }
0x1b7e   :  { %6896 = vmatmul.mubr.msk.bf16.vlgmr.msra.gmra.mxu0 %vm717_vm7, %v5346_v19 }
0x1b7f   :  { %6909 = vmatprep.mubr.msk.bf16.mxu0 %vm7195_vm2, %v7194_v18  ;;  %6906 = vmatpush3.bf16.msra.mxu0 %v6987_v26  ;;  %v6157_v26 = vld [vmem:[%s8466_s10 + $0x1] ss:$0 sm:$0xff] }
0x1b80   :  { %6907 = vmatprep.subr.bf16.mxu0 %v7194_v18 }
0x1b81   :  { %6902 = vmatmul.mubr.msk.bf16.vlgmr.msra.gmra.mxu1 %vm717_vm7, %v5347_v20 }
0x1b82   :  { %6917 = vmatprep.mubr.msk.bf16.mxu1 %vm7195_vm2, %v7194_v18 }
0x1b83   :  { %6908 = vmatpush3.bf16.msra.mxu0 %v6988_v47 }
0x1b84   :  { %6921 = vmatprep.subr.bf16.mxu0 %v7194_v18 }
0x1c04   :  { %v5390_v22 = vpop.f32.mrf.mxu1 }
0x1c06   :  { %v6879_v23 = vpop.f32.mrf.mxu1 }
0x1c08   :  { %v5393_v24 = vpop.f32.mrf.mxu1 }
0x1c09   :  { %v6156_v24 = vld [vmem:[%s8465_s9 + $0x1] ss:$0 sm:$0xff] }
0x1c0a   :  { %v6880_v25 = vpop.f32.mrf.mxu1 }
0x1c35   :  { %v5438_v27 = vpop.f32.mrf.mxu0 }
0x1c36   :  { %v5593_v15 = vcombine.low %v5390_v22, %v5438_v27 }
0x1c37   :  { %v6885_v28 = vpop.f32.mrf.mxu0 }
0x1c38   :  { %v5601_v38 = vrot.slane %v5593_v15, %v7553_v21  ;;  %v6993_v15 = vld [vmem:[%s8469_s13 + $0x28] sm:$0xff]  }
0x1c39   :  { %v5441_v0 = vpop.f32.mrf.mxu0  ;;  %v5486_v46 = vpop.f32.mrf.mxu1 }
0x1c3b   :  { %v6886_v49 = vpop.f32.mrf.mxu0  ;;  %v6891_v13 = vpop.f32.mrf.mxu1 }
0x1c3c   :  { %v6992_v13 = vld [vmem:[%s8469_s13 + $0x30] sm:$0xff]  }
0x1c3d   :  { %v5489_v62 = vpop.f32.mrf.mxu1 }
0x1c3e   :  { %v5534_v59 = vpop.f32.mrf.mxu0  ;;  %v6994_v62 = vld [vmem:[%s8469_s13 + $0x20] sm:$0xff]  }
0x1c3f   :  { %v5594_v34 = vcombine.low %v5486_v46, %v5534_v59  ;;  %v6892_v35 = vpop.f32.mrf.mxu1  ;;  %v6163_v59 = vld [vmem:[%s8468_s12 + $0x1] ss:$0 sm:$0xff] }
0x1c40   :  { %v6897_v44 = vpop.f32.mrf.mxu0 }
0x1c41   :  { %v5608_v36 = vrot.slane %v5594_v34, %v7553_v21  ;;  %v5582_v37 = vpop.f32.mrf.mxu1 }
0x1c42   :  { %v5537_v39 = vpop.f32.mrf.mxu0  ;;  %v5616_v40 = vrot.slane %v5582_v37, %v7553_v21  ;;  %v6150_v21 = vld [vmem:[%s8464_s8 + $0x1] ss:$0 sm:$0xff] }
0x1c43   :  { %v5609_v42 = vcombine.low %v5601_v38, %v5608_v36  ;;  %v6903_v43 = vpop.f32.mrf.mxu1 }
0x1c44   :  { %v6898_v45 = vpop.f32.mrf.mxu0  ;;  %5619 = vrot.lane.b32.xlu1 %v5616_v40, %s8499_s7  ;;  %v6176_v43 = vld [vmem:[%s8470_s14 + $0x1] ss:$0 sm:$0xff] }
0x1c45   :  { %5617 = vrot.lane.b32.xlu0 %v5609_v42, %s8499_s7  ;;  %v5585_v48 = vpop.f32.mrf.mxu1 }
0x1c47   :  { %v6904_v50 = vpop.f32.mrf.mxu1 }
0x1cb6   :  { %v5620_v51 = vpop.permute.xlu1 %5619 }
0x1cb7   :  { %v5618_v52 = vpop.permute.xlu0 %5617  ;;  %5624 = vst.msk [vmem:[#allocation2 + $0x8] sm:$0x3] %vm2771_vm14, %v5620_v51 }
0x1cb8   :  { %5623 = vst.msk [vmem:[#allocation2] sm:$0xff] %vm2769_vm13, %v5618_v52 }
0x1cbe   :  { %v5626_v1 = vld [vmem:[#allocation2 + $0x8] sm:$0x3] }
0x1cbf   :  { %v5625_v10 = vld [vmem:[#allocation2] sm:$0xff] }
0x1cc0   :  { %v5627_v30 = vpack.c.bf16 %v5626_v1, %v5625_v10 }
0x1cc2   :  { %6910 = vmatmul.mubr.msk.bf16.vlgmr.msra.gmra.mxu0 %vm221_vm3, %v5627_v30 }
0x1cc3   :  { %6929 = vmatprep.mubr.msk.bf16.mxu0 %vm7195_vm2, %v7194_v18  ;;  %6922 = vmatpush3.bf16.msra.mxu0 %v6991_v14 }
0x1cc4   :  { %6923 = vmatprep.subr.bf16.mxu0 %v7194_v18 }
0x1cc7   :  { %6924 = vmatpush3.bf16.msra.mxu0 %v6992_v13 }
0x1cc8   :  { %6925 = vmatprep.subr.bf16.mxu0 %v7194_v18 }
0x1ccb   :  { %6926 = vmatpush3.bf16.msra.mxu0 %v6993_v15 }
0x1ccc   :  { %6927 = vmatprep.subr.bf16.mxu0 %v7194_v18 }
0x1ccf   :  { %6928 = vmatpush3.bf16.msra.mxu0 %v6994_v62 }
0x1d82   :  { %v5690_v41 = vpop.f32.mrf.mxu0 }
0x1d83   :  { %v5691_v53 = vadd.f32 %v6150_v21, %v5690_v41 }
0x1d84   :  { %v6911_v12 = vpop.f32.mrf.mxu0 }
0x1d85   :  { %v5697_v7 = vadd.f32 %v5691_v53, %v7930_v5 }
0x1d86   :  { %v5693_v8 = vpop.f32.mrf.mxu0 }
0x1d87   :  { %v5694_v11 = vadd.f32 %v6150_v21, %v5693_v8  ;;  %v5703_v29 = vsel %vm221_vm3, %v5697_v7, 0.0  ;;  %v6996_v8 = vld [vmem:[%s8473_s17] sm:$0xff]  }
0x1d88   :  { %5704 = vadd.xlane.f32.xlu0 %v5703_v29  ;;  %v6912_v33 = vpop.f32.mrf.mxu0 }
0x1d89   :  { %v5698_v32 = vadd.f32 %v5694_v11, %v7932_v6  ;;  %v6989_v6 = vld [vmem:[%s8467_s11 + $0x18] sm:$0xff]  }
0x1d8a   :  { %6914 = vmatpush3.bf16.msra.mxu1 %v6989_v6 }
0x1d8b   :  { %v5706_v54 = vsel %vm219_vm1, %v5698_v32, 0.0  ;;  %6915 = vmatprep.subr.bf16.mxu1 %v7194_v18 }
0x1d8c   :  { %5707 = vadd.xlane.f32.xlu1 %v5706_v54  ;;  %v6184_v54 = vld [vmem:[%s8471_s15 + $0x1] ss:$0 sm:$0xff]  ;;  %s7171_s15 = scalar_lea.vmem %s6009_s4, 32 }
0x1d8d   :  { %p7172_p0 = scmp.ne.s32.totalorder %s6009_s4, %s7171_s15  ;;  %p7177_p2 = scmp.lt.s32.totalorder %s7171_s15, %s7171_s15 }
0x1d8e   :  { %6916 = vmatpush3.bf16.msra.mxu1 %v6990_v9 }
0x1d8f   :  { %6933 = vmatprep.subr.bf16.mxu1 %v7194_v18  ;;  %p7178_p3 = por %p7177_p2, %p7176_p1 }
0x1d91   :  { %p7179_p4 = pnand %p7178_p3, %p7172_p0 }
0x1e11   :  { %v5705_v31 = vpop.xlane.xlu0 %5704 }
0x1e12   :  { %v5709_v55 = vmul.f32 0.03125, %v5705_v31 }
0x1e14   :  { %v5711_v56 = vsub.f32 %v5697_v7, %v5709_v55  ;;  %v6995_v7 = vld [vmem:[%s8473_s17 + $0x8] sm:$0xff]   ;;  %v6185_v55 = vld [vmem:[%s8472_s16 + $0x1] ss:$0 sm:$0xff] }
0x1e15   :  { %v5708_v58 = vpop.xlane.xlu1 %5707 }
0x1e16   :  { %v5710_v61 = vmul.f32 0.03125, %v5708_v58  ;;  %v5713_v63 = vmul.f32 %v5711_v56, %v5711_v56 }
0x1e18   :  { %v5712_v2 = vsub.f32 %v5698_v32, %v5710_v61  ;;  %v5715_v5 = vsel %vm221_vm3, %v5713_v63, 0.0  ;;  %v6186_v61 = vld [vmem:[%s8474_s18] ss:$0 sm:$0xff] }
0x1e19   :  { %5716 = vadd.xlane.f32.xlu0 %v5715_v5 }
0x1e1a   :  { %v5714_v3 = vmul.f32 %v5712_v2, %v5712_v2 }
0x1e1c   :  { %v5718_v4 = vsel %vm219_vm1, %v5714_v3, 0.0 }
0x1e1d   :  { %5719 = vadd.xlane.f32.xlu0 %v5718_v4 }
0x1ea2   :  { %v5717_v57 = vpop.xlane.xlu0 %5716 }
0x1ea3   :  { %v5721_v16 = vmul.f32 0.03125, %v5717_v57 }
0x1ea5   :  { %v5723_v60 = vadd.f32 1e-05, %v5721_v16 }
0x1ea6   :  { %v5720_v17 = vpop.xlane.xlu0 %5719 }
0x1ea7   :  { %7165 = vrsqrt.f32 %v5723_v60  ;;  %v5722_v19 = vmul.f32 0.03125, %v5720_v17 }
0x1ea9   :  { %v5724_v20 = vadd.f32 1e-05, %v5722_v19 }
0x1eab   :  { %7167 = vrsqrt.f32 %v5724_v20 }
0x1eb4   :  { %v7166_v22 = vpop.eup %7165 }
0x1eb5   :  { %v5727_v23 = vmul.f32 %v7166_v22, %v5711_v56 }
0x1eb7   :  { %v5735_v27 = vmul.f32 %v6156_v24, %v5727_v23 }
0x1eb8   :  { %v7168_v25 = vpop.eup %7167 }
0x1eb9   :  { %v5728_v28 = vmul.f32 %v7168_v25, %v5712_v2  ;;  %v5743_v46 = vadd.f32 %v6157_v26, %v5735_v27 }
0x1ebb   :  { %v5736_v0 = vmul.f32 %v6156_v24, %v5728_v28 }
0x1ebd   :  { %v5744_v47 = vadd.f32 %v6157_v26, %v5736_v0 }
0x1ebf   :  { %v5745_v49 = vpack.c.bf16 %v5744_v47, %v5743_v46 }
0x1ec1   :  { %6918 = vmatmul.mubr.msk.bf16.vlgmr.msra.gmra.mxu1 %vm221_vm3, %v5745_v49 }
0x1ec2   :  { %6937 = vmatprep.mubr.msk.bf16.mxu1 %vm7195_vm2, %v7194_v18  ;;  %6934 = vmatpush3.bf16.msra.mxu1 %v6995_v7 }
0x1ec3   :  { %6935 = vmatprep.subr.bf16.mxu1 %v7194_v18 }
0x1ec6   :  { %6936 = vmatpush3.bf16.msra.mxu1 %v6996_v8 }
0x1f81   :  { %v5808_v34 = vpop.f32.mrf.mxu1 }
0x1f82   :  { %v5809_v44 = vadd.f32 %v6163_v59, %v5808_v34 }
0x1f83   :  { %v6919_v35 = vpop.f32.mrf.mxu1 }
0x1f84   :  { %v5815_v39 = vmax.f32 %v5809_v44, 0.0 }
0x1f85   :  { %v5811_v38 = vpop.f32.mrf.mxu1 }
0x1f86   :  { %v5812_v36 = vadd.f32 %v6163_v59, %v5811_v38 }
0x1f87   :  { %v6920_v37 = vpop.f32.mrf.mxu1 }
0x1f88   :  { %v5816_v40 = vmax.f32 %v5812_v36, 0.0 }
0x1f8a   :  { %v5817_v42 = vpack.c.bf16 %v5816_v40, %v5815_v39 }
0x1f8c   :  { %6930 = vmatmul.mubr.msk.bf16.vlgmr.msra.gmra.mxu0 %vm174_vm0, %v5817_v42 }
0x204c   :  { %v5896_v45 = vpop.f32.mrf.mxu0 }
0x204d   :  { %v5897_v48 = vadd.f32 %v6176_v43, %v5896_v45 }
0x204e   :  { %v6931_v50 = vpop.f32.mrf.mxu0 }
0x204f   :  { %v5902_v51 = vadd.f32 %v5897_v48, %v5743_v46 }
0x2050   :  { %v5899_v52 = vpop.f32.mrf.mxu0 }
0x2051   :  { %v5907_v1 = vsel %vm221_vm3, %v5902_v51, 0.0 }
0x2052   :  { %5908 = vadd.xlane.f32.xlu1 %v5907_v1  ;;  %v6932_v10 = vpop.f32.mrf.mxu0 }
0x20db   :  { %v5909_v30 = vpop.xlane.xlu1 %5908 }
0x20dc   :  { %v5910_v21 = vmul.f32 0.03125, %v5909_v30 }
0x20de   :  { %v5911_v41 = vsub.f32 %v5902_v51, %v5910_v21 }
0x20e0   :  { %v5912_v53 = vmul.f32 %v5911_v41, %v5911_v41 }
0x20e2   :  { %v5913_v12 = vsel %vm221_vm3, %v5912_v53, 0.0 }
0x20e3   :  { %5914 = vadd.xlane.f32.xlu0 %v5913_v12 }
0x216c   :  { %v5915_v11 = vpop.xlane.xlu0 %5914 }
0x216d   :  { %v5916_v29 = vmul.f32 0.03125, %v5915_v11 }
0x216f   :  { %v5917_v33 = vadd.f32 1e-05, %v5916_v29 }
0x2171   :  { %7169 = vrsqrt.f32 %v5917_v33 }
0x217e   :  { %v7170_v32 = vpop.eup %7169 }
0x217f   :  { %v5919_v31 = vmul.f32 %v7170_v32, %v5911_v41 }
0x2181   :  { %v5926_v18 = vmul.f32 %v6184_v54, %v5919_v31 }
0x2183   :  { %v5933_v56 = vadd.f32 %v6185_v55, %v5926_v18 }
0x2185   :  { %v5934_v58 = vpack.c.bf16 %v5933_v56, %v5933_v56 }
0x2187   :  { %6938 = vmatmul.mubr.msk.bf16.vlgmr.msra.gmra.mxu1 %vm221_vm3, %v5934_v58 }
0x2247   :  { %v5995_v63 = vpop.f32.mrf.mxu1 }
0x2248   :  { %v5996_v2 = vadd.f32 %v6186_v61, %v5995_v63 }
0x2249   :  { %v6939_v5 = vpop.f32.mrf.mxu1 }
0x224a   :  { %6001 = vst [vmem:[#allocation3] sm:$0x3] %v5996_v2 }
0x224b   :  { %v5998_v3 = vpop.f32.mrf.mxu1 }
0x224c   :  { %7182 = shalt.err (!%p7179_p4)
}
0x224d   :  { %6011 = dma.vmem_to_hbm [thread:$0]  %s6009_s4, 32, %s8475_s19, [#allocation4]   ;;  %v6940_v4 = vpop.f32.mrf.mxu1 }
0x224e   :  { %7191 = dma.done.wait [#allocation4], 32  }
0x224f   :  { %7192 = vsyncadd [#allocation4], 4294967264 }
0x2250   :  { %6015 = vsyncpa [#allocation4], 1 }

</bundles_post_ra>
